<compile_context>
chip_gen: v5e
topology: v5e:2x2
jax: 0.10.0
libtpu: 0.0.40
codegen_flags: <defaults>
</compile_context>

<pallas_src>
import functools

import jax
import jax.numpy as jnp
from jax.experimental import pallas as pl
from jax.experimental.pallas import tpu as pltpu

LANE = 128  # TPU lane width; channel dims are zero-padded to a multiple of this.


def _round_up(x, m):
    return ((x + m - 1) // m) * m


def _shift_sum(y2d, rows_out, w, cp):
    """Combine the 3 kh column-groups of a stacked matmul result with row shifts.

    y2d: (rows_in * w, 3*cp) f32, column group kh = contribution of kernel row kh.
    Returns (rows_out, w, cp) f32 with out[m] = sum_kh y[kh][m + kh].
    """
    rows_in = y2d.shape[0] // w
    y0 = y2d[:, 0 * cp:1 * cp].reshape(rows_in, w, cp)
    y1 = y2d[:, 1 * cp:2 * cp].reshape(rows_in, w, cp)
    y2 = y2d[:, 2 * cp:3 * cp].reshape(rows_in, w, cp)
    acc = y0[0:rows_out]                  # accumulator init from first term (no zeros)
    acc = acc + y1[1:rows_out + 1]
    acc = acc + y2[2:rows_out + 2]
    return acc


def double_conv_kernel(x_ref, w1_ref, s1_ref, t1_ref, w2_ref, s2_ref, t2_ref,
                       o_ref, midpad_ref):
    """Fused (conv3x3 pad=1 -> BN -> ReLU) x 2 for one (batch, row-tile) grid step.

    x_ref   : (1, H+4, W+2, Cinp)   bf16, zero-padded NHWC image (whole image, per batch)
    w1_ref  : (3*Cinp, 3*Cmidp)     bf16, rows = (kw, cin), cols = (kh, cmid)
    s1_ref  : (1, Cmidp)            f32 folded BN scale (layer 1)
    t1_ref  : (1, Cmidp)            f32 folded BN shift + conv bias (layer 1)
    w2_ref  : (3*Cmidp, 3*Coutp)    bf16
    s2_ref  : (1, Coutp)            f32
    t2_ref  : (1, Coutp)            f32
    o_ref   : (1, TH, W, Coutp)     bf16 output row tile (lane-dense, Coutp % 128 == 0)
    midpad_ref : (TH+2, W+2, Cmidp) bf16 VMEM scratch (padded mid activation tile)
    """
    TH = o_ref.shape[1]
    W = o_ref.shape[2]
    Coutp = o_ref.shape[3]
    Cinp = x_ref.shape[3]
    Cmidp = midpad_ref.shape[2]

    r = pl.program_id(1)
    nrow = pl.num_programs(1)
    row0 = pl.multiple_of(r * TH, TH)

    # ---- layer 1: halo'd input tile, im2col over kw, one wide MXU matmul ----------
    xt = x_ref[0, pl.ds(row0, TH + 4), :, :]                   # (TH+4, W+2, Cinp) bf16
    xcat = jnp.concatenate(                                    # lane-aligned concat
        [xt[:, 0:W, :], xt[:, 1:W + 1, :], xt[:, 2:W + 2, :]], axis=-1)
    y1 = jnp.dot(xcat.reshape((TH + 4) * W, 3 * Cinp), w1_ref[...],
                 preferred_element_type=jnp.float32)           # ((TH+4)*W, 3*Cmidp)
    mid = _shift_sum(y1, TH + 2, W, Cmidp)                     # (TH+2, W, Cmidp) f32
    mid = jnp.maximum(mid * s1_ref[...].reshape(1, 1, Cmidp)
                      + t1_ref[...].reshape(1, 1, Cmidp), 0.0)  # bias+BN folded, ReLU

    # ---- stage mid (+1 halo row/col each side) in bf16 VMEM: ONE aligned full store --
    zcol = jnp.zeros((TH + 2, 1, Cmidp), jnp.bfloat16)
    midpad_ref[...] = jnp.concatenate([zcol, mid.astype(jnp.bfloat16), zcol], axis=1)

    # Mid halo rows outside the image must be exactly zero (layer-2 zero padding applies
    # to the mid activation, not to layer1(0)).  Patched every iteration (per-core scratch).
    @pl.when(r == 0)
    def _():
        midpad_ref[0:1, :, :] = jnp.zeros((1, W + 2, Cmidp), jnp.bfloat16)

    @pl.when(r == nrow - 1)
    def _():
        midpad_ref[TH + 1:TH + 2, :, :] = jnp.zeros((1, W + 2, Cmidp), jnp.bfloat16)

    # ---- layer 2: same structure, K = 3*Cmidp, N = 3*Coutp --------------------------
    mcat = jnp.concatenate(
        [midpad_ref[:, 0:W, :], midpad_ref[:, 1:W + 1, :], midpad_ref[:, 2:W + 2, :]],
        axis=-1)                                               # (TH+2, W, 3*Cmidp) bf16
    y2 = jnp.dot(mcat.reshape((TH + 2) * W, 3 * Cmidp), w2_ref[...],
                 preferred_element_type=jnp.float32)           # ((TH+2)*W, 3*Coutp)
    out = _shift_sum(y2, TH, W, Coutp)                         # (TH, W, Coutp) f32
    out = jnp.maximum(out * s2_ref[...].reshape(1, 1, Coutp)
                      + t2_ref[...].reshape(1, 1, Coutp), 0.0)
    o_ref[0] = out.astype(o_ref.dtype)                         # bf16, lane-dense store


def _vmem_capacity_bytes():
    try:
        return int(pltpu.get_tpu_info().vmem_capacity_bytes)
    except Exception:                                          # noqa: BLE001
        return 64 * 2 ** 20                                    # conservative (v7x per-core)


def _vmem_estimate(TH, H, W, Cinp, Cmidp, Coutp):
    """Honest VMEM estimate: double-buffered blocks + weights + scratch + the
    materialized xcat / mcat / matmul-result / mid temporaries."""
    in_blk = (H + 4) * (W + 2) * Cinp * 2
    out_blk = TH * W * Coutp * 2
    wts = (3 * Cinp * 3 * Cmidp + 3 * Cmidp * 3 * Coutp) * 2 + 2 * (Cmidp + Coutp) * 4
    midpad = (TH + 2) * (W + 2) * Cmidp * 2
    xcat = (TH + 4) * W * 3 * Cinp * 2
    y1 = (TH + 4) * W * 3 * Cmidp * 4
    mid = (TH + 2) * W * Cmidp * 4
    mcat = (TH + 2) * W * 3 * Cmidp * 2
    y2 = (TH + 2) * W * 3 * Coutp * 4
    return 2 * (in_blk + out_blk + wts) + midpad + xcat + y1 + mid + mcat + y2


def _pick_row_tile(H, W, Cinp, Cmidp, Coutp, capacity):
    budget = capacity // 3
    divisors = [d for d in range(1, H + 1) if H % d == 0]
    for th in sorted(divisors, reverse=True):
        if _vmem_estimate(th, H, W, Cinp, Cmidp, Coutp) <= budget:
            return th
    return divisors[0]


def fused_double_conv(xp, w1s, s1, t1, w2s, s2, t2, *, row_tile=None):
    """Padded NHWC bf16 in -> NHWC bf16 out (lane-padded channels). Grid (batch, row tiles)."""
    N, Hp, Wp, Cinp = xp.shape
    H, W = Hp - 4, Wp - 2
    Cmidp = w1s.shape[1] // 3
    Coutp = w2s.shape[1] // 3

    capacity = _vmem_capacity_bytes()
    if row_tile is None:
        row_tile = _pick_row_tile(H, W, Cinp, Cmidp, Coutp, capacity)
    TH = row_tile
    assert H % TH == 0, (H, TH)
    R = H // TH

    need = _vmem_estimate(TH, H, W, Cinp, Cmidp, Coutp)
    vmem_limit = int(min(max(need * 3 // 2, 32 * 2 ** 20), int(capacity * 0.9)))
    vmem_limit = max(vmem_limit, need)

    flops = 2 * N * H * W * 9 * (Cinp * Cmidp + Cmidp * Coutp)
    bytes_accessed = (xp.size * 2 + N * H * W * Coutp * 2
                      + (w1s.size + w2s.size) * 2
                      + (s1.size + t1.size + s2.size + t2.size) * 4)

    return pl.pallas_call(
        double_conv_kernel,
        out_shape=jax.ShapeDtypeStruct((N, H, W, Coutp), jnp.bfloat16),
        grid=(N, R),
        in_specs=[
            pl.BlockSpec((1, Hp, Wp, Cinp), lambda n, r: (n, 0, 0, 0)),
            pl.BlockSpec((3 * Cinp, 3 * Cmidp), lambda n, r: (0, 0)),
            pl.BlockSpec((1, Cmidp), lambda n, r: (0, 0)),
            pl.BlockSpec((1, Cmidp), lambda n, r: (0, 0)),
            pl.BlockSpec((3 * Cmidp, 3 * Coutp), lambda n, r: (0, 0)),
            pl.BlockSpec((1, Coutp), lambda n, r: (0, 0)),
            pl.BlockSpec((1, Coutp), lambda n, r: (0, 0)),
        ],
        out_specs=pl.BlockSpec((1, TH, W, Coutp), lambda n, r: (n, r, 0, 0)),
        scratch_shapes=[pltpu.VMEM((TH + 2, W + 2, Cmidp), jnp.bfloat16)],
        compiler_params=pltpu.CompilerParams(
            dimension_semantics=("parallel", "parallel"),
            vmem_limit_bytes=vmem_limit),
        cost_estimate=pl.CostEstimate(
            flops=flops, transcendentals=0, bytes_accessed=bytes_accessed),
    )(xp, w1s, s1, t1, w2s, s2, t2)


def init_double_conv_params(key, in_channels, out_channels, mid_channels=None):
    """Deterministic parameter init mirroring the PyTorch module's shapes (OIHW etc.)."""
    if not mid_channels:
        mid_channels = out_channels
    keys = jax.random.split(key, 8)

    def conv_params(kw, kb, cin, cout):
        bound = 1.0 / jnp.sqrt(cin * 9.0)
        w = jax.random.uniform(kw, (cout, cin, 3, 3), jnp.float32, -bound, bound)
        b = jax.random.uniform(kb, (cout,), jnp.float32, -bound, bound)
        return w, b

    def bn_params(kg, kb, c):
        gamma = 1.0 + 0.1 * jax.random.normal(kg, (c,), jnp.float32)
        beta = 0.1 * jax.random.normal(kb, (c,), jnp.float32)
        running_mean = jnp.zeros((c,), jnp.float32)   # PyTorch init
        running_var = jnp.ones((c,), jnp.float32)     # PyTorch init
        return gamma, beta, running_mean, running_var

    w1, b1 = conv_params(keys[0], keys[1], in_channels, mid_channels)
    g1, be1, rm1, rv1 = bn_params(keys[2], keys[3], mid_channels)
    w2, b2 = conv_params(keys[4], keys[5], mid_channels, out_channels)
    g2, be2, rm2, rv2 = bn_params(keys[6], keys[7], out_channels)
    return dict(w1=w1, b1=b1, g1=g1, be1=be1, rm1=rm1, rv1=rv1,
                w2=w2, b2=b2, g2=g2, be2=be2, rm2=rm2, rv2=rv2)


def prepare_double_conv_params(params, eps=1e-5):
    """One-time prep (hoisted out of the forward): OIHW -> (3*Cinp, 3*Coutp) bf16
    dy-stacked weights with lane-padded channels, BN folded into per-channel
    scale/shift with the conv bias absorbed (zero-padded channels map to 0)."""
    def prep(w_oihw, b, gamma, beta, rmean, rvar):
        cout, cin = int(w_oihw.shape[0]), int(w_oihw.shape[1])
        cinp, coutp = _round_up(cin, LANE), _round_up(cout, LANE)
        w = jnp.transpose(w_oihw, (2, 3, 1, 0))                      # OIHW -> (kh, kw, I, O)
        w = jnp.pad(w, ((0, 0), (0, 0), (0, cinp - cin), (0, coutp - cout)))
        # Stack: rows = (kw, cin) -> K = 3*Cinp ; cols = (kh, cout) -> N = 3*Coutp.
        w_stack = jnp.transpose(w, (1, 2, 0, 3)).reshape(3 * cinp, 3 * coutp)
        scale = gamma / jnp.sqrt(rvar + eps)
        shift = beta - rmean * scale + b * scale                     # conv bias folded in
        scale = jnp.pad(scale, (0, coutp - cout)).reshape(1, coutp)
        shift = jnp.pad(shift, (0, coutp - cout)).reshape(1, coutp)
        return (w_stack.astype(jnp.bfloat16), scale.astype(jnp.float32),
                shift.astype(jnp.float32))

    w1, s1, t1 = prep(params["w1"], params["b1"], params["g1"], params["be1"],
                      params["rm1"], params["rv1"])
    w2, s2, t2 = prep(params["w2"], params["b2"], params["g2"], params["be2"],
                      params["rm2"], params["rv2"])
    return dict(w1=w1, s1=s1, t1=t1, w2=w2, s2=s2, t2=t2)


@functools.partial(jax.jit, static_argnames=("out_channels", "row_tile"))
def double_conv_forward(x_nchw, prepped, *, out_channels, row_tile=None):
    """DoubleConv forward: NCHW f32 in -> NCHW f32 out (matches PyTorch semantics)."""
    N, Cin, H, W = x_nchw.shape
    cinp = prepped["w1"].shape[0] // 3
    # NCHW -> NHWC (channels on lanes), bf16 (half the HBM DMA bytes), zero-pad:
    # 2 rows top/bottom (fused 5x5 halo), 1 col left/right (conv pad), channels -> Cinp.
    x = jnp.transpose(x_nchw, (0, 2, 3, 1)).astype(jnp.bfloat16)
    xp = jnp.pad(x, ((0, 0), (2, 2), (1, 1), (0, cinp - Cin)))
    y = fused_double_conv(xp, prepped["w1"], prepped["s1"], prepped["t1"],
                          prepped["w2"], prepped["s2"], prepped["t2"],
                          row_tile=row_tile)
    # Slice off channel padding; NHWC -> NCHW; cast back to f32 (fuses into one pass).
    y = y[..., :out_channels].astype(jnp.float32)
    return jnp.transpose(y, (0, 3, 1, 2))


def _reference_forward(x_nchw, params):
    """Pure-JAX f32 reference (lax conv) for the correctness check."""
    def conv(x, w, b):
        y = jax.lax.conv_general_dilated(
            x, w, window_strides=(1, 1), padding=((1, 1), (1, 1)),
            dimension_numbers=("NCHW", "OIHW", "NCHW"))
        return y + b[None, :, None, None]

    def bn_relu(x, g, be, rm, rv, eps=1e-5):
        s = g / jnp.sqrt(rv + eps)
        sh = be - rm * s
        y = x * s[None, :, None, None] + sh[None, :, None, None]
        return jnp.maximum(y, 0.0)

    x = conv(x_nchw, params["w1"], params["b1"])
    x = bn_relu(x, params["g1"], params["be1"], params["rm1"], params["rv1"])
    x = conv(x, params["w2"], params["b2"])
    x = bn_relu(x, params["g2"], params["be2"], params["rm2"], params["rv2"])
    return x


if __name__ == "__main__":
    key = jax.random.PRNGKey(0)
    k_x, k_p = jax.random.split(key)

    N, Cin, H, W = 2, 4, 16, 16
    Cout = 8
    x = jax.random.normal(k_x, (N, Cin, H, W), jnp.float32)      # NCHW like PyTorch
    params = init_double_conv_params(k_p, Cin, Cout)
    prepped = prepare_double_conv_params(params)                 # hoisted weight/BN prep

    # row_tile=8 -> 2 row tiles per image: exercises the halo'd row-tiling path.
    out = double_conv_forward(x, prepped, out_channels=Cout, row_tile=8)
    out = jax.block_until_ready(out)

    ref = _reference_forward(x, params)
    assert out.shape == (N, Cout, H, W), out.shape
    # bf16 MXU operands / bf16 mid + output staging -> loosened tolerance vs f32 ref.
    assert jnp.allclose(out, ref, atol=5e-2, rtol=5e-2), float(
        jnp.max(jnp.abs(out - ref)))

    print("KERNEL_OK")
</pallas_src>

<mosaic_0001>
module attributes {stable_mosaic.version = 11 : i64} {
  func.func @double_conv_kernel(%arg0: i32, %arg1: i32, %arg2: memref<1x20x18x128xbf16, #tpu.memory_space<vmem>>, %arg3: memref<384x384xbf16, #tpu.memory_space<vmem>>, %arg4: memref<1x128xf32, #tpu.memory_space<vmem>>, %arg5: memref<1x128xf32, #tpu.memory_space<vmem>>, %arg6: memref<384x384xbf16, #tpu.memory_space<vmem>>, %arg7: memref<1x128xf32, #tpu.memory_space<vmem>>, %arg8: memref<1x128xf32, #tpu.memory_space<vmem>>, %arg9: memref<1x8x16x128xbf16, #tpu.memory_space<vmem>>, %arg10: memref<10x18x128xbf16, #tpu.memory_space<vmem>>) attributes {dimension_semantics = [#tpu.dimension_semantics<parallel>, #tpu.dimension_semantics<parallel>], iteration_bounds = array<i64: 2, 2>, scalar_prefetch = 0 : i64, scratch_operands = 1 : i64, tpu.core_type = #tpu.core_type<tc>, window_params = [{transform_indices = @transform_0, window_bounds = array<i64: 1, 20, 18, 128>}, {pipeline_mode = #tpu.pipeline_mode<synchronous>, transform_indices = @transform_1, window_bounds = array<i64: 384, 384>}, {pipeline_mode = #tpu.pipeline_mode<synchronous>, transform_indices = @transform_2, window_bounds = array<i64: 1, 128>}, {pipeline_mode = #tpu.pipeline_mode<synchronous>, transform_indices = @transform_3, window_bounds = array<i64: 1, 128>}, {pipeline_mode = #tpu.pipeline_mode<synchronous>, transform_indices = @transform_4, window_bounds = array<i64: 384, 384>}, {pipeline_mode = #tpu.pipeline_mode<synchronous>, transform_indices = @transform_5, window_bounds = array<i64: 1, 128>}, {pipeline_mode = #tpu.pipeline_mode<synchronous>, transform_indices = @transform_6, window_bounds = array<i64: 1, 128>}, {transform_indices = @transform_7, window_bounds = array<i64: 1, 8, 16, 128>}]} {
    %c8_i32 = arith.constant 8 : i32
    %0 = arith.muli %arg1, %c8_i32 : i32
    %1 = tpu.assume_multiple %0, 8 : i32
    %c0 = arith.constant 0 : index
    %2 = arith.index_cast %1 : i32 to index
    %c0_0 = arith.constant 0 : index
    %c0_1 = arith.constant 0 : index
    %3 = vector.load %arg2[%c0, %2, %c0_0, %c0_1] : memref<1x20x18x128xbf16, #tpu.memory_space<vmem>>, vector<1x12x18x128xbf16>
    %4 = vector.shape_cast %3 : vector<1x12x18x128xbf16> to vector<12x18x128xbf16>
    %5 = vector.extract_strided_slice %4 {offsets = [0, 0, 0], sizes = [12, 16, 128], strides = [1, 1, 1]} : vector<12x18x128xbf16> to vector<12x16x128xbf16>
    %6 = vector.extract_strided_slice %4 {offsets = [0, 1, 0], sizes = [12, 16, 128], strides = [1, 1, 1]} : vector<12x18x128xbf16> to vector<12x16x128xbf16>
    %7 = vector.extract_strided_slice %4 {offsets = [0, 2, 0], sizes = [12, 16, 128], strides = [1, 1, 1]} : vector<12x18x128xbf16> to vector<12x16x128xbf16>
    %8 = tpu.concatenate %5, %6, %7 in 2 : vector<12x16x128xbf16>, vector<12x16x128xbf16>, vector<12x16x128xbf16> -> vector<12x16x384xbf16>
    %9 = vector.shape_cast %8 : vector<12x16x384xbf16> to vector<192x384xbf16>
    %c0_2 = arith.constant 0 : index
    %c0_3 = arith.constant 0 : index
    %10 = vector.load %arg3[%c0_2, %c0_3] : memref<384x384xbf16, #tpu.memory_space<vmem>>, vector<384x384xbf16>
    %cst = arith.constant dense<0.000000e+00> : vector<192x384xf32>
    %11 = tpu.matmul %9, %10, %cst {dimension_numbers = #tpu.dot_dimension_numbers<[1], [0], [0], [1], [0, 0, 1, 1], [], []>} : vector<192x384xbf16>, vector<384x384xbf16>, vector<192x384xf32> -> vector<192x384xf32>
    %12 = vector.extract_strided_slice %11 {offsets = [0, 0], sizes = [192, 128], strides = [1, 1]} : vector<192x384xf32> to vector<192x128xf32>
    %13 = vector.shape_cast %12 : vector<192x128xf32> to vector<12x16x128xf32>
    %14 = vector.extract_strided_slice %11 {offsets = [0, 128], sizes = [192, 128], strides = [1, 1]} : vector<192x384xf32> to vector<192x128xf32>
    %15 = vector.shape_cast %14 : vector<192x128xf32> to vector<12x16x128xf32>
    %16 = vector.extract_strided_slice %11 {offsets = [0, 256], sizes = [192, 128], strides = [1, 1]} : vector<192x384xf32> to vector<192x128xf32>
    %17 = vector.shape_cast %16 : vector<192x128xf32> to vector<12x16x128xf32>
    %18 = vector.extract_strided_slice %13 {offsets = [0, 0, 0], sizes = [10, 16, 128], strides = [1, 1, 1]} : vector<12x16x128xf32> to vector<10x16x128xf32>
    %19 = vector.extract_strided_slice %15 {offsets = [1, 0, 0], sizes = [10, 16, 128], strides = [1, 1, 1]} : vector<12x16x128xf32> to vector<10x16x128xf32>
    %20 = arith.addf %18, %19 : vector<10x16x128xf32>
    %21 = vector.extract_strided_slice %17 {offsets = [2, 0, 0], sizes = [10, 16, 128], strides = [1, 1, 1]} : vector<12x16x128xf32> to vector<10x16x128xf32>
    %22 = arith.addf %20, %21 : vector<10x16x128xf32>
    %c0_4 = arith.constant 0 : index
    %c0_5 = arith.constant 0 : index
    %23 = vector.load %arg4[%c0_4, %c0_5] : memref<1x128xf32, #tpu.memory_space<vmem>>, vector<1x128xf32>
    %24 = vector.shape_cast %23 : vector<1x128xf32> to vector<1x1x128xf32>
    %25 = vector.broadcast %24 : vector<1x1x128xf32> to vector<10x16x128xf32>
    %26 = arith.mulf %22, %25 : vector<10x16x128xf32>
    %c0_6 = arith.constant 0 : index
    %c0_7 = arith.constant 0 : index
    %27 = vector.load %arg5[%c0_6, %c0_7] : memref<1x128xf32, #tpu.memory_space<vmem>>, vector<1x128xf32>
    %28 = vector.shape_cast %27 : vector<1x128xf32> to vector<1x1x128xf32>
    %29 = vector.broadcast %28 : vector<1x1x128xf32> to vector<10x16x128xf32>
    %30 = arith.addf %26, %29 : vector<10x16x128xf32>
    %cst_8 = arith.constant 0.000000e+00 : f32
    %31 = vector.broadcast %cst_8 : f32 to vector<10x16x128xf32>
    %32 = arith.maximumf %30, %31 : vector<10x16x128xf32>
    %cst_9 = arith.constant 0.000000e+00 : bf16
    %33 = vector.broadcast %cst_9 : bf16 to vector<10x1x128xbf16>
    %34 = arith.truncf %32 : vector<10x16x128xf32> to vector<10x16x128xbf16>
    %35 = tpu.concatenate %33, %34, %33 in 1 : vector<10x1x128xbf16>, vector<10x16x128xbf16>, vector<10x1x128xbf16> -> vector<10x18x128xbf16>
    %c0_10 = arith.constant 0 : index
    %c0_11 = arith.constant 0 : index
    %c0_12 = arith.constant 0 : index
    %36 = vector.load %arg10[%c0_10, %c0_11, %c0_12] : memref<10x18x128xbf16, #tpu.memory_space<vmem>>, vector<10x18x128xbf16>
    tpu.vector_store %arg10[%c0_10, %c0_11, %c0_12], %35 {strides = array<i32>} : memref<10x18x128xbf16, #tpu.memory_space<vmem>>, vector<10x18x128xbf16>,
    %c0_i32 = arith.constant 0 : i32
    %37 = arith.cmpi eq, %arg1, %c0_i32 : i32
    %38 = arith.extui %37 : i1 to i32
    %c0_i32_13 = arith.constant 0 : i32
    %39 = arith.cmpi ne, %38, %c0_i32_13 : i32
    scf.if %39 {
      %cst_34 = arith.constant 0.000000e+00 : bf16
      %75 = vector.broadcast %cst_34 : bf16 to vector<1x18x128xbf16>
      %c0_35 = arith.constant 0 : index
      %c0_36 = arith.constant 0 : index
      %c0_37 = arith.constant 0 : index
      %76 = vector.load %arg10[%c0_35, %c0_36, %c0_37] : memref<10x18x128xbf16, #tpu.memory_space<vmem>>, vector<1x18x128xbf16>
      tpu.vector_store %arg10[%c0_35, %c0_36, %c0_37], %75 {strides = array<i32>} : memref<10x18x128xbf16, #tpu.memory_space<vmem>>, vector<1x18x128xbf16>,
    } else {
    }
    %c1_i32 = arith.constant 1 : i32
    %40 = arith.cmpi eq, %arg1, %c1_i32 : i32
    %41 = arith.extui %40 : i1 to i32
    %c0_i32_14 = arith.constant 0 : i32
    %42 = arith.cmpi ne, %41, %c0_i32_14 : i32
    scf.if %42 {
      %cst_34 = arith.constant 0.000000e+00 : bf16
      %75 = vector.broadcast %cst_34 : bf16 to vector<1x18x128xbf16>
      %c9 = arith.constant 9 : index
      %c0_35 = arith.constant 0 : index
      %c0_36 = arith.constant 0 : index
      %76 = vector.load %arg10[%c9, %c0_35, %c0_36] : memref<10x18x128xbf16, #tpu.memory_space<vmem>>, vector<1x18x128xbf16>
      tpu.vector_store %arg10[%c9, %c0_35, %c0_36], %75 {strides = array<i32>} : memref<10x18x128xbf16, #tpu.memory_space<vmem>>, vector<1x18x128xbf16>,
    } else {
    }
    %c0_15 = arith.constant 0 : index
    %c0_16 = arith.constant 0 : index
    %c0_17 = arith.constant 0 : index
    %43 = vector.load %arg10[%c0_15, %c0_16, %c0_17] : memref<10x18x128xbf16, #tpu.memory_space<vmem>>, vector<10x16x128xbf16>
    %c0_18 = arith.constant 0 : index
    %c1 = arith.constant 1 : index
    %c0_19 = arith.constant 0 : index
    %44 = vector.load %arg10[%c0_18, %c1, %c0_19] : memref<10x18x128xbf16, #tpu.memory_space<vmem>>, vector<10x16x128xbf16>
    %c0_20 = arith.constant 0 : index
    %c2 = arith.constant 2 : index
    %c0_21 = arith.constant 0 : index
    %45 = vector.load %arg10[%c0_20, %c2, %c0_21] : memref<10x18x128xbf16, #tpu.memory_space<vmem>>, vector<10x16x128xbf16>
    %46 = tpu.concatenate %43, %44, %45 in 2 : vector<10x16x128xbf16>, vector<10x16x128xbf16>, vector<10x16x128xbf16> -> vector<10x16x384xbf16>
    %47 = vector.shape_cast %46 : vector<10x16x384xbf16> to vector<160x384xbf16>
    %c0_22 = arith.constant 0 : index
    %c0_23 = arith.constant 0 : index
    %48 = vector.load %arg6[%c0_22, %c0_23] : memref<384x384xbf16, #tpu.memory_space<vmem>>, vector<384x384xbf16>
    %cst_24 = arith.constant dense<0.000000e+00> : vector<160x384xf32>
    %49 = tpu.matmul %47, %48, %cst_24 {dimension_numbers = #tpu.dot_dimension_numbers<[1], [0], [0], [1], [0, 0, 1, 1], [], []>} : vector<160x384xbf16>, vector<384x384xbf16>, vector<160x384xf32> -> vector<160x384xf32>
    %50 = vector.extract_strided_slice %49 {offsets = [0, 0], sizes = [160, 128], strides = [1, 1]} : vector<160x384xf32> to vector<160x128xf32>
    %51 = vector.shape_cast %50 : vector<160x128xf32> to vector<10x16x128xf32>
    %52 = vector.extract_strided_slice %49 {offsets = [0, 128], sizes = [160, 128], strides = [1, 1]} : vector<160x384xf32> to vector<160x128xf32>
    %53 = vector.shape_cast %52 : vector<160x128xf32> to vector<10x16x128xf32>
    %54 = vector.extract_strided_slice %49 {offsets = [0, 256], sizes = [160, 128], strides = [1, 1]} : vector<160x384xf32> to vector<160x128xf32>
    %55 = vector.shape_cast %54 : vector<160x128xf32> to vector<10x16x128xf32>
    %56 = vector.extract_strided_slice %51 {offsets = [0, 0, 0], sizes = [8, 16, 128], strides = [1, 1, 1]} : vector<10x16x128xf32> to vector<8x16x128xf32>
    %57 = vector.extract_strided_slice %53 {offsets = [1, 0, 0], sizes = [8, 16, 128], strides = [1, 1, 1]} : vector<10x16x128xf32> to vector<8x16x128xf32>
    %58 = arith.addf %56, %57 : vector<8x16x128xf32>
    %59 = vector.extract_strided_slice %55 {offsets = [2, 0, 0], sizes = [8, 16, 128], strides = [1, 1, 1]} : vector<10x16x128xf32> to vector<8x16x128xf32>
    %60 = arith.addf %58, %59 : vector<8x16x128xf32>
    %c0_25 = arith.constant 0 : index
    %c0_26 = arith.constant 0 : index
    %61 = vector.load %arg7[%c0_25, %c0_26] : memref<1x128xf32, #tpu.memory_space<vmem>>, vector<1x128xf32>
    %62 = vector.shape_cast %61 : vector<1x128xf32> to vector<1x1x128xf32>
    %63 = vector.broadcast %62 : vector<1x1x128xf32> to vector<8x16x128xf32>
    %64 = arith.mulf %60, %63 : vector<8x16x128xf32>
    %c0_27 = arith.constant 0 : index
    %c0_28 = arith.constant 0 : index
    %65 = vector.load %arg8[%c0_27, %c0_28] : memref<1x128xf32, #tpu.memory_space<vmem>>, vector<1x128xf32>
    %66 = vector.shape_cast %65 : vector<1x128xf32> to vector<1x1x128xf32>
    %67 = vector.broadcast %66 : vector<1x1x128xf32> to vector<8x16x128xf32>
    %68 = arith.addf %64, %67 : vector<8x16x128xf32>
    %cst_29 = arith.constant 0.000000e+00 : f32
    %69 = vector.broadcast %cst_29 : f32 to vector<8x16x128xf32>
    %70 = arith.maximumf %68, %69 : vector<8x16x128xf32>
    %71 = arith.truncf %70 : vector<8x16x128xf32> to vector<8x16x128xbf16>
    %c0_30 = arith.constant 0 : index
    %c0_31 = arith.constant 0 : index
    %c0_32 = arith.constant 0 : index
    %c0_33 = arith.constant 0 : index
    %72 = vector.load %arg9[%c0_30, %c0_31, %c0_32, %c0_33] : memref<1x8x16x128xbf16, #tpu.memory_space<vmem>>, vector<1x8x16x128xbf16>
    %73 = vector.shape_cast %72 : vector<1x8x16x128xbf16> to vector<8x16x128xbf16>
    %74 = vector.shape_cast %71 : vector<8x16x128xbf16> to vector<1x8x16x128xbf16>
    tpu.vector_store %arg9[%c0_30, %c0_31, %c0_32, %c0_33], %74 {strides = array<i32>} : memref<1x8x16x128xbf16, #tpu.memory_space<vmem>>, vector<1x8x16x128xbf16>,
    return
  }
  func.func @transform_0(%arg0: i32, %arg1: i32) -> (i32, i32, i32, i32) {
    %c0_i32 = arith.constant 0 : i32
    %c0_i32_0 = arith.constant 0 : i32
    %c0_i32_1 = arith.constant 0 : i32
    %c0_i32_2 = arith.constant 0 : i32
    return %arg0, %c0_i32, %c0_i32_0, %c0_i32_1 : i32, i32, i32, i32
  }
  func.func @transform_1(%arg0: i32, %arg1: i32) -> (i32, i32) {
    %c0_i32 = arith.constant 0 : i32
    %c0_i32_0 = arith.constant 0 : i32
    %c0_i32_1 = arith.constant 0 : i32
    return %c0_i32, %c0_i32_0 : i32, i32
  }
  func.func @transform_2(%arg0: i32, %arg1: i32) -> (i32, i32) {
    %c0_i32 = arith.constant 0 : i32
    %c0_i32_0 = arith.constant 0 : i32
    %c0_i32_1 = arith.constant 0 : i32
    return %c0_i32, %c0_i32_0 : i32, i32
  }
  func.func @transform_3(%arg0: i32, %arg1: i32) -> (i32, i32) {
    %c0_i32 = arith.constant 0 : i32
    %c0_i32_0 = arith.constant 0 : i32
    %c0_i32_1 = arith.constant 0 : i32
    return %c0_i32, %c0_i32_0 : i32, i32
  }
  func.func @transform_4(%arg0: i32, %arg1: i32) -> (i32, i32) {
    %c0_i32 = arith.constant 0 : i32
    %c0_i32_0 = arith.constant 0 : i32
    %c0_i32_1 = arith.constant 0 : i32
    return %c0_i32, %c0_i32_0 : i32, i32
  }
  func.func @transform_5(%arg0: i32, %arg1: i32) -> (i32, i32) {
    %c0_i32 = arith.constant 0 : i32
    %c0_i32_0 = arith.constant 0 : i32
    %c0_i32_1 = arith.constant 0 : i32
    return %c0_i32, %c0_i32_0 : i32, i32
  }
  func.func @transform_6(%arg0: i32, %arg1: i32) -> (i32, i32) {
    %c0_i32 = arith.constant 0 : i32
    %c0_i32_0 = arith.constant 0 : i32
    %c0_i32_1 = arith.constant 0 : i32
    return %c0_i32, %c0_i32_0 : i32, i32
  }
  func.func @transform_7(%arg0: i32, %arg1: i32) -> (i32, i32, i32, i32) {
    %c0_i32 = arith.constant 0 : i32
    %c0_i32_0 = arith.constant 0 : i32
    %c0_i32_1 = arith.constant 0 : i32
    return %arg0, %arg1, %c0_i32, %c0_i32_0 : i32, i32, i32, i32
  }
}

</mosaic_0001>

<bundles_post_ra>
// kernel: double_conv_forward.1
= control target key start
LH: loop header
LB: loop body
LE: loop exit
PB: predicated region body
PF: predicated region fallthrough
CT: control target
= control target key end

     0   :  { %s4744_s24 = smov 0   ;;  %s4746_s25 = smov 0   ;;  %s6591_s0 = inlined_call_operand.vmem [shape: bf16[2,20,18,128], index: 0, kind: input, shape index: {}]   ;;  %s6592_s1 = inlined_call_operand.vmem [shape: bf16[384,384], index: 1, kind: input, shape index: {}]   ;;  %s6593_s2 = inlined_call_operand.vmem [shape: f32[1,128], index: 2, kind: input, shape index: {}]   ;;  %s6594_s3 = inlined_call_operand.vmem [shape: f32[1,128], index: 3, kind: input, shape index: {}]   ;;  %s6595_s4 = inlined_call_operand.vmem [shape: bf16[384,384], index: 4, kind: input, shape index: {}]   ;;  %s6596_s5 = inlined_call_operand.vmem [shape: f32[1,128], index: 5, kind: input, shape index: {}]   ;;  %s6597_s6 = inlined_call_operand.vmem [shape: f32[1,128], index: 6, kind: input, shape index: {}]   ;;  %s6598_s7 = inlined_call_operand.vmem [shape: bf16[2,16,16,128], index: 7, kind: output, shape index: {}]  }
   0x1   :  { %s4748_s26 = smov 0   ;;  %s4750_s27 = smov 0  }
   0x2   :  { %s4752_s28 = smov 0  }
   0x3 LB: > { %s26_s29 = sadd.s32 1, %s4692_s26  ;;  %s29_s30 = sadd.s32 1, %s4696_s27  ;;  %s4700_s28 = sphi %s4752_s28, %s17_s28   ;;  %s4696_s27 = sphi %s4750_s27, %s6634_s27   ;;  %s4692_s26 = sphi %s4748_s26, %s6633_s26   ;;  %s4688_s25 = sphi %s4746_s25, %s6632_s25   ;;  %s4684_s24 = sphi %s4744_s24, %s6631_s24  }
   0x4   : > { %p27_p0 = scmp.ge.s32.totalorder %s26_s29, 2  ;;  %p3691_p1 = scmp.ge.s32.totalorder %s4700_s28, 1 }
   0x5   : > { %p251_p2 = scmp.lt.s32.totalorder %s4700_s28, 5 }
   0x6   : > { %s6636_s29 = smov (%p27_p0, %s26_s29), 0  ;;  %s6638_s30 = smov (!%p27_p0, %s29_s30), %s4696_s27 }
   0x7   : > { %p252_p3 = pnand %p3691_p1, %p251_p2  ;;  %p31_p4 = scmp.ge.s32.totalorder %s6638_s30, 2 }
   0x9   : > { %s6640_s30 = smov (%p31_p4, %s6638_s30), 0  ;;  %255 = sbr.rel (%p252_p3) target bundleno = 1502 (0x5de), region = 48 }
   0xe   : > { %v3834_v0 = vld [vmem:[%s6592_s1 + $0xa8] sm:$0xf]  ;;  %v4363_v1 = vld [vmem:[%s6592_s1 + $0xb0] sm:$0xf0]  ;;  %v3822_v5 = vld [vmem:[%s6592_s1 + $0x90] sm:$0xf] }
   0xf   : > { %v3930_v2 = vld [vmem:[%s6592_s1 + $0x168] sm:$0xf]  ;;  %v3835_v3 = vor.u32 %v4363_v1, %v3834_v0  ;;  %v4387_v4 = vld [vmem:[%s6592_s1 + $0x170] sm:$0xf0]  ;;  %v4360_v6 = vld [vmem:[%s6592_s1 + $0x98] sm:$0xf0] }
  0x10   : > { %v3931_v7 = vor.u32 %v4387_v4, %v3930_v2  ;;  %v3918_v8 = vld [vmem:[%s6592_s1 + $0x150] sm:$0xf]  ;;  %v4384_v9 = vld [vmem:[%s6592_s1 + $0x158] sm:$0xf0]  ;;  %v3823_v10 = vor.u32 %v4360_v6, %v3822_v5  ;;  %v3810_v12 = vld [vmem:[%s6592_s1 + $0x78] sm:$0xf] }
  0x11   : > { %1139 = vmatpush.bf16.msra.mxu0 %v3835_v3  ;;  %v3919_v11 = vor.u32 %v4384_v9, %v3918_v8  ;;  %v4357_v13 = vld [vmem:[%s6592_s1 + $0x80] sm:$0xf0]  ;;  %v3906_v14 = vld [vmem:[%s6592_s1 + $0x138] sm:$0xf]  ;;  %v3798_v18 = vld [vmem:[%s6592_s1 + $0x60] sm:$0xf] }
  0x12   : > { %1204 = vmatpush.bf16.msra.mxu1 %v3931_v7  ;;  %4571 = vmatpush.bf16.msra.mxu3 %v3931_v7  ;;  %v4381_v15 = vld [vmem:[%s6592_s1 + $0x140] sm:$0xf0]  ;;  %v3811_v16 = vor.u32 %v4357_v13, %v3810_v12  ;;  %v4354_v19 = vld [vmem:[%s6592_s1 + $0x68] sm:$0xf0]  ;;  %v3894_v20 = vld [vmem:[%s6592_s1 + $0x120] sm:$0xf] }
  0x13   : > { %v3907_v17 = vor.u32 %v4381_v15, %v3906_v14  ;;  %v4378_v21 = vld [vmem:[%s6592_s1 + $0x128] sm:$0xf0]  ;;  %v3786_v22 = vld [vmem:[%s6592_s1 + $0x48] sm:$0xf]  ;;  %v4351_v23 = vld [vmem:[%s6592_s1 + $0x50] sm:$0xf0]  ;;  %v3799_v24 = vor.u32 %v4354_v19, %v3798_v18 }
  0x14   : > { %p288_p5 = scmp.lt.s32.totalorder %s4688_s25, 1  ;;  %s3693_s12 = sshll.u32 %s4684_s24, 3  ;;  %v3882_v25 = vld [vmem:[%s6592_s1 + $0x108] sm:$0xf]  ;;  %v3895_v27 = vor.u32 %v4378_v21, %v3894_v20  ;;  %v4411_v28 = vld [vmem:[%s6592_s1 + $0x230] sm:$0xf0]  ;;  %v3787_v31 = vor.u32 %v4351_v23, %v3786_v22 }
  0x15   : > { %1140 = vmatpush.bf16.msra.mxu0 %v3823_v10  ;;  %p296_p6 = scmp.lt.s32.totalorder %s3693_s12, 15  ;;  %s4328_s15 = smul.u32 96, %s4684_s24  ;;  %v4026_v26 = vld [vmem:[%s6592_s1 + $0x228] sm:$0xf]  ;;  %v4375_v29 = vld [vmem:[%s6592_s1 + $0x110] sm:$0xf0] }
  0x16   : > { %1205 = vmatpush.bf16.msra.mxu1 %v3919_v11  ;;  %4572 = vmatpush.bf16.msra.mxu3 %v3919_v11  ;;  %s6642_s25 = smov (!%p288_p5, %s4688_s25), 1  ;;  %v4027_v30 = vor.u32 %v4411_v28, %v4026_v26  ;;  %v3883_v32 = vor.u32 %v4375_v29, %v3882_v25  ;;  %v3774_v33 = vld [vmem:[%s6592_s1 + $0x30] sm:$0xf]  ;;  %v4348_v34 = vld [vmem:[%s6592_s1 + $0x38] sm:$0xf0]  ;;  %vm610_vm1 = vcmask 1046528  }
  0x17   : > { %s6644_s12 = smov (!%p296_p6, %s3693_s12), 15  ;;  %s4587_s22 = smul.u32 240, %s6642_s25  ;;  %v3870_v35 = vld [vmem:[%s6592_s1 + $0xf0] sm:$0xf]  ;;  %v4372_v36 = vld [vmem:[%s6592_s1 + $0xf8] sm:$0xf0]  ;;  %v3775_v39 = vor.u32 %v4348_v34, %v3774_v33 }
  0x18   : > { %s3695_s23 = sshll.u32 %s6642_s25, 5  ;;  %s3694_s8 = sshll.u32 %s6644_s12, 1  ;;  %4579 = vmatpush.bf16.msra.mxu2 %v4027_v30  ;;  %v4014_v41 = vld [vmem:[%s6592_s1 + $0x210] sm:$0xf]  ;;  %v4408_v42 = vld [vmem:[%s6592_s1 + $0x218] sm:$0xf0]  ;;  %v3871_v43 = vor.u32 %v4372_v36, %v3870_v35 }
  0x19   : > { %1141 = vmatpush.bf16.msra.mxu0 %v3811_v16  ;;  %s292_s17 = scalar_lea.vmem %s6591_s0, %s4587_s22  ;;  %s300_s18 = sadd.s32 %s3695_s23, %s3694_s8  ;;  %v3762_v44 = vld [vmem:[%s6592_s1 + $0x18] sm:$0xf]  ;;  %v4345_v45 = vld [vmem:[%s6592_s1 + $0x20] sm:$0xf0]  ;;  %v4015_v50 = vor.u32 %v4408_v42, %v4014_v41  ;;  %v3750_v52 = vld [vmem:[%s6592_s1] sm:$0xf] }
  0x1a   : > { %1206 = vmatpush.bf16.msra.mxu1 %v3907_v17  ;;  %4573 = vmatpush.bf16.msra.mxu3 %v3907_v17  ;;  %s3696_s21 = sshll.u32 %s300_s18, 2  ;;  %s4863_s9 = scalar_lea.vmem %s292_s17, %s4328_s15  ;;  %v3858_v47 = vld [vmem:[%s6592_s1 + $0xd8] sm:$0xf]  ;;  %v4369_v48 = vld [vmem:[%s6592_s1 + $0xe0] sm:$0xf0]  ;;  %v3763_v51 = vor.u32 %v4345_v45, %v3762_v44  ;;  %vm1992_vm2 = vcmask 1040384  }
  0x1b   : > { %s4868_s13 = scalar_lea.vmem %s6598_s7, %s3696_s21  ;;  %v4871_v37 = vld [vmem:[%s4863_s9] sm:$0xff]  ;;  %v311_v38 = vld [vmem:[%s4863_s9 + $0x8] sm:$0x1]  ;;  %v3859_v53 = vor.u32 %v4369_v48, %v3858_v47  ;;  %v4342_v54 = vld [vmem:[%s6592_s1 + $0x8] sm:$0xf0]  ;;  %p4036_p7 = scmp.ne.s32.totalorder %s4684_s24, 0 }
  0x1c   : > { %v429_v40 = vunpack.c.l.b16 %v311_v38  ;;  %v457_v46 = vshll.u32 %v4871_v37, 16  ;;  %4580 = vmatpush.bf16.msra.mxu2 %v4015_v50  ;;  %v455_v55 = vshrl.u32 %v4871_v37, 16  ;;  %v3846_v58 = vld [vmem:[%s6592_s1 + $0xc0] sm:$0xf]  ;;  %v4366_v59 = vld [vmem:[%s6592_s1 + $0xc8] sm:$0xf0]  ;;  %v3751_v60 = vor.u32 %v4342_v54, %v3750_v52 }
  0x1d   : > { %1142 = vmatpush.bf16.msra.mxu0 %v3799_v24  ;;  %v3847_v61 = vor.u32 %v4366_v59, %v3846_v58  ;;  %vm453_vm0 = vsmask.f32 7424  ;;  %v314_v0 = vld [vmem:[%s4863_s9 + $0x14] sm:$0x1]  ;;  %v4914_v2 = vld [vmem:[%s4863_s9 + $0xc] sm:$0xff]  ;;  %v4946_v22 = vld [vmem:[%s4863_s9 + $0x18] sm:$0xff] }
  0x1e   : > { %1207 = vmatpush.bf16.msra.mxu1 %v3895_v27  ;;  %4574 = vmatpush.bf16.msra.mxu3 %v3895_v27  ;;  %v4893_v49 = vpack.c.b16 %v429_v40, %v429_v40  ;;  %v459_v56 = vrot.slane %v457_v46, 1  ;;  %v430_v3 = vunpack.c.l.b16 %v314_v0  ;;  %v4002_v4 = vld [vmem:[%s6592_s1 + $0x1f8] sm:$0xf]  ;;  %v4405_v5 = vld [vmem:[%s6592_s1 + $0x200] sm:$0xf0]  ;;  %v469_v8 = vshll.u32 %v4914_v2, 16 }
  0x1f   : > { %v3990_v6 = vld [vmem:[%s6592_s1 + $0x1e0] sm:$0xf]  ;;  %v4003_v9 = vor.u32 %v4405_v5, %v4002_v4  ;;  %v4402_v10 = vld [vmem:[%s6592_s1 + $0x1e8] sm:$0xf0]  ;;  %v3978_v12 = vld [vmem:[%s6592_s1 + $0x1c8] sm:$0xf] }
  0x20   : > { %v462_v57 = vshll.u32 %v4893_v49, 16  ;;  %v460_v62 = vor.u32 %v459_v56, %v455_v55  ;;  %v4927_v7 = vpack.c.b16 %v430_v3, %v430_v3  ;;  %v3991_v11 = vor.u32 %v4402_v10, %v3990_v6  ;;  %v4399_v13 = vld [vmem:[%s6592_s1 + $0x1d0] sm:$0xf0]  ;;  %v317_v20 = vld [vmem:[%s4863_s9 + $0x20] sm:$0x1] }
  0x21   : > { %1143 = vmatpush.bf16.msra.mxu0 %v3787_v31  ;;  %4581 = vmatpush.bf16.msra.mxu2 %v4003_v9  ;;  %v467_v14 = vshrl.u32 %v4914_v2, 16  ;;  %v471_v15 = vrot.slane %v469_v8, 1  ;;  %v3979_v17 = vor.u32 %v4399_v13, %v3978_v12  ;;  %v431_v23 = vunpack.c.l.b16 %v317_v20  ;;  %v3966_v24 = vld [vmem:[%s6592_s1 + $0x1b0] sm:$0xf]  ;;  %v4396_v25 = vld [vmem:[%s6592_s1 + $0x1b8] sm:$0xf0] }
  0x22   : > { %1208 = vmatpush.bf16.msra.mxu1 %v3883_v32  ;;  %4575 = vmatpush.bf16.msra.mxu3 %v3883_v32  ;;  %v464_v63 = vrot.slane %v462_v57, 1  ;;  %v474_v16 = vshll.u32 %v4927_v7, 16  ;;  %v3967_v26 = vor.u32 %v4396_v25, %v3966_v24  ;;  %v3954_v27 = vld [vmem:[%s6592_s1 + $0x198] sm:$0xf]  ;;  %v4393_v28 = vld [vmem:[%s6592_s1 + $0x1a0] sm:$0xf0] }
  0x23   : > { %v472_v18 = vor.u32 %v471_v15, %v467_v14  ;;  %v4962_v29 = vpack.c.b16 %v431_v23, %v431_v23  ;;  %v3955_v31 = vor.u32 %v4393_v28, %v3954_v27  ;;  %v4966_v32 = vld [vmem:[%s4863_s9 + $0x30] sm:$0xff]  ;;  %v323_v33 = vld [vmem:[%s4863_s9 + $0x38] sm:$0x1]  ;;  %v3942_v34 = vld [vmem:[%s6592_s1 + $0x180] sm:$0xf]  ;;  %v479_v38 = vshrl.u32 %v4946_v22, 16 }
  0x24   : > { %v4911_v1 = vsel %vm453_vm0, %v460_v62, %v464_v63  ;;  %v476_v19 = vrot.slane %v474_v16, 1  ;;  %v4390_v35 = vld [vmem:[%s6592_s1 + $0x188] sm:$0xf0]  ;;  %v433_v36 = vunpack.c.l.b16 %v323_v33  ;;  %v4996_v56 = vld [vmem:[%s4863_s9 + $0x3c] sm:$0xff]  ;;  %v329_v6 = vld [vmem:[%s4863_s9 + $0x50] sm:$0x1] }
  0x25   : > { %1144 = vmatpush.bf16.msra.mxu0 %v3775_v39  ;;  %4582 = vmatpush.bf16.msra.mxu2 %v3991_v11  ;;  %v486_v41 = vshll.u32 %v4962_v29, 16  ;;  %v3943_v42 = vor.u32 %v4390_v35, %v3942_v34  ;;  %v320_v48 = vld [vmem:[%s4863_s9 + $0x2c] sm:$0x1]  ;;  %v626_v62 = vrot.slane %v4996_v56, 1  ;;  %v505_v8 = vshll.u32 %v4966_v32, 16  ;;  %v5029_v25 = vld [vmem:[%s4863_s9 + $0x54] sm:$0xff] }
  0x26   : > { %1209 = vmatpush.bf16.msra.mxu1 %v3871_v43  ;;  %4576 = vmatpush.bf16.msra.mxu3 %v3871_v43  ;;  %v4943_v21 = vsel %vm453_vm0, %v472_v18, %v476_v19  ;;  %v445_v39 = vpack.c.b16 %v433_v36, %v433_v36  ;;  %v623_v43 = vrot.slane %v4966_v32, 1  ;;  %v432_v52 = vunpack.c.l.b16 %v320_v48  ;;  %v332_v23 = vld [vmem:[%s4863_s9 + $0x5c] sm:$0x1] }
  0x27   : > { %v488_v46 = vrot.slane %v486_v41, 1  ;;  %v435_v10 = vunpack.c.l.b16 %v329_v6  ;;  %v503_v12 = vshrl.u32 %v4966_v32, 16  ;;  %v507_v13 = vrot.slane %v505_v8, 1  ;;  %v5044_v41 = vld [vmem:[%s4863_s9 + $0x60] sm:$0xff] }
  0x28   : > { %v624_v44 = vrot.slane %v445_v39, 1  ;;  %v4992_v54 = vpack.c.b16 %v432_v52, %v432_v52  ;;  %v510_v14 = vshll.u32 %v445_v39, 16  ;;  %v517_v24 = vshll.u32 %v4996_v56, 16 }
  0x29   : > { %1145 = vmatpush.bf16.msra.mxu0 %v3763_v51  ;;  %4583 = vmatpush.bf16.msra.mxu2 %v3979_v17  ;;  %v4987_v51 = vld [vmem:[%s4863_s9 + $0x24] sm:$0xff]  ;;  %v515_v28 = vshrl.u32 %v4996_v56, 16  ;;  %v632_v33 = vrot.slane %v5029_v25, 1  ;;  %v541_v8 = vshll.u32 %v5029_v25, 16  ;;  %vm1993_vm3 = vsmask.f32 256 }
  0x2a   : > { %1210 = vmatpush.bf16.msra.mxu1 %v3859_v53  ;;  %4577 = vmatpush.bf16.msra.mxu3 %v3859_v53  ;;  %v4979_v47 = vsel %vm610_vm1, %v623_v43, %v624_v44  ;;  %v326_v53 = vld [vmem:[%s4863_s9 + $0x44] sm:$0x1]  ;;  %v493_v55 = vshll.u32 %v4987_v51, 16  ;;  %v491_v59 = vshrl.u32 %v4987_v51, 16  ;;  %v512_v18 = vrot.slane %v510_v14, 1  ;;  %vm5705_vm4 = vmand %vm1992_vm2, %vm1993_vm3 }
  0x2b   : > { %v434_v57 = vunpack.c.l.b16 %v326_v53  ;;  %v551_v44 = vshrl.u32 %v5044_v41, 16 }
  0x2d   : > { %1146 = vmatpush.bf16.msra.mxu0 %v3751_v60  ;;  %4584 = vmatpush.bf16.msra.mxu2 %v3967_v26  ;;  %v446_v58 = vpack.c.b16 %v434_v57, %v434_v57  ;;  %v495_v60 = vrot.slane %v493_v55, 1 }
  0x2e   : > { %1211 = vmatpush.bf16.msra.mxu1 %v3847_v61  ;;  %4578 = vmatpush.bf16.msra.mxu3 %v3847_v61  ;;  %v498_v61 = vshll.u32 %v4992_v54, 16 }
  0x2f   : > { %v627_v63 = vrot.slane %v446_v58, 1  ;;  %v496_v0 = vor.u32 %v495_v60, %v491_v59 }
  0x30   : > { %1147 = vmatmul.bf16.vlgmr.msra.gmra.mxu0 %v4871_v37  ;;  %v500_v3 = vrot.slane %v498_v61, 1 }
  0x31   : > { %1269 = vmatpush.bf16.msrb.mxu0 %v4027_v30  ;;  %1212 = vmatmul.bf16.vlgmr.msra.gmra.mxu1 %v4911_v1  ;;  %v481_v30 = vshll.u32 %v4946_v22, 16  ;;  %v5002_v4 = vsel %vm610_vm1, %v626_v62, %v627_v63 }
  0x32   : > { %4585 = vmatpush.bf16.msra.mxu2 %v3955_v31  ;;  %v5006_v5 = vsel %vm453_vm0, %v496_v0, %v500_v3 }
  0x33   : > { %v483_v40 = vrot.slane %v481_v30, 1  ;;  %v519_v30 = vrot.slane %v517_v24, 1 }
  0x35   : > { %1270 = vmatpush.bf16.msrb.mxu0 %v4015_v50  ;;  %v484_v45 = vor.u32 %v483_v40, %v479_v38  ;;  %v520_v35 = vor.u32 %v519_v30, %v515_v28 }
  0x36   : > { %4586 = vmatpush.bf16.msra.mxu2 %v3943_v42 }
  0x37   : > { %v4984_v50 = vsel %vm453_vm0, %v484_v45, %v488_v46  ;;  %v553_v45 = vshll.u32 %v5044_v41, 16 }
  0x39   : > { %1271 = vmatpush.bf16.msrb.mxu0 %v4003_v9  ;;  %1297 = vmatmul.bf16.vlgmr.msra.gmra.mxu2 %v4979_v47  ;;  %v5013_v9 = vld [vmem:[%s4863_s9 + $0x48] sm:$0xff]  ;;  %v555_v53 = vrot.slane %v553_v45, 1 }
  0x3a   : > { %v629_v15 = vrot.slane %v5013_v9, 1  ;;  %v529_v40 = vshll.u32 %v5013_v9, 16  ;;  %v527_v48 = vshrl.u32 %v5013_v9, 16 }
  0x3b   : > { %v556_v60 = vor.u32 %v555_v53, %v551_v44 }
  0x3c   : > { %v531_v52 = vrot.slane %v529_v40, 1 }
  0x3d   : > { %1272 = vmatpush.bf16.msrb.mxu0 %v3991_v11  ;;  %v447_v11 = vpack.c.b16 %v435_v10, %v435_v10  ;;  %v338_v10 = vld [vmem:[%s4863_s9 + $0x74] sm:$0x1] }
  0x3e   : > { %v532_v62 = vor.u32 %v531_v52, %v527_v48 }
  0x3f   : > { %v630_v16 = vrot.slane %v447_v11, 1  ;;  %v534_v55 = vshll.u32 %v447_v11, 16  ;;  %v5067_v11 = vld [vmem:[%s4863_s9 + $0x6c] sm:$0xff] }
  0x40   : > { %1152 = vmatmul.bf16.gmra.mxu0 %v4914_v2  ;;  %v565_v14 = vshll.u32 %v5067_v11, 16 }
  0x41   : > { %1273 = vmatpush.bf16.msrb.mxu0 %v3979_v17  ;;  %1217 = vmatmul.bf16.gmra.mxu1 %v4943_v21  ;;  %v508_v17 = vor.u32 %v507_v13, %v503_v12  ;;  %v5018_v19 = vsel %vm610_vm1, %v629_v15, %v630_v16  ;;  %v536_v63 = vrot.slane %v534_v55, 1  ;;  %v438_v12 = vunpack.c.l.b16 %v338_v10  ;;  %v3824_v10 = vld [vmem:[%s6592_s1 + $0x9c] sm:$0xf0] }
  0x42   : > { %v539_v15 = vshrl.u32 %v5029_v25, 16  ;;  %v543_v16 = vrot.slane %v541_v8, 1  ;;  %v4359_v8 = vld [vmem:[%s6592_s1 + $0x94] sm:$0xf] }
  0x43   : > { %v5022_v20 = vsel %vm453_vm0, %v508_v17, %v512_v18  ;;  %v5060_v6 = vsel %vm453_vm0, %v532_v62, %v536_v63  ;;  %v450_v13 = vpack.c.b16 %v438_v12, %v438_v12  ;;  %v563_v18 = vshrl.u32 %v5067_v11, 16  ;;  %v4386_v12 = vld [vmem:[%s6592_s1 + $0x16c] sm:$0xf] }
  0x45   : > { %1274 = vmatpush.bf16.msrb.mxu0 %v3967_v26  ;;  %v436_v26 = vunpack.c.l.b16 %v332_v23  ;;  %v567_v23 = vrot.slane %v565_v14, 1  ;;  %v570_v24 = vshll.u32 %v450_v13, 16  ;;  %v639_v28 = vrot.slane %v450_v13, 1  ;;  %v3932_v14 = vld [vmem:[%s6592_s1 + $0x174] sm:$0xf0] }
  0x46   : > { %v3827_v13 = vor.u32 %v4359_v8, %v3824_v10 }
  0x47   : > { %v448_v27 = vpack.c.b16 %v436_v26, %v436_v26  ;;  %v638_v26 = vrot.slane %v5067_v11, 1  ;;  %v568_v30 = vor.u32 %v567_v23, %v563_v18  ;;  %v341_v18 = vld [vmem:[%s4863_s9 + $0x80] sm:$0x1] }
  0x48   : > { %v439_v23 = vunpack.c.l.b16 %v341_v18 }
  0x49   : > { %1275 = vmatpush.bf16.msrb.mxu0 %v3955_v31  ;;  %1302 = vmatmul.bf16.gmra.mxu2 %v5002_v4  ;;  %v522_v31 = vshll.u32 %v446_v58, 16  ;;  %v633_v34 = vrot.slane %v448_v27, 1  ;;  %v635_v58 = vrot.slane %v5044_v41, 1  ;;  %v546_v17 = vshll.u32 %v448_v27, 16 }
  0x4b   : > { %v524_v36 = vrot.slane %v522_v31, 1  ;;  %v5034_v38 = vsel %vm610_vm1, %v632_v33, %v633_v34  ;;  %v572_v31 = vrot.slane %v570_v24, 1  ;;  %v544_v33 = vor.u32 %v543_v16, %v539_v15 }
  0x4c   : > { %6603 = vst [vmem:[#allocation3_spill] sm:$0xff] %v5034_v38  ;;  %v548_v34 = vrot.slane %v546_v17, 1  ;;  %v3935_v15 = vor.u32 %v4386_v12, %v3932_v14  ;;  %v3800_v14 = vld [vmem:[%s6592_s1 + $0x6c] sm:$0xf0] }
  0x4d   : > { %1276 = vmatpush.bf16.msrb.mxu0 %v3943_v42  ;;  %v5038_v39 = vsel %vm453_vm0, %v520_v35, %v524_v36  ;;  %v335_v42 = vld [vmem:[%s4863_s9 + $0x68] sm:$0x1]  ;;  %v5074_v35 = vsel %vm453_vm0, %v568_v30, %v572_v31  ;;  %v5077_v36 = vsel %vm610_vm1, %v638_v26, %v639_v28  ;;  %v4356_v26 = vld [vmem:[%s6592_s1 + $0x7c] sm:$0xf]  ;;  %v4383_v30 = vld [vmem:[%s6592_s1 + $0x154] sm:$0xf] }
  0x4e   : > { %v437_v43 = vunpack.c.l.b16 %v335_v42  ;;  %6605 = vst [vmem:[#allocation5_spill] sm:$0xff] %v5077_v36  ;;  %v5082_v27 = vsel %vm453_vm0, %v544_v33, %v548_v34  ;;  %v3812_v28 = vld [vmem:[%s6592_s1 + $0x84] sm:$0xf0]  ;;  %v3920_v33 = vld [vmem:[%s6592_s1 + $0x15c] sm:$0xf0]  ;;  %v5141_v34 = vpack.c.b16 %v439_v23, %v439_v23 }
  0x4f   : > { %v3815_v31 = vor.u32 %v4356_v26, %v3812_v28  ;;  %v3908_v23 = vld [vmem:[%s6592_s1 + $0x144] sm:$0xf0] }
  0x50   : > { %1157 = vmatmul.bf16.gmra.mxu0 %v4946_v22  ;;  %v449_v46 = vpack.c.b16 %v437_v43, %v437_v43 }
  0x51   : > { %1222 = vmatmul.bf16.gmra.mxu1 %v4984_v50  ;;  %1399 = vmatpush.bf16.msra.mxu0 %v3935_v15  ;;  %v4380_v15 = vld [vmem:[%s6592_s1 + $0x13c] sm:$0xf] }
  0x52   : > { %v558_v57 = vshll.u32 %v449_v46, 16  ;;  %v636_v59 = vrot.slane %v449_v46, 1  ;;  %v3911_v28 = vor.u32 %v4380_v15, %v3908_v23 }
  0x54   : > { %v560_v61 = vrot.slane %v558_v57, 1  ;;  %v5055_v3 = vsel %vm610_vm1, %v635_v58, %v636_v59  ;;  %v4362_v57 = vld [vmem:[%s6592_s1 + $0xac] sm:$0xf]  ;;  %v3836_v58 = vld [vmem:[%s6592_s1 + $0xb4] sm:$0xf0] }
  0x55   : > { %6604 = vst [vmem:[#allocation4_spill] sm:$0xff] %v5055_v3  ;;  %v3839_v59 = vor.u32 %v4362_v57, %v3836_v58  ;;  %v582_v58 = vshll.u32 %v5141_v34, 16 }
  0x56   : > { %v5052_v0 = vsel %vm453_vm0, %v556_v60, %v560_v61  ;;  %v5107_v60 = vld [vmem:[%s4863_s9 + $0x78] sm:$0xff] }
  0x57   : > { %1252 = vmatmul.bf16.vlgmr.msra.gmra.mxu3 %v5052_v0  ;;  %v584_v8 = vrot.slane %v582_v58, 1  ;;  %v3788_v58 = vld [vmem:[%s6592_s1 + $0x54] sm:$0xf0] }
  0x58   : > { %1334 = vmatpush.bf16.msrb.mxu3 %v3839_v59 }
  0x59   : > { %1307 = vmatmul.bf16.gmra.mxu2 %v5018_v19 }
  0x5c   : > { %1335 = vmatpush.bf16.msrb.mxu3 %v3827_v13  ;;  %v4353_v13 = vld [vmem:[%s6592_s1 + $0x64] sm:$0xf] }
  0x5d   : > { %v3803_v18 = vor.u32 %v4353_v13, %v3800_v14 }
  0x60   : > { %1162 = vmatmul.bf16.gmra.mxu0 %v4987_v51  ;;  %1336 = vmatpush.bf16.msrb.mxu3 %v3815_v31 }
  0x61   : > { %1227 = vmatmul.bf16.gmra.mxu1 %v5006_v5 }
  0x64   : > { %1337 = vmatpush.bf16.msrb.mxu3 %v3803_v18 }
  0x67   : > { %1257 = vmatmul.bf16.gmra.mxu3 %v5074_v35 }
  0x69   : > { %1312 = vmatmul.bf16.gmra.mxu2 %v5034_v38 }
  0x70   : > { %1167 = vmatmul.bf16.gmra.mxu0 %v4966_v32 }
  0x71   : > { %1232 = vmatmul.bf16.gmra.mxu1 %v5022_v20 }
  0x79   : > { %1317 = vmatmul.bf16.gmra.mxu2 %v5055_v3 }
  0x80   : > { %1172 = vmatmul.bf16.gmra.mxu0 %v4996_v56 }
  0x81   : > { %1237 = vmatmul.bf16.gmra.mxu1 %v5038_v39 }
  0x89   : > { %1322 = vmatmul.bf16.gmra.mxu2 %v5077_v36 }
  0x90   : > { %1177 = vmatmul.bf16.gmra.mxu0 %v5013_v9 }
  0x91   : > { %1242 = vmatmul.bf16.gmra.mxu1 %v5060_v6 }
  0xa0   : > { %1182 = vmatmul.bf16.gmra.mxu0 %v5029_v25 }
  0xa1   : > { %1247 = vmatmul.bf16.gmra.mxu1 %v5082_v27 }
  0xad   : > { %v1148_v40 = vpop.f32.mrf.mxu0 }
  0xae   : > { %v1213_v42 = vpop.f32.mrf.mxu1 }
  0xaf   : > { %v5086_v43 = vadd.f32 %v1213_v42, %v1148_v40  ;;  %v577_v40 = vshll.u32 %v5107_v60, 16  ;;  %v3923_v42 = vor.u32 %v4383_v30, %v3920_v33  ;;  %v344_v33 = vld [vmem:[%s4863_s9 + $0x8c] sm:$0x1] }
  0xb0   : > { %1187 = vmatmul.bf16.gmra.mxu0 %v5044_v41 }
  0xb1   : > { %v579_v57 = vrot.slane %v577_v40, 1  ;;  %1400 = vmatpush.bf16.msra.mxu0 %v3923_v42  ;;  %v611_v40 = vrot.slane %v4871_v37, 1  ;;  %v612_v42 = vrot.slane %v4893_v49, 1 }
  0xb5   : > { %v5089_v44 = vpop.f32.mrf.mxu0  ;;  %1401 = vmatpush.bf16.msra.mxu0 %v3911_v28  ;;  %v5195_v28 = vsel %vm610_vm1, %v611_v40, %v612_v42  ;;  %v4347_v40 = vld [vmem:[%s6592_s1 + $0x34] sm:$0xf]  ;;  %v3776_v42 = vld [vmem:[%s6592_s1 + $0x3c] sm:$0xf0] }
  0xb6   : > { %v5091_v45 = vpop.f32.mrf.mxu1 }
  0xbc   : > { %v1298_v24 = vpop.f32.mrf.mxu2 }
  0xbd   : > { %v1153_v46 = vpop.f32.mrf.mxu0 }
  0xbe   : > { %v1218_v48 = vpop.f32.mrf.mxu1 }
  0xbf   : > { %v5093_v52 = vadd.f32 %v1218_v48, %v1153_v46  ;;  %v5145_v46 = vld [vmem:[%s4863_s9 + $0x84] sm:$0xff]  ;;  %v575_v48 = vshrl.u32 %v5107_v60, 16 }
  0xc0   : > { %1192 = vmatmul.bf16.gmra.mxu0 %v5067_v11  ;;  %v589_v49 = vshll.u32 %v5145_v46, 16  ;;  %v587_v14 = vshrl.u32 %v5145_v46, 16 }
  0xc2   : > { %v591_v15 = vrot.slane %v589_v49, 1  ;;  %v3779_v49 = vor.u32 %v4347_v40, %v3776_v42  ;;  %v4344_v42 = vld [vmem:[%s6592_s1 + $0x1c] sm:$0xf] }
  0xc4   : > { %v5168_v26 = vpop.f32.mrf.mxu2 }
  0xc5   : > { %v5096_v53 = vpop.f32.mrf.mxu0  ;;  %6606 = vst [vmem:[#allocation6_spill] sm:$0xff] %v5168_v26 }
  0xc6   : > { %v5098_v55 = vpop.f32.mrf.mxu1 }
  0xcd   : > { %v1158_v61 = vpop.f32.mrf.mxu0 }
  0xce   : > { %v1223_v62 = vpop.f32.mrf.mxu1 }
  0xcf   : > { %v5109_v63 = vadd.f32 %v1223_v62, %v1158_v61  ;;  %v580_v62 = vor.u32 %v579_v57, %v575_v48  ;;  %v440_v48 = vunpack.c.l.b16 %v344_v33  ;;  %v4350_v57 = vld [vmem:[%s6592_s1 + $0x4c] sm:$0xf]  ;;  %v1303_v33 = vpop.f32.mrf.mxu2 }
  0xd0   : > { %1197 = vmatmul.bf16.gmra.mxu0 %v5107_v60 }
  0xd1   : > { %v5153_v12 = vsel %vm453_vm0, %v580_v62, %v584_v8  ;;  %v3896_v62 = vld [vmem:[%s6592_s1 + $0x12c] sm:$0xf0]  ;;  %v5189_v8 = vpack.c.b16 %v440_v48, %v440_v48 }
  0xd2   : > { %1262 = vmatmul.bf16.gmra.mxu3 %v5153_v12 }
  0xd3   : > { %v594_v18 = vshll.u32 %v5189_v8, 16 }
  0xd5   : > { %v5124_v16 = vpop.f32.mrf.mxu0  ;;  %v596_v26 = vrot.slane %v594_v18, 1 }
  0xd6   : > { %v5126_v17 = vpop.f32.mrf.mxu1 }
  0xd7   : > { %v5232_v40 = vpop.f32.mrf.mxu2 }
  0xd8   : > { %6609 = vst [vmem:[#allocation9_spill] sm:$0xff] %v5232_v40 }
  0xdd   : > { %v1163_v59 = vpop.f32.mrf.mxu0 }
  0xde   : > { %v1228_v61 = vpop.f32.mrf.mxu1 }
  0xdf   : > { %v5149_v10 = vadd.f32 %v1228_v61, %v1163_v59  ;;  %v4377_v59 = vld [vmem:[%s6592_s1 + $0x124] sm:$0xf]  ;;  %v3791_v61 = vor.u32 %v4350_v57, %v3788_v58  ;;  %v592_v58 = vor.u32 %v591_v15, %v587_v14 }
  0xe0   : > { %1200 = vmatmul.bf16.gmra.mxu0 %v5145_v46  ;;  %v3899_v13 = vor.u32 %v4377_v59, %v3896_v62  ;;  %v4374_v62 = vld [vmem:[%s6592_s1 + $0x10c] sm:$0xf] }
  0xe1   : > { %1338 = vmatpush.bf16.msrb.mxu3 %v3791_v61  ;;  %v5199_v59 = vsel %vm453_vm0, %v592_v58, %v596_v26  ;;  %v4410_v26 = vld [vmem:[%s6592_s1 + $0x22c] sm:$0xf] }
  0xe2   : > { %1402 = vmatpush.bf16.msra.mxu0 %v3899_v13  ;;  %1265 = vmatmul.bf16.gmra.mxu3 %v5199_v59  ;;  %v4028_v13 = vld [vmem:[%s6592_s1 + $0x234] sm:$0xf0] }
  0xe3   : > { %v4031_v15 = vor.u32 %v4410_v26, %v4028_v13  ;;  %v4371_v13 = vld [vmem:[%s6592_s1 + $0xf4] sm:$0xf] }
  0xe5   : > { %v5170_v30 = vpop.f32.mrf.mxu0  ;;  %1339 = vmatpush.bf16.msrb.mxu3 %v3779_v49  ;;  %1464 = vmatpush.bf16.msrb.mxu1 %v4031_v15  ;;  %v614_v49 = vrot.slane %v4914_v2, 1  ;;  %v4404_v15 = vld [vmem:[%s6592_s1 + $0x1fc] sm:$0xf] }
  0xe6   : > { %v5172_v31 = vpop.f32.mrf.mxu1 }
  0xed   : > { %v1168_v23 = vpop.f32.mrf.mxu0 }
  0xee   : > { %v1233_v57 = vpop.f32.mrf.mxu1 }
  0xef   : > { %v1234_v48 = vadd.f32 %v1233_v57, %v1168_v23  ;;  %v4407_v23 = vld [vmem:[%s6592_s1 + $0x214] sm:$0xf]  ;;  %v4016_v57 = vld [vmem:[%s6592_s1 + $0x21c] sm:$0xf0] }
  0xf0   : > { %1277 = vmatmul.bf16.vlgmr.msrb.gmra.mxu0 %v5195_v28 }
  0xf1   : > { %v5201_v61 = vadd.f32 %v1298_v24, %v1234_v48  ;;  %v3884_v24 = vld [vmem:[%s6592_s1 + $0x114] sm:$0xf0]  ;;  %v4019_v48 = vor.u32 %v4407_v23, %v4016_v57 }
  0xf2   : > { %v3887_v14 = vor.u32 %v4374_v62, %v3884_v24  ;;  %v3764_v62 = vld [vmem:[%s6592_s1 + $0x24] sm:$0xf0]  ;;  %v615_v24 = vrot.slane %v4927_v7, 1 }
  0xf3   : > { %v3767_v26 = vor.u32 %v4344_v42, %v3764_v62  ;;  %1465 = vmatpush.bf16.msrb.mxu1 %v4019_v48  ;;  %v4004_v7 = vld [vmem:[%s6592_s1 + $0x204] sm:$0xf0]  ;;  %v4341_v48 = vld [vmem:[%s6592_s1 + $0x4] sm:$0xf]  ;;  %v3752_v42 = vld [vmem:[%s6592_s1 + $0xc] sm:$0xf0] }
  0xf4   : > { %1403 = vmatpush.bf16.msra.mxu0 %v3887_v14  ;;  %v3872_v14 = vld [vmem:[%s6592_s1 + $0xfc] sm:$0xf0]  ;;  %v4007_v57 = vor.u32 %v4404_v15, %v4004_v7  ;;  %v3755_v62 = vor.u32 %v4341_v48, %v3752_v42  ;;  %v1308_v48 = vpop.f32.mrf.mxu2 }
  0xf5   : > { %v5222_v18 = vpop.f32.mrf.mxu0  ;;  %1340 = vmatpush.bf16.msrb.mxu3 %v3767_v26  ;;  %v3875_v23 = vor.u32 %v4371_v13, %v3872_v14  ;;  %v4401_v26 = vld [vmem:[%s6592_s1 + $0x1e4] sm:$0xf]  ;;  %v3992_v13 = vld [vmem:[%s6592_s1 + $0x1ec] sm:$0xf0] }
  0xf6   : > { %6607 = vst [vmem:[#allocation7_spill] sm:$0xff] %v5222_v18  ;;  %v5230_v58 = vpop.f32.mrf.mxu1  ;;  %v3995_v15 = vor.u32 %v4401_v26, %v3992_v13  ;;  %v3968_v26 = vld [vmem:[%s6592_s1 + $0x1bc] sm:$0xf0] }
  0xf7   : > { %6608 = vst [vmem:[#allocation8_spill] sm:$0xff] %v5230_v58  ;;  %v5261_v58 = vsel %vm610_vm1, %v614_v49, %v615_v24  ;;  %1466 = vmatpush.bf16.msrb.mxu1 %v4007_v57  ;;  %v4368_v49 = vld [vmem:[%s6592_s1 + $0xdc] sm:$0xf]  ;;  %v3860_v24 = vld [vmem:[%s6592_s1 + $0xe4] sm:$0xf0] }
  0xf8   : > { %1404 = vmatpush.bf16.msra.mxu0 %v3875_v23  ;;  %v3863_v57 = vor.u32 %v4368_v49, %v3860_v24  ;;  %v4365_v49 = vld [vmem:[%s6592_s1 + $0xc4] sm:$0xf]  ;;  %v3848_v24 = vld [vmem:[%s6592_s1 + $0xcc] sm:$0xf0] }
  0xf9   : > { %1341 = vmatpush.bf16.msrb.mxu3 %v3755_v62  ;;  %v4395_v62 = vld [vmem:[%s6592_s1 + $0x1b4] sm:$0xf] }
  0xfb   : > { %1467 = vmatpush.bf16.msrb.mxu1 %v3995_v15  ;;  %v617_v15 = vrot.slane %v4946_v22, 1 }
  0xfc   : > { %1342 = vmatmul.bf16.vlgmr.msrb.gmra.mxu3 %v4871_v37  ;;  %1405 = vmatpush.bf16.msra.mxu0 %v3863_v57  ;;  %v3851_v57 = vor.u32 %v4365_v49, %v3848_v24  ;;  %v4389_v24 = vld [vmem:[%s6592_s1 + $0x184] sm:$0xf] }
  0xfd   : > { %v1173_v40 = vpop.f32.mrf.mxu0 }
  0xfe   : > { %v1238_v14 = vpop.f32.mrf.mxu1 }
  0xff   : > { %v1239_v7 = vadd.f32 %v1238_v14, %v1173_v40  ;;  %v4398_v40 = vld [vmem:[%s6592_s1 + $0x1cc] sm:$0xf]  ;;  %v3971_v14 = vor.u32 %v4395_v62, %v3968_v26  ;;  %v5315_v62 = vpop.f32.mrf.mxu2 }
 0x100   : > { %1282 = vmatmul.bf16.gmra.mxu0 %v5261_v58  ;;  %6613 = vst [vmem:[#allocation13_spill] sm:$0xff] %v5315_v62 }
 0x101   : > { %v5270_v23 = vadd.f32 %v1303_v33, %v1239_v7  ;;  %v3980_v33 = vld [vmem:[%s6592_s1 + $0x1d4] sm:$0xf0]  ;;  %v618_v7 = vrot.slane %v4962_v29, 1  ;;  %v4392_v29 = vld [vmem:[%s6592_s1 + $0x19c] sm:$0xf]  ;;  %1406 = vmatpush.bf16.msra.mxu0 %v3851_v57 }
 0x102   : > { %v3983_v42 = vor.u32 %v4398_v40, %v3980_v33  ;;  %v3938_v40 = vld [vmem:[%s6592_s1 + $0x170] sm:$0xf]  ;;  %v4388_v33 = vld [vmem:[%s6592_s1 + $0x178] sm:$0xf0] }
 0x103   : > { %6610 = vst [vmem:[#allocation10_spill] sm:$0xff] %v5270_v23  ;;  %v3939_v26 = vor.u32 %v4388_v33, %v3938_v40  ;;  %v5318_v49 = vsel %vm610_vm1, %v617_v15, %v618_v7  ;;  %v4034_v15 = vld [vmem:[%s6592_s1 + $0x230] sm:$0xf]  ;;  %v4412_v7 = vld [vmem:[%s6592_s1 + $0x238] sm:$0xf0]  ;;  %v620_v33 = vrot.slane %v4987_v51, 1 }
 0x104   : > { %1468 = vmatpush.bf16.msrb.mxu1 %v3983_v42  ;;  %v3956_v42 = vld [vmem:[%s6592_s1 + $0x1a4] sm:$0xf0]  ;;  %v4035_v57 = vor.u32 %v4412_v7, %v4034_v15  ;;  %v1253_v7 = vpop.f32.mrf.mxu3 }
 0x105   : > { %v5285_v37 = vpop.f32.mrf.mxu0  ;;  %1594 = vmatpush.bf16.msra.mxu3 %v3939_v26  ;;  %v3926_v26 = vld [vmem:[%s6592_s1 + $0x158] sm:$0xf] }
 0x106   : > { %6611 = vst [vmem:[#allocation11_spill] sm:$0xff] %v5285_v37  ;;  %v5293_v13 = vpop.f32.mrf.mxu1  ;;  %v3944_v37 = vld [vmem:[%s6592_s1 + $0x18c] sm:$0xf0]  ;;  %1659 = vmatpush.bf16.msrb.mxu0 %v4035_v57  ;;  %v4022_v57 = vld [vmem:[%s6592_s1 + $0x218] sm:$0xf] }
 0x107   : > { %6612 = vst [vmem:[#allocation12_spill] sm:$0xff] %v5293_v13  ;;  %v3947_v18 = vor.u32 %v4389_v24, %v3944_v37  ;;  %v1313_v37 = vpop.f32.mrf.mxu2 }
 0x108   : > { %1469 = vmatpush.bf16.msrb.mxu1 %v3971_v14  ;;  %v3959_v14 = vor.u32 %v4392_v29, %v3956_v42  ;;  %v621_v29 = vrot.slane %v4992_v54, 1 }
 0x10c   : > { %1470 = vmatpush.bf16.msrb.mxu1 %v3959_v14  ;;  %1345 = vmatmul.bf16.gmra.mxu3 %v4914_v2  ;;  %v4385_v14 = vld [vmem:[%s6592_s1 + $0x160] sm:$0xf0] }
 0x10d   : > { %v1178_v13 = vpop.f32.mrf.mxu0  ;;  %v3927_v54 = vor.u32 %v4385_v14, %v3926_v26 }
 0x10e   : > { %v1243_v23 = vpop.f32.mrf.mxu1 }
 0x10f   : > { %v1244_v62 = vadd.f32 %v1243_v23, %v1178_v13  ;;  %v5346_v2 = vpop.f32.mrf.mxu2  ;;  %1595 = vmatpush.bf16.msra.mxu3 %v3927_v54  ;;  %v3914_v54 = vld [vmem:[%s6592_s1 + $0x140] sm:$0xf] }
 0x110   : > { %1287 = vmatmul.bf16.gmra.mxu0 %v5318_v49  ;;  %1471 = vmatpush.bf16.msrb.mxu1 %v3947_v18 }
 0x111   : > { %v5333_v40 = vadd.f32 %v1308_v48, %v1244_v62  ;;  %v5344_v48 = vsel %vm610_vm1, %v620_v33, %v621_v29  ;;  %v4409_v33 = vld [vmem:[%s6592_s1 + $0x220] sm:$0xf0] }
 0x113   : > { %1472 = vmatmul.bf16.vlgmr.msrb.gmra.mxu1 %v5195_v28 }
 0x115   : > { %v5337_v23 = vpop.f32.mrf.mxu0 }
 0x116   : > { %v5339_v13 = vpop.f32.mrf.mxu1 }
 0x117   : > { %v1318_v29 = vpop.f32.mrf.mxu2 }
 0x11c   : > { %1350 = vmatmul.bf16.gmra.mxu3 %v4946_v22 }
 0x11d   : > { %v1183_v42 = vpop.f32.mrf.mxu0 }
 0x11e   : > { %v1248_v18 = vpop.f32.mrf.mxu1 }
 0x11f   : > { %v1249_v62 = vadd.f32 %v1248_v18, %v1183_v42  ;;  %v5373_v26 = vpop.f32.mrf.mxu2 }
 0x120   : > { %1292 = vmatmul.bf16.gmra.mxu0 %v5344_v48  ;;  %6614 = vst [vmem:[#allocation14_spill] sm:$0xff] %v5373_v26  ;;  %v4406_v26 = vld [vmem:[%s6592_s1 + $0x208] sm:$0xf0] }
 0x121   : > { %v5355_v24 = vadd.f32 %v1313_v37, %v1249_v62  ;;  %v4023_v37 = vor.u32 %v4409_v33, %v4022_v57  ;;  %v5370_v62 = vpop.f32.mrf.mxu3 }
 0x123   : > { %1475 = vmatmul.bf16.gmra.mxu1 %v5261_v58  ;;  %1660 = vmatpush.bf16.msrb.mxu0 %v4023_v37 }
 0x125   : > { %v5359_v15 = vpop.f32.mrf.mxu0 }
 0x127   : > { %v1323_v37 = vpop.f32.mrf.mxu2 }
 0x129   : > { %v1258_v33 = vpop.f32.mrf.mxu3 }
 0x12c   : > { %1355 = vmatmul.bf16.gmra.mxu3 %v4987_v51 }
 0x12d   : > { %v1188_v42 = vpop.f32.mrf.mxu0 }
 0x12e   : > { %v1254_v22 = vadd.f32 %v1253_v7, %v1188_v42  ;;  %v4382_v7 = vld [vmem:[%s6592_s1 + $0x148] sm:$0xf0] }
 0x12f   : > { %v3915_v57 = vor.u32 %v4382_v7, %v3914_v54 }
 0x130   : > { %v5367_v18 = vadd.f32 %v1318_v29, %v1254_v22  ;;  %1407 = vmatmul.bf16.vlgmr.msra.gmra.mxu0 %v4911_v1  ;;  %v4010_v22 = vld [vmem:[%s6592_s1 + $0x200] sm:$0xf] }
 0x131   : > { %1596 = vmatpush.bf16.msra.mxu3 %v3915_v57  ;;  %v4011_v54 = vor.u32 %v4406_v26, %v4010_v22  ;;  %v3842_v57 = vld [vmem:[%s6592_s1 + $0xb0] sm:$0xf]  ;;  %v4379_v26 = vld [vmem:[%s6592_s1 + $0x130] sm:$0xf0] }
 0x133   : > { %1480 = vmatmul.bf16.gmra.mxu1 %v5318_v49  ;;  %1661 = vmatpush.bf16.msrb.mxu0 %v4011_v54  ;;  %v3830_v54 = vld [vmem:[%s6592_s1 + $0x98] sm:$0xf] }
 0x135   : > { %v5376_v14 = vpop.f32.mrf.mxu0 }
 0x13c   : > { %1360 = vmatmul.bf16.gmra.mxu3 %v4966_v32  ;;  %v3902_v32 = vld [vmem:[%s6592_s1 + $0x128] sm:$0xf] }
 0x13d   : > { %v1193_v29 = vpop.f32.mrf.mxu0 }
 0x13e   : > { %v1259_v51 = vadd.f32 %v1258_v33, %v1193_v29  ;;  %v4364_v33 = vld [vmem:[%s6592_s1 + $0xb8] sm:$0xf0] }
 0x13f   : > { %v3843_v29 = vor.u32 %v4364_v33, %v3842_v57  ;;  %v4361_v57 = vld [vmem:[%s6592_s1 + $0xa0] sm:$0xf0]  ;;  %v3998_v33 = vld [vmem:[%s6592_s1 + $0x1e8] sm:$0xf] }
 0x140   : > { %v5384_v42 = vadd.f32 %v1323_v37, %v1259_v51  ;;  %1410 = vmatmul.bf16.gmra.mxu0 %v4943_v21  ;;  %v3903_v51 = vor.u32 %v4379_v26, %v3902_v32  ;;  %v5424_v32 = vpop.f32.mrf.mxu3 }
 0x141   : > { %1529 = vmatpush.bf16.msrb.mxu2 %v3843_v29  ;;  %v3831_v29 = vor.u32 %v4361_v57, %v3830_v54  ;;  %v3818_v54 = vld [vmem:[%s6592_s1 + $0x80] sm:$0xf]  ;;  %v4358_v57 = vld [vmem:[%s6592_s1 + $0x88] sm:$0xf0] }
 0x142   : > { %1597 = vmatpush.bf16.msra.mxu3 %v3903_v51 }
 0x143   : > { %1485 = vmatmul.bf16.gmra.mxu1 %v5344_v48 }
 0x145   : > { %v5395_v7 = vpop.f32.mrf.mxu0  ;;  %1530 = vmatpush.bf16.msrb.mxu2 %v3831_v29  ;;  %v3819_v29 = vor.u32 %v4358_v57, %v3818_v54  ;;  %v4400_v54 = vld [vmem:[%s6592_s1 + $0x1d8] sm:$0xf0] }
 0x149   : > { %1531 = vmatpush.bf16.msrb.mxu2 %v3819_v29 }
 0x14c   : > { %1365 = vmatmul.bf16.gmra.mxu3 %v4996_v56  ;;  %v4403_v56 = vld [vmem:[%s6592_s1 + $0x1f0] sm:$0xf0] }
 0x14d   : > { %v1198_v37 = vpop.f32.mrf.mxu0 }
 0x14e   : > { %v3999_v37 = vor.u32 %v4403_v56, %v3998_v33  ;;  %v3890_v33 = vld [vmem:[%s6592_s1 + $0x110] sm:$0xf] }
 0x150   : > { %1415 = vmatmul.bf16.gmra.mxu0 %v4984_v50 }
 0x151   : > { %1662 = vmatpush.bf16.msrb.mxu0 %v3999_v37 }
 0x153   : > { %1490 = vmatmul.bf16.gmra.mxu1 %v4979_v47 }
 0x155   : > { %v1199_v22 = vpop.f32.mrf.mxu0  ;;  %v1263_v51 = vpop.f32.mrf.mxu3 }
 0x15c   : > { %1370 = vmatmul.bf16.gmra.mxu3 %v5013_v9  ;;  %v4376_v9 = vld [vmem:[%s6592_s1 + $0x118] sm:$0xf0] }
 0x15d   : > { %v1201_v26 = vpop.f32.mrf.mxu0  ;;  %v3891_v56 = vor.u32 %v4376_v9, %v3890_v33  ;;  %v1264_v37 = vpop.f32.mrf.mxu3  ;;  %v1216_v33 = vadd.f32 %v5091_v45, %v5089_v44  ;;  %v3878_v45 = vld [vmem:[%s6592_s1 + $0xf8] sm:$0xf] }
 0x15e   : > { %v4355_v37 = vld [vmem:[%s6592_s1 + $0x70] sm:$0xf0] }
 0x15f   : > { %1598 = vmatpush.bf16.msra.mxu3 %v3891_v56  ;;  %v3806_v56 = vld [vmem:[%s6592_s1 + $0x68] sm:$0xf] }
 0x160   : > { %1420 = vmatmul.bf16.gmra.mxu0 %v5006_v5 }
 0x163   : > { %1495 = vmatmul.bf16.gmra.mxu1 %v5002_v4 }
 0x165   : > { %v1202_v22 = vpop.f32.mrf.mxu0 }
 0x166   : > { %v3986_v22 = vld [vmem:[%s6592_s1 + $0x1d0] sm:$0xf] }
 0x167   : > { %v3987_v57 = vor.u32 %v4400_v54, %v3986_v22  ;;  %v4373_v54 = vld [vmem:[%s6592_s1 + $0x100] sm:$0xf0] }
 0x169   : > { %1663 = vmatpush.bf16.msrb.mxu0 %v3987_v57  ;;  %v3879_v57 = vor.u32 %v4373_v54, %v3878_v45 }
 0x16b   : > { %1599 = vmatpush.bf16.msra.mxu3 %v3879_v57 }
 0x16c   : > { %1375 = vmatmul.bf16.gmra.mxu3 %v5029_v25  ;;  %v3807_v25 = vor.u32 %v4355_v37, %v3806_v56  ;;  %v3794_v56 = vld [vmem:[%s6592_s1 + $0x50] sm:$0xf]  ;;  %v4352_v37 = vld [vmem:[%s6592_s1 + $0x58] sm:$0xf0] }
 0x16d   : > { %v1278_v26 = vpop.f32.mrf.mxu0 }
 0x16e   : > { %v5442_v51 = vadd.f32 %v1278_v26, %v5086_v43  ;;  %v1266_v43 = vpop.f32.mrf.mxu3  ;;  %1532 = vmatpush.bf16.msrb.mxu2 %v3807_v25  ;;  %v3795_v25 = vor.u32 %v4352_v37, %v3794_v56  ;;  %v3782_v56 = vld [vmem:[%s6592_s1 + $0x38] sm:$0xf]  ;;  %v3866_v37 = vld [vmem:[%s6592_s1 + $0xe0] sm:$0xf] }
 0x170   : > { %1425 = vmatmul.bf16.gmra.mxu0 %v5022_v20 }
 0x172   : > { %1533 = vmatpush.bf16.msrb.mxu2 %v3795_v25 }
 0x173   : > { %1500 = vmatmul.bf16.gmra.mxu1 %v5018_v19 }
 0x175   : > { %v1280_v29 = vpop.f32.mrf.mxu0 }
 0x176   : > { %v5455_v9 = vadd.f32 %v1280_v29, %v1216_v33  ;;  %v1267_v26 = vpop.f32.mrf.mxu3  ;;  %v1221_v33 = vadd.f32 %v5098_v55, %v5096_v53  ;;  %v4397_v53 = vld [vmem:[%s6592_s1 + $0x1c0] sm:$0xf0] }
 0x177   : > { %v5491_v26 = vpop.f32.mrf.mxu1 }
 0x17c   : > { %1380 = vmatmul.bf16.gmra.mxu3 %v5044_v41  ;;  %v3974_v41 = vld [vmem:[%s6592_s1 + $0x1b8] sm:$0xf] }
 0x17d   : > { %v1283_v22 = vpop.f32.mrf.mxu0  ;;  %v3975_v55 = vor.u32 %v4397_v53, %v3974_v41 }
 0x17e   : > { %v5464_v44 = vadd.f32 %v1283_v22, %v5093_v52 }
 0x17f   : > { %v1343_v52 = vpop.f32.mrf.mxu3  ;;  %1664 = vmatpush.bf16.msrb.mxu0 %v3975_v55 }
 0x180   : > { %1430 = vmatmul.bf16.gmra.mxu0 %v5038_v39 }
 0x183   : > { %1505 = vmatmul.bf16.gmra.mxu1 %v5034_v38  ;;  %v4633_v38 = vld [vmem:[%s4863_s9 + $0xc] sm:$0xff] }
 0x185   : > { %v1285_v43 = vpop.f32.mrf.mxu0 }
 0x186   : > { %v5477_v29 = vadd.f32 %v1285_v43, %v1221_v33  ;;  %v1226_v33 = vadd.f32 %v5126_v17, %v5124_v16  ;;  %v4370_v16 = vld [vmem:[%s6592_s1 + $0xe8] sm:$0xf0] }
 0x187   : > { %v1344_v22 = vpop.f32.mrf.mxu3  ;;  %v3867_v17 = vor.u32 %v4370_v16, %v3866_v37 }
 0x189   : > { %1600 = vmatpush.bf16.msra.mxu3 %v3867_v17  ;;  %v3770_v17 = vld [vmem:[%s6592_s1 + $0x20] sm:$0xf] }
 0x18c   : > { %1385 = vmatmul.bf16.gmra.mxu3 %v5067_v11 }
 0x18d   : > { %v1288_v45 = vpop.f32.mrf.mxu0 }
 0x18e   : > { %v5494_v54 = vadd.f32 %v1288_v45, %v5109_v63  ;;  %v4349_v63 = vld [vmem:[%s6592_s1 + $0x40] sm:$0xf0]  ;;  %v641_v45 = vrot.slane %v5107_v60, 1 }
 0x18f   : > { %v1346_v52 = vpop.f32.mrf.mxu3  ;;  %v3783_v41 = vor.u32 %v4349_v63, %v3782_v56  ;;  %v3962_v56 = vld [vmem:[%s6592_s1 + $0x1a0] sm:$0xf] }
 0x190   : > { %1435 = vmatmul.bf16.gmra.mxu0 %v5060_v6  ;;  %v1473_v57 = vpop.f32.mrf.mxu1 }
 0x191   : > { %1534 = vmatpush.bf16.msrb.mxu2 %v3783_v41  ;;  %v642_v57 = vrot.slane %v5141_v34, 1  ;;  %v1231_v34 = vadd.f32 %v5172_v31, %v5170_v30  ;;  %v644_v30 = vrot.slane %v5145_v46, 1  ;;  %v645_v31 = vrot.slane %v5189_v8, 1 }
 0x193   : > { %1510 = vmatmul.bf16.gmra.mxu1 %v5055_v3  ;;  %v4632_v3 = vld [vmem:[%s4863_s9] sm:$0xff] }
 0x195   : > { %v1290_v43 = vpop.f32.mrf.mxu0 }
 0x196   : > { %v5510_v11 = vadd.f32 %v1290_v43, %v1226_v33  ;;  %v5522_v33 = vsel %vm610_vm1, %v641_v45, %v642_v57 }
 0x197   : > { %v1348_v53 = vpop.f32.mrf.mxu3  ;;  %6615 = vst [vmem:[#allocation15_spill] sm:$0xff] %v5522_v33  ;;  %1327 = vmatmul.bf16.gmra.mxu2 %v5522_v33 }
 0x198   : > { %v1474_v25 = vpop.f32.mrf.mxu1 }
 0x199   : > { %v4346_v25 = vld [vmem:[%s6592_s1 + $0x28] sm:$0xf0] }
 0x19c   : > { %1390 = vmatmul.bf16.gmra.mxu3 %v5107_v60 }
 0x19d   : > { %v1293_v55 = vpop.f32.mrf.mxu0 }
 0x19e   : > { %v5516_v22 = vadd.f32 %v1293_v55, %v5149_v10  ;;  %v4394_v10 = vld [vmem:[%s6592_s1 + $0x1a8] sm:$0xf0]  ;;  %v3771_v55 = vor.u32 %v4346_v25, %v3770_v17 }
 0x19f   : > { %v3963_v63 = vor.u32 %v4394_v10, %v3962_v56  ;;  %v1351_v37 = vpop.f32.mrf.mxu3  ;;  %v5547_v56 = vsel %vm610_vm1, %v644_v30, %v645_v31  ;;  %v4391_v31 = vld [vmem:[%s6592_s1 + $0x190] sm:$0xf0] }
 0x1a0   : > { %1440 = vmatmul.bf16.gmra.mxu0 %v5082_v27  ;;  %v1476_v43 = vpop.f32.mrf.mxu1  ;;  %1535 = vmatpush.bf16.msrb.mxu2 %v3771_v55  ;;  %v4343_v55 = vld [vmem:[%s6592_s1 + $0x10] sm:$0xf0] }
 0x1a1   : > { %1665 = vmatpush.bf16.msrb.mxu0 %v3963_v63  ;;  %v3854_v63 = vld [vmem:[%s6592_s1 + $0xc8] sm:$0xf] }
 0x1a3   : > { %1515 = vmatmul.bf16.gmra.mxu1 %v5077_v36 }
 0x1a5   : > { %v1295_v41 = vpop.f32.mrf.mxu0 }
 0x1a6   : > { %v5535_v16 = vadd.f32 %v1295_v41, %v1231_v34  ;;  %v4367_v34 = vld [vmem:[%s6592_s1 + $0xd0] sm:$0xf0] }
 0x1a7   : > { %v1353_v45 = vpop.f32.mrf.mxu3  ;;  %1330 = vmatmul.bf16.gmra.mxu2 %v5547_v56  ;;  %v3855_v41 = vor.u32 %v4367_v34, %v3854_v63 }
 0x1a8   : > { %v1478_v60 = vpop.f32.mrf.mxu1 }
 0x1a9   : > { %1601 = vmatpush.bf16.msra.mxu3 %v3855_v41 }
 0x1ac   : > { %1395 = vmatmul.bf16.gmra.mxu3 %v5145_v46  ;;  %v3758_v46 = vld [vmem:[%s6592_s1 + $0x8] sm:$0xf] }
 0x1ad   : > { %v1408_v57 = vpop.f32.mrf.mxu0  ;;  %v3759_v30 = vor.u32 %v4343_v55, %v3758_v46 }
 0x1ae   : > { %v3950_v57 = vld [vmem:[%s6592_s1 + $0x188] sm:$0xf] }
 0x1af   : > { %v1356_v8 = vpop.f32.mrf.mxu3  ;;  %v3951_v63 = vor.u32 %v4391_v31, %v3950_v57  ;;  %1536 = vmatpush.bf16.msrb.mxu2 %v3759_v30 }
 0x1b0   : > { %1445 = vmatmul.bf16.gmra.mxu0 %v5052_v0  ;;  %v1481_v10 = vpop.f32.mrf.mxu1 }
 0x1b1   : > { %1666 = vmatpush.bf16.msrb.mxu0 %v3951_v63 }
 0x1b3   : > { %1520 = vmatmul.bf16.gmra.mxu1 %v5522_v33 }
 0x1b5   : > { %v1409_v17 = vpop.f32.mrf.mxu0 }
 0x1b7   : > { %v1358_v34 = vpop.f32.mrf.mxu3  ;;  %1537 = vmatmul.bf16.vlgmr.msrb.gmra.mxu2 %v4632_v3 }
 0x1b8   : > { %v1483_v25 = vpop.f32.mrf.mxu1 }
 0x1bc   : > { %1602 = vmatmul.bf16.vlgmr.msra.gmra.mxu3 %v4911_v1 }
 0x1bd   : > { %v1411_v41 = vpop.f32.mrf.mxu0 }
 0x1be   : > { %v1412_v17 = vadd.f32 %v1411_v41, %v1346_v52 }
 0x1bf   : > { %v1361_v55 = vpop.f32.mrf.mxu3 }
 0x1c0   : > { %v1477_v33 = vadd.f32 %v1476_v43, %v1412_v17  ;;  %1450 = vmatmul.bf16.gmra.mxu0 %v5074_v35  ;;  %v1486_v36 = vpop.f32.mrf.mxu1 }
 0x1c2   : > { %v5574_v46 = vadd.f32 %v1477_v33, %v5442_v51 }
 0x1c3   : > { %1525 = vmatmul.bf16.gmra.mxu1 %v5547_v56 }
 0x1c5   : > { %v1413_v57 = vpop.f32.mrf.mxu0 }
 0x1c6   : > { %v1414_v31 = vadd.f32 %v1413_v57, %v1348_v53 }
 0x1c7   : > { %v1363_v63 = vpop.f32.mrf.mxu3  ;;  %1540 = vmatmul.bf16.gmra.mxu2 %v4633_v38 }
 0x1c8   : > { %v1479_v30 = vadd.f32 %v1478_v60, %v1414_v31  ;;  %v1488_v52 = vpop.f32.mrf.mxu1 }
 0x1ca   : > { %v5578_v43 = vadd.f32 %v1479_v30, %v5455_v9 }
 0x1cc   : > { %1605 = vmatmul.bf16.gmra.mxu3 %v4943_v21 }
 0x1cd   : > { %v1416_v41 = vpop.f32.mrf.mxu0 }
 0x1ce   : > { %v1417_v17 = vadd.f32 %v1416_v41, %v1351_v37 }
 0x1cf   : > { %v1366_v53 = vpop.f32.mrf.mxu3 }
 0x1d0   : > { %v1482_v3 = vadd.f32 %v1481_v10, %v1417_v17  ;;  %1455 = vmatmul.bf16.gmra.mxu0 %v5153_v12  ;;  %v1491_v1 = vpop.f32.mrf.mxu1  ;;  %v4634_v17 = vld [vmem:[%s4863_s9 + $0x18] sm:$0xff] }
 0x1d2   : > { %v5584_v51 = vadd.f32 %v1482_v3, %v5464_v44 }
 0x1d5   : > { %v1418_v33 = vpop.f32.mrf.mxu0 }
 0x1d6   : > { %v1419_v60 = vadd.f32 %v1418_v33, %v1353_v45 }
 0x1d7   : > { %v1368_v37 = vpop.f32.mrf.mxu3  ;;  %1543 = vmatmul.bf16.gmra.mxu2 %v4634_v17 }
 0x1d8   : > { %v1484_v9 = vadd.f32 %v1483_v25, %v1419_v60  ;;  %v1493_v57 = vpop.f32.mrf.mxu1 }
 0x1da   : > { %v5587_v31 = vadd.f32 %v1484_v9, %v5477_v29 }
 0x1dc   : > { %1608 = vmatmul.bf16.gmra.mxu3 %v4984_v50 }
 0x1dd   : > { %v1421_v10 = vpop.f32.mrf.mxu0 }
 0x1de   : > { %v1422_v30 = vadd.f32 %v1421_v10, %v1356_v8 }
 0x1df   : > { %v1371_v44 = vpop.f32.mrf.mxu3 }
 0x1e0   : > { %v1487_v41 = vadd.f32 %v1486_v36, %v1422_v30  ;;  %1460 = vmatmul.bf16.gmra.mxu0 %v5199_v59  ;;  %v1496_v38 = vpop.f32.mrf.mxu1  ;;  %v4635_v30 = vld [vmem:[%s4863_s9 + $0x24] sm:$0xff] }
 0x1e2   : > { %v5593_v21 = vadd.f32 %v1487_v41, %v5494_v54 }
 0x1e5   : > { %v1423_v45 = vpop.f32.mrf.mxu0 }
 0x1e6   : > { %v1424_v25 = vadd.f32 %v1423_v45, %v1358_v34 }
 0x1e7   : > { %v1373_v36 = vpop.f32.mrf.mxu3  ;;  %1548 = vmatmul.bf16.gmra.mxu2 %v4635_v30 }
 0x1e8   : > { %v1489_v29 = vadd.f32 %v1488_v52, %v1424_v25  ;;  %v1498_v3 = vpop.f32.mrf.mxu1 }
 0x1ea   : > { %v5596_v33 = vadd.f32 %v1489_v29, %v5510_v11  ;;  %v4636_v29 = vld [vmem:[%s4863_s9 + $0x30] sm:$0xff] }
 0x1ec   : > { %1613 = vmatmul.bf16.gmra.mxu3 %v5006_v5 }
 0x1ed   : > { %v1426_v8 = vpop.f32.mrf.mxu0 }
 0x1ee   : > { %v1427_v60 = vadd.f32 %v1426_v8, %v1361_v55 }
 0x1ef   : > { %v1376_v54 = vpop.f32.mrf.mxu3 }
 0x1f0   : > { %v1492_v9 = vadd.f32 %v1491_v1, %v1427_v60  ;;  %1667 = vmatmul.bf16.vlgmr.msrb.gmra.mxu0 %v5195_v28  ;;  %v1501_v10 = vpop.f32.mrf.mxu1 }
 0x1f2   : > { %v5602_v50 = vadd.f32 %v1492_v9, %v5516_v22  ;;  %v6616_v22 = vld [vmem:[#allocation7_spill] sm:$0xff]  ;;  %v6618_v9 = vld [vmem:[#allocation6_spill] sm:$0xff] }
 0x1f5   : > { %v1428_v34 = vpop.f32.mrf.mxu0 }
 0x1f6   : > { %v1429_v52 = vadd.f32 %v1428_v34, %v1363_v63  ;;  %v6617_v63 = vld [vmem:[#allocation8_spill] sm:$0xff] }
 0x1f7   : > { %v1378_v55 = vpop.f32.mrf.mxu3  ;;  %1553 = vmatmul.bf16.gmra.mxu2 %v4636_v29  ;;  %v6621_v29 = vld [vmem:[#allocation12_spill] sm:$0xff] }
 0x1f8   : > { %v1494_v11 = vadd.f32 %v1493_v57, %v1429_v52  ;;  %v1503_v41 = vpop.f32.mrf.mxu1  ;;  %v1236_v57 = vadd.f32 %v6617_v63, %v6616_v22 }
 0x1fa   : > { %v5605_v17 = vadd.f32 %v1494_v11, %v5535_v16 }
 0x1fc   : > { %1618 = vmatmul.bf16.gmra.mxu3 %v5022_v20 }
 0x1fd   : > { %v1431_v1 = vpop.f32.mrf.mxu0 }
 0x1fe   : > { %v1432_v28 = vadd.f32 %v1431_v1, %v1366_v53  ;;  %v1301_v53 = vadd.f32 %v6618_v9, %v1236_v57  ;;  %v4637_v1 = vld [vmem:[%s4863_s9 + $0x3c] sm:$0xff]  ;;  %v5629_v9 = vpop.f32.mrf.mxu2 }
 0x1ff   : > { %v1381_v16 = vpop.f32.mrf.mxu3 }
 0x200   : > { %v1497_v45 = vadd.f32 %v1496_v38, %v1432_v28  ;;  %1670 = vmatmul.bf16.gmra.mxu0 %v5261_v58  ;;  %v1506_v25 = vpop.f32.mrf.mxu1  ;;  %v6619_v28 = vld [vmem:[#allocation10_spill] sm:$0xff] }
 0x202   : > { %v5611_v5 = vadd.f32 %v1497_v45, %v5201_v61 }
 0x205   : > { %v1433_v8 = vpop.f32.mrf.mxu0 }
 0x206   : > { %v1434_v60 = vadd.f32 %v1433_v8, %v1368_v37  ;;  %v6620_v37 = vld [vmem:[#allocation11_spill] sm:$0xff]  ;;  %v6622_v8 = vld [vmem:[#allocation9_spill] sm:$0xff] }
 0x207   : > { %v1383_v34 = vpop.f32.mrf.mxu3  ;;  %1558 = vmatmul.bf16.gmra.mxu2 %v4637_v1 }
 0x208   : > { %v1499_v38 = vadd.f32 %v1498_v3, %v1434_v60  ;;  %v1508_v30 = vpop.f32.mrf.mxu1  ;;  %v1241_v3 = vadd.f32 %v6621_v29, %v6620_v37 }
 0x20a   : > { %v5616_v58 = vadd.f32 %v1499_v38, %v1301_v53 }
 0x20c   : > { %1623 = vmatmul.bf16.gmra.mxu3 %v5038_v39 }
 0x20d   : > { %v1436_v52 = vpop.f32.mrf.mxu0 }
 0x20e   : > { %v1437_v11 = vadd.f32 %v1436_v52, %v1371_v44  ;;  %v1306_v44 = vadd.f32 %v6622_v8, %v1241_v3 }
 0x20f   : > { %v1386_v22 = vpop.f32.mrf.mxu3 }
 0x210   : > { %v1502_v20 = vadd.f32 %v1501_v10, %v1437_v11  ;;  %1673 = vmatmul.bf16.gmra.mxu0 %v5318_v49  ;;  %v1511_v61 = vpop.f32.mrf.mxu1 }
 0x212   : > { %v5622_v45 = vadd.f32 %v1502_v20, %v6619_v28  ;;  %v4638_v20 = vld [vmem:[%s4863_s9 + $0x48] sm:$0xff] }
 0x215   : > { %v1438_v63 = vpop.f32.mrf.mxu0 }
 0x216   : > { %v1439_v57 = vadd.f32 %v1438_v63, %v1373_v36 }
 0x217   : > { %v1388_v53 = vpop.f32.mrf.mxu3  ;;  %1563 = vmatmul.bf16.gmra.mxu2 %v4638_v20 }
 0x218   : > { %v1504_v10 = vadd.f32 %v1503_v41, %v1439_v57  ;;  %v1513_v60 = vpop.f32.mrf.mxu1  ;;  %v1246_v41 = vadd.f32 %v5339_v13, %v5337_v23  ;;  %v4639_v23 = vld [vmem:[%s4863_s9 + $0x54] sm:$0xff] }
 0x21a   : > { %v5627_v49 = vadd.f32 %v1504_v10, %v1306_v44  ;;  %v1328_v1 = vpop.f32.mrf.mxu2 }
 0x21c   : > { %1628 = vmatmul.bf16.gmra.mxu3 %v5060_v6 }
 0x21d   : > { %v1441_v39 = vpop.f32.mrf.mxu0 }
 0x21e   : > { %v1442_v38 = vadd.f32 %v1441_v39, %v1376_v54  ;;  %v6623_v54 = vld [vmem:[#allocation13_spill] sm:$0xff] }
 0x21f   : > { %v1391_v28 = vpop.f32.mrf.mxu3 }
 0x220   : > { %v1507_v52 = vadd.f32 %v1506_v25, %v1442_v38  ;;  %1678 = vmatmul.bf16.gmra.mxu0 %v5344_v48  ;;  %v1516_v11 = vpop.f32.mrf.mxu1  ;;  %v1311_v25 = vadd.f32 %v6623_v54, %v1246_v41 }
 0x222   : > { %v5635_v36 = vadd.f32 %v1507_v52, %v5333_v40  ;;  %v1329_v57 = vpop.f32.mrf.mxu2 }
 0x225   : > { %v1443_v37 = vpop.f32.mrf.mxu0 }
 0x226   : > { %v1444_v29 = vadd.f32 %v1443_v37, %v1378_v55  ;;  %v1251_v55 = vadd.f32 %v5491_v26, %v5359_v15 }
 0x227   : > { %v1393_v8 = vpop.f32.mrf.mxu3  ;;  %1568 = vmatmul.bf16.gmra.mxu2 %v4639_v23  ;;  %v4641_v23 = vld [vmem:[%s4863_s9 + $0x6c] sm:$0xff] }
 0x228   : > { %v1509_v3 = vadd.f32 %v1508_v30, %v1444_v29  ;;  %v1518_v48 = vpop.f32.mrf.mxu1  ;;  %v4640_v29 = vld [vmem:[%s4863_s9 + $0x60] sm:$0xff] }
 0x22a   : > { %v5640_v63 = vadd.f32 %v1509_v3, %v1311_v25  ;;  %v1331_v30 = vpop.f32.mrf.mxu2 }
 0x22c   : > { %1633 = vmatmul.bf16.gmra.mxu3 %v5082_v27 }
 0x22d   : > { %v1446_v6 = vpop.f32.mrf.mxu0 }
 0x22e   : > { %v1447_v44 = vadd.f32 %v1446_v6, %v1381_v16  ;;  %v1316_v16 = vadd.f32 %v5346_v2, %v1251_v55  ;;  %v1256_v2 = vadd.f32 %v5370_v62, %v5376_v14  ;;  %v1261_v14 = vadd.f32 %v5424_v32, %v5395_v7 }
 0x22f   : > { %v1396_v39 = vpop.f32.mrf.mxu3 }
 0x230   : > { %v1512_v40 = vadd.f32 %v1511_v61, %v1447_v44  ;;  %1683 = vmatmul.bf16.gmra.mxu0 %v4979_v47  ;;  %v1521_v10 = vpop.f32.mrf.mxu1 }
 0x232   : > { %v5646_v13 = vadd.f32 %v1512_v40, %v5355_v24  ;;  %v1332_v41 = vpop.f32.mrf.mxu2 }
 0x235   : > { %v1448_v38 = vpop.f32.mrf.mxu0 }
 0x236   : > { %v1449_v52 = vadd.f32 %v1448_v38, %v1383_v34 }
 0x237   : > { %v1397_v1 = vpop.f32.mrf.mxu3  ;;  %1573 = vmatmul.bf16.gmra.mxu2 %v4640_v29  ;;  %v6627_v29 = vld [vmem:[#allocation5_spill] sm:$0xff] }
 0x238   : > { %v1514_v61 = vadd.f32 %v1513_v60, %v1449_v52  ;;  %v1523_v47 = vpop.f32.mrf.mxu1 }
 0x23a   : > { %v5651_v20 = vadd.f32 %v1514_v61, %v1316_v16  ;;  %v1538_v34 = vpop.f32.mrf.mxu2 }
 0x23c   : > { %1638 = vmatmul.bf16.gmra.mxu3 %v5052_v0 }
 0x23d   : > { %v1451_v27 = vpop.f32.mrf.mxu0 }
 0x23e   : > { %v1452_v37 = vadd.f32 %v1451_v27, %v1386_v22  ;;  %v6624_v22 = vld [vmem:[#allocation14_spill] sm:$0xff] }
 0x23f   : > { %v1603_v60 = vpop.f32.mrf.mxu3 }
 0x240   : > { %v1517_v24 = vadd.f32 %v1516_v11, %v1452_v37  ;;  %1688 = vmatmul.bf16.gmra.mxu0 %v5002_v4  ;;  %v1526_v15 = vpop.f32.mrf.mxu1  ;;  %v1321_v11 = vadd.f32 %v6624_v22, %v1256_v2 }
 0x242   : > { %v5657_v26 = vadd.f32 %v1517_v24, %v5367_v18  ;;  %v1539_v6 = vpop.f32.mrf.mxu2 }
 0x243   : > { %v5693_v6 = vld [vmem:[%s6594_s3] ss:$0 sm:$0xff] }
 0x245   : > { %v1453_v54 = vpop.f32.mrf.mxu0 }
 0x246   : > { %v1454_v25 = vadd.f32 %v1453_v54, %v1388_v53 }
 0x247   : > { %v1604_v0 = vpop.f32.mrf.mxu3  ;;  %1578 = vmatmul.bf16.gmra.mxu2 %v4641_v23 }
 0x248   : > { %v1519_v3 = vadd.f32 %v1518_v48, %v1454_v25  ;;  %v1527_v4 = vpop.f32.mrf.mxu1 }
 0x24a   : > { %v5662_v57 = vadd.f32 %v1519_v3, %v1321_v11  ;;  %v1541_v53 = vpop.f32.mrf.mxu2  ;;  %v5685_v11 = vld [vmem:[%s6593_s2] ss:$0 sm:$0xff]  ;;  %v6628_v3 = vld [vmem:[#allocation15_spill] sm:$0xff] }
 0x24c   : > { %1643 = vmatmul.bf16.gmra.mxu3 %v5074_v35  ;;  %v6625_v35 = vld [vmem:[#allocation3_spill] sm:$0xff] }
 0x24d   : > { %v1456_v44 = vpop.f32.mrf.mxu0 }
 0x24e   : > { %v1457_v40 = vadd.f32 %v1456_v44, %v1391_v28  ;;  %v1326_v28 = vadd.f32 %v5629_v9, %v1261_v14  ;;  %v6626_v9 = vld [vmem:[#allocation4_spill] sm:$0xff] }
 0x24f   : > { %v1606_v48 = vpop.f32.mrf.mxu3 }
 0x250   : > { %v1522_v18 = vadd.f32 %v1521_v10, %v1457_v40  ;;  %1693 = vmatmul.bf16.gmra.mxu0 %v5018_v19 }
 0x252   : > { %v5668_v62 = vadd.f32 %v1522_v18, %v5384_v42  ;;  %v1542_v39 = vpop.f32.mrf.mxu2  ;;  %v4642_v42 = vld [vmem:[%s4863_s9 + $0x78] sm:$0xff] }
 0x255   : > { %v1458_v55 = vpop.f32.mrf.mxu0 }
 0x256   : > { %v1459_v30 = vadd.f32 %v1458_v55, %v1393_v8 }
 0x257   : > { %v1607_v38 = vpop.f32.mrf.mxu3  ;;  %1583 = vmatmul.bf16.gmra.mxu2 %v4642_v42 }
 0x258   : > { %v1524_v10 = vadd.f32 %v1523_v47, %v1459_v30  ;;  %v4643_v47 = vld [vmem:[%s4863_s9 + $0x84] sm:$0xff] }
 0x25a   : > { %v5673_v19 = vadd.f32 %v1524_v10, %v1326_v28  ;;  %v1544_v7 = vpop.f32.mrf.mxu2 }
 0x25c   : > { %1648 = vmatmul.bf16.gmra.mxu3 %v5153_v12 }
 0x25d   : > { %v1461_v52 = vpop.f32.mrf.mxu0 }
 0x25f   : > { %v1609_v32 = vpop.f32.mrf.mxu3 }
 0x260   : > { %1698 = vmatmul.bf16.gmra.mxu0 %v6625_v35  ;;  %v1610_v34 = vadd.f32 %v1609_v32, %v1544_v7 }
 0x262   : > { %v1546_v61 = vpop.f32.mrf.mxu2 }
 0x265   : > { %v1462_v16 = vpop.f32.mrf.mxu0 }
 0x267   : > { %v1611_v41 = vpop.f32.mrf.mxu3  ;;  %1588 = vmatmul.bf16.gmra.mxu2 %v4643_v47 }
 0x268   : > { %v1612_v0 = vadd.f32 %v1611_v41, %v1546_v61 }
 0x26a   : > { %v1549_v27 = vpop.f32.mrf.mxu2 }
 0x26c   : > { %1653 = vmatmul.bf16.gmra.mxu3 %v5199_v59 }
 0x26d   : > { %v1668_v8 = vpop.f32.mrf.mxu0 }
 0x26f   : > { %v1614_v37 = vpop.f32.mrf.mxu3 }
 0x270   : > { %1703 = vmatmul.bf16.gmra.mxu0 %v6626_v9  ;;  %v1615_v48 = vadd.f32 %v1614_v37, %v1549_v27 }
 0x272   : > { %v1551_v15 = vpop.f32.mrf.mxu2 }
 0x275   : > { %v1669_v1 = vpop.f32.mrf.mxu0 }
 0x277   : > { %v1616_v12 = vpop.f32.mrf.mxu3 }
 0x278   : > { %v1617_v8 = vadd.f32 %v1616_v12, %v1551_v15 }
 0x27a   : > { %v1554_v60 = vpop.f32.mrf.mxu2 }
 0x27d   : > { %v1671_v24 = vpop.f32.mrf.mxu0 }
 0x27f   : > { %v1619_v54 = vpop.f32.mrf.mxu3 }
 0x280   : > { %1708 = vmatmul.bf16.gmra.mxu0 %v6627_v29  ;;  %v1620_v29 = vadd.f32 %v1619_v54, %v1554_v60 }
 0x282   : > { %v5695_v44 = vpop.f32.mrf.mxu2 }
 0x285   : > { %v1672_v2 = vpop.f32.mrf.mxu0 }
 0x287   : > { %v1621_v18 = vpop.f32.mrf.mxu3 }
 0x28a   : > { %v1559_v52 = vpop.f32.mrf.mxu2 }
 0x28d   : > { %v1674_v25 = vpop.f32.mrf.mxu0 }
 0x28e   : > { %v1675_v22 = vadd.f32 %v1674_v25, %v1610_v34 }
 0x28f   : > { %v1624_v35 = vpop.f32.mrf.mxu3 }
 0x290   : > { %v1744_v59 = vadd.f32 %v5574_v46, %v1675_v22  ;;  %1713 = vmatmul.bf16.gmra.mxu0 %v6628_v3 }
 0x292   : > { %v1768_v4 = vmul.f32 %v5685_v11, %v1744_v59  ;;  %v5710_v24 = vpop.f32.mrf.mxu2 }
 0x294   : > { %v1792_v23 = vadd.f32 %v5693_v6, %v1768_v4 }
 0x295   : > { %v1676_v40 = vpop.f32.mrf.mxu0 }
 0x296   : > { %v1677_v14 = vadd.f32 %v1676_v40, %v1612_v0  ;;  %v1812_v46 = vmax.f32 %v1792_v23, 0.0 }
 0x297   : > { %v5712_v2 = vpop.f32.mrf.mxu3 }
 0x298   : > { %v1745_v53 = vadd.f32 %v5578_v43, %v1677_v14  ;;  %v1832_v10 = vpack.c.bf16 %v1812_v46, %v1812_v46 }
 0x29a   : > { %v1769_v55 = vmul.f32 %v5685_v11, %v1745_v53  ;;  %v1872_v32 = vunpack.c.l.b16 %v1832_v10  ;;  %v1564_v10 = vpop.f32.mrf.mxu2 }
 0x29c   : > { %v1793_v30 = vadd.f32 %v5693_v6, %v1769_v55 }
 0x29d   : > { %v1679_v28 = vpop.f32.mrf.mxu0 }
 0x29e   : > { %v1813_v39 = vmax.f32 %v1793_v30, 0.0  ;;  %v1680_v38 = vadd.f32 %v1679_v28, %v1615_v48 }
 0x2a0   : > { %v1833_v42 = vpack.c.bf16 %v1813_v39, %v1813_v39  ;;  %v1746_v7 = vadd.f32 %v5584_v51, %v1680_v38  ;;  %1718 = vmatmul.bf16.gmra.mxu0 %v5547_v56  ;;  %v1629_v39 = vpop.f32.mrf.mxu3 }
 0x2a2   : > { %v1873_v16 = vunpack.c.l.b16 %v1833_v42  ;;  %v1770_v43 = vmul.f32 %v5685_v11, %v1746_v7  ;;  %v1622_v42 = vadd.f32 %v1621_v18, %v5695_v44 }
 0x2a4   : > { %v1892_v61 = vpack.c.b16 %v1873_v16, %v1872_v32  ;;  %v1794_v47 = vadd.f32 %v5693_v6, %v1770_v43 }
 0x2a5   : > { %v1681_v41 = vpop.f32.mrf.mxu0 }
 0x2a6   : > { %v1903_v9 = vshrl.u32 %v1892_v61, 16  ;;  %v1682_v1 = vadd.f32 %v1681_v41, %v1617_v8  ;;  %v1906_v37 = vshll.u32 %v1892_v61, 16  ;;  %v1814_v12 = vmax.f32 %v1794_v47, 0.0 }
 0x2a7   : > { %v1625_v41 = vadd.f32 %v1624_v35, %v1559_v52 }
 0x2a8   : > { %v1905_v51 = vrot.slane %v1903_v9, 7  ;;  %v1747_v56 = vadd.f32 %v5587_v31, %v1682_v1  ;;  %v1834_v60 = vpack.c.bf16 %v1814_v12, %v1814_v12 }
 0x2aa   : > { %v1908_v34 = vor.u32 %v1906_v37, %v1905_v51  ;;  %v2005_v15 = vsel %vm5705_vm4, %v1905_v51, 0  ;;  %v1771_v25 = vmul.f32 %v5685_v11, %v1747_v56  ;;  %v1874_v55 = vunpack.c.l.b16 %v1834_v60  ;;  %v1566_v56 = vpop.f32.mrf.mxu2 }
 0x2ab   : > { %v2037_v22 = vunpack.c.l.b16 %v2005_v15 }
 0x2ac   : > { %v1995_v59 = vsel %vm5705_vm4, 0, %v1908_v34  ;;  %v1795_v3 = vadd.f32 %v5693_v6, %v1771_v25 }
 0x2ad   : > { %v2035_v4 = vunpack.c.l.b16 %v1995_v59  ;;  %v2036_v31 = vunpack.c.h.b16 %v1995_v59  ;;  %v2067_v0 = vpack.c.b16 %v2037_v22, %v2037_v22  ;;  %v1684_v40 = vpop.f32.mrf.mxu0 }
 0x2ae   : > { %v1815_v54 = vmax.f32 %v1795_v3, 0.0  ;;  %v1685_v23 = vadd.f32 %v1684_v40, %v1620_v29 }
 0x2af   : > { %v2065_v14 = vpack.c.b16 %v2035_v4, %v2035_v4  ;;  %v2066_v53 = vpack.c.b16 %v2036_v31, %v2036_v31  ;;  %2127 = vst [vmem:[#allocation2 + $0x8] sm:$0x1] %v2067_v0 }
 0x2b0   : > { %v1835_v46 = vpack.c.bf16 %v1815_v54, %v1815_v54  ;;  %v1748_v48 = vadd.f32 %v5593_v21, %v1685_v23  ;;  %v1627_v54 = vadd.f32 %v5712_v2, %v5710_v24 }
 0x2b1   : > { %2125 = vst [vmem:[#allocation2] sm:$0xf] %v2065_v14 }
 0x2b2   : > { %2126 = vst [vmem:[#allocation2 + $0x4] sm:$0xf] %v2066_v53  ;;  %v1875_v30 = vunpack.c.l.b16 %v1835_v46  ;;  %v1772_v28 = vmul.f32 %v5685_v11, %v1748_v48  ;;  %v1569_v48 = vpop.f32.mrf.mxu2 }
 0x2b4   : > { %v1893_v38 = vpack.c.b16 %v1875_v30, %v1874_v55  ;;  %v1796_v16 = vadd.f32 %v5693_v6, %v1772_v28 }
 0x2b5   : > { %v1686_v7 = vpop.f32.mrf.mxu0 }
 0x2b6   : > { %v1910_v32 = vshrl.u32 %v1893_v38, 16  ;;  %v1687_v43 = vadd.f32 %v1686_v7, %v1622_v42  ;;  %v1913_v8 = vshll.u32 %v1893_v38, 16  ;;  %v1816_v1 = vmax.f32 %v1796_v16, 0.0 }
 0x2b7   : > { %v1630_v38 = vadd.f32 %v1629_v39, %v1564_v10 }
 0x2b8   : > { %v1912_v61 = vrot.slane %v1910_v32, 7  ;;  %v1749_v21 = vadd.f32 %v5596_v33, %v1687_v43  ;;  %v1631_v33 = vpop.f32.mrf.mxu3  ;;  %v1836_v52 = vpack.c.bf16 %v1816_v1, %v1816_v1 }
 0x2ba   : > { %v1915_v9 = vor.u32 %v1913_v8, %v1912_v61  ;;  %v2006_v47 = vsel %vm5705_vm4, %v1912_v61, 0  ;;  %v1773_v51 = vmul.f32 %v5685_v11, %v1749_v21  ;;  %v1876_v31 = vunpack.c.l.b16 %v1836_v52 }
 0x2bb   : > { %v2040_v37 = vunpack.c.l.b16 %v2006_v47 }
 0x2bc   : > { %v1996_v44 = vsel %vm5705_vm4, 0, %v1915_v9  ;;  %v1797_v18 = vadd.f32 %v5693_v6, %v1773_v51 }
 0x2bd   : > { %v2038_v29 = vunpack.c.l.b16 %v1996_v44  ;;  %v2039_v34 = vunpack.c.h.b16 %v1996_v44  ;;  %v2070_v15 = vpack.c.b16 %v2040_v37, %v2040_v37  ;;  %v1689_v12 = vpop.f32.mrf.mxu0  ;;  %v1571_v37 = vpop.f32.mrf.mxu2 }
 0x2be   : > { %v1817_v35 = vmax.f32 %v1797_v18, 0.0  ;;  %v1690_v25 = vadd.f32 %v1689_v12, %v1625_v41  ;;  %v1632_v12 = vadd.f32 %v1631_v33, %v1566_v56 }
 0x2bf   : > { %v2068_v22 = vpack.c.b16 %v2038_v29, %v2038_v29  ;;  %v2069_v59 = vpack.c.b16 %v2039_v34, %v2039_v34  ;;  %2130 = vst [vmem:[#allocation2 + $0x14] sm:$0x1] %v2070_v15 }
 0x2c0   : > { %v1837_v3 = vpack.c.bf16 %v1817_v35, %v1817_v35  ;;  %v1750_v4 = vadd.f32 %v5602_v50, %v1690_v25  ;;  %v1634_v55 = vpop.f32.mrf.mxu3 }
 0x2c1   : > { %2128 = vst [vmem:[#allocation2 + $0xc] sm:$0xf] %v2068_v22 }
 0x2c2   : > { %2129 = vst [vmem:[#allocation2 + $0x10] sm:$0xf] %v2069_v59  ;;  %v1877_v0 = vunpack.c.l.b16 %v1837_v3  ;;  %v1774_v40 = vmul.f32 %v5685_v11, %v1750_v4 }
 0x2c4   : > { %v1894_v60 = vpack.c.b16 %v1877_v0, %v1876_v31  ;;  %v1798_v53 = vadd.f32 %v5693_v6, %v1774_v40 }
 0x2c5   : > { %v1691_v23 = vpop.f32.mrf.mxu0 }
 0x2c6   : > { %v1917_v14 = vshrl.u32 %v1894_v60, 16  ;;  %v1692_v46 = vadd.f32 %v1691_v23, %v1627_v54  ;;  %v1920_v28 = vshll.u32 %v1894_v60, 16  ;;  %v1818_v32 = vmax.f32 %v1798_v53, 0.0  ;;  %v1574_v54 = vpop.f32.mrf.mxu2 }
 0x2c8   : > { %v1919_v30 = vrot.slane %v1917_v14, 7  ;;  %v1751_v50 = vadd.f32 %v5605_v17, %v1692_v46  ;;  %v1838_v9 = vpack.c.bf16 %v1818_v32, %v1818_v32  ;;  %v1636_v44 = vpop.f32.mrf.mxu3 }
 0x2ca   : > { %v1922_v42 = vor.u32 %v1920_v28, %v1919_v30  ;;  %v2007_v7 = vsel %vm5705_vm4, %v1919_v30, 0  ;;  %v1775_v16 = vmul.f32 %v5685_v11, %v1751_v50  ;;  %v1878_v18 = vunpack.c.l.b16 %v1838_v9 }
 0x2cb   : > { %v2043_v24 = vunpack.c.l.b16 %v2007_v7 }
 0x2cc   : > { %v1997_v2 = vsel %vm5705_vm4, 0, %v1922_v42  ;;  %v1799_v43 = vadd.f32 %v5693_v6, %v1775_v16 }
 0x2cd   : > { %v2041_v61 = vunpack.c.l.b16 %v1997_v2  ;;  %v2042_v8 = vunpack.c.h.b16 %v1997_v2  ;;  %v2073_v21 = vpack.c.b16 %v2043_v24, %v2043_v24  ;;  %v1694_v41 = vpop.f32.mrf.mxu0 }
 0x2ce   : > { %v1819_v17 = vmax.f32 %v1799_v43, 0.0  ;;  %v1695_v10 = vadd.f32 %v1694_v41, %v1630_v38  ;;  %v1637_v43 = vadd.f32 %v1636_v44, %v1571_v37 }
 0x2cf   : > { %v2071_v39 = vpack.c.b16 %v2041_v61, %v2041_v61  ;;  %v2072_v47 = vpack.c.b16 %v2042_v8, %v2042_v8  ;;  %2133 = vst [vmem:[#allocation2 + $0x20] sm:$0x1] %v2073_v21  ;;  %v1576_v61 = vpop.f32.mrf.mxu2 }
 0x2d0   : > { %v1839_v1 = vpack.c.bf16 %v1819_v17, %v1819_v17  ;;  %v1752_v51 = vadd.f32 %v5611_v5, %v1695_v10  ;;  %v1635_v5 = vadd.f32 %v1634_v55, %v1569_v48  ;;  %v1639_v56 = vpop.f32.mrf.mxu3 }
 0x2d1   : > { %2131 = vst [vmem:[#allocation2 + $0x18] sm:$0xf] %v2071_v39 }
 0x2d2   : > { %2132 = vst [vmem:[#allocation2 + $0x1c] sm:$0xf] %v2072_v47  ;;  %v1879_v29 = vunpack.c.l.b16 %v1839_v1  ;;  %v1776_v34 = vmul.f32 %v5685_v11, %v1752_v51 }
 0x2d4   : > { %v1895_v15 = vpack.c.b16 %v1879_v29, %v1878_v18  ;;  %v1800_v25 = vadd.f32 %v5693_v6, %v1776_v34 }
 0x2d5   : > { %v1696_v52 = vpop.f32.mrf.mxu0 }
 0x2d6   : > { %v1924_v35 = vshrl.u32 %v1895_v15, 16  ;;  %v1697_v22 = vadd.f32 %v1696_v52, %v1632_v12  ;;  %v1927_v3 = vshll.u32 %v1895_v15, 16  ;;  %v1820_v40 = vmax.f32 %v1800_v25, 0.0 }
 0x2d8   : > { %v1926_v59 = vrot.slane %v1924_v35, 7  ;;  %v1753_v4 = vadd.f32 %v5616_v58, %v1697_v22  ;;  %v1840_v48 = vpack.c.bf16 %v1820_v40, %v1820_v40  ;;  %v1641_v21 = vpop.f32.mrf.mxu3 }
 0x2da   : > { %v1929_v31 = vor.u32 %v1927_v3, %v1926_v59  ;;  %v2008_v0 = vsel %vm5705_vm4, %v1926_v59, 0  ;;  %v1777_v60 = vmul.f32 %v5685_v11, %v1753_v4  ;;  %v1880_v32 = vunpack.c.l.b16 %v1840_v48  ;;  %v1579_v59 = vpop.f32.mrf.mxu2 }
 0x2db   : > { %v2046_v23 = vunpack.c.l.b16 %v2008_v0 }
 0x2dc   : > { %v1998_v33 = vsel %vm5705_vm4, 0, %v1929_v31  ;;  %v1801_v14 = vadd.f32 %v5693_v6, %v1777_v60 }
 0x2dd   : > { %v2044_v53 = vunpack.c.l.b16 %v1998_v33  ;;  %v2045_v46 = vunpack.c.h.b16 %v1998_v33  ;;  %v2076_v30 = vpack.c.b16 %v2046_v23, %v2046_v23  ;;  %v1699_v58 = vpop.f32.mrf.mxu0 }
 0x2de   : > { %v1821_v55 = vmax.f32 %v1801_v14, 0.0  ;;  %v1700_v28 = vadd.f32 %v1699_v58, %v1635_v5 }
 0x2df   : > { %v2074_v50 = vpack.c.b16 %v2044_v53, %v2044_v53  ;;  %v2075_v38 = vpack.c.b16 %v2045_v46, %v2045_v46  ;;  %2136 = vst [vmem:[#allocation2 + $0x2c] sm:$0x1] %v2076_v30 }
 0x2e0   : > { %v1841_v42 = vpack.c.bf16 %v1821_v55, %v1821_v55  ;;  %v1754_v7 = vadd.f32 %v5622_v45, %v1700_v28  ;;  %v1640_v45 = vadd.f32 %v1639_v56, %v1574_v54  ;;  %v1644_v5 = vpop.f32.mrf.mxu3  ;;  %v1642_v56 = vadd.f32 %v1641_v21, %v1576_v61 }
 0x2e1   : > { %2134 = vst [vmem:[#allocation2 + $0x24] sm:$0xf] %v2074_v50  ;;  %v1645_v28 = vadd.f32 %v1644_v5, %v1579_v59 }
 0x2e2   : > { %2135 = vst [vmem:[#allocation2 + $0x28] sm:$0xf] %v2075_v38  ;;  %v1881_v16 = vunpack.c.l.b16 %v1841_v42  ;;  %v1778_v24 = vmul.f32 %v5685_v11, %v1754_v7  ;;  %v1581_v55 = vpop.f32.mrf.mxu2 }
 0x2e4   : > { %v1896_v2 = vpack.c.b16 %v1881_v16, %v1880_v32  ;;  %v1802_v9 = vadd.f32 %v5693_v6, %v1778_v24 }
 0x2e5   : > { %v1701_v8 = vpop.f32.mrf.mxu0 }
 0x2e6   : > { %v1931_v41 = vshrl.u32 %v1896_v2, 16  ;;  %v1702_v17 = vadd.f32 %v1701_v8, %v1637_v43  ;;  %v1934_v39 = vshll.u32 %v1896_v2, 16  ;;  %v1822_v18 = vmax.f32 %v1802_v9, 0.0 }
 0x2e8   : > { %v1933_v10 = vrot.slane %v1931_v41, 7  ;;  %v1755_v47 = vadd.f32 %v5627_v49, %v1702_v17  ;;  %v1842_v25 = vpack.c.bf16 %v1822_v18, %v1822_v18 }
 0x2ea   : > { %v1936_v1 = vor.u32 %v1934_v39, %v1933_v10  ;;  %v2009_v51 = vsel %vm5705_vm4, %v1933_v10, 0  ;;  %v1779_v29 = vmul.f32 %v5685_v11, %v1755_v47  ;;  %v1882_v40 = vunpack.c.l.b16 %v1842_v25 }
 0x2eb   : > { %v2049_v37 = vunpack.c.l.b16 %v2009_v51  ;;  %v1584_v51 = vpop.f32.mrf.mxu2 }
 0x2ec   : > { %v1999_v44 = vsel %vm5705_vm4, 0, %v1936_v1  ;;  %v1803_v34 = vadd.f32 %v5693_v6, %v1779_v29 }
 0x2ed   : > { %v2047_v15 = vunpack.c.l.b16 %v1999_v44  ;;  %v2048_v12 = vunpack.c.h.b16 %v1999_v44  ;;  %v2079_v52 = vpack.c.b16 %v2049_v37, %v2049_v37  ;;  %v1704_v35 = vpop.f32.mrf.mxu0 }
 0x2ee   : > { %v1823_v49 = vmax.f32 %v1803_v34, 0.0  ;;  %v1705_v22 = vadd.f32 %v1704_v35, %v1640_v45 }
 0x2ef   : > { %v2077_v3 = vpack.c.b16 %v2047_v15, %v2047_v15  ;;  %v2078_v4 = vpack.c.b16 %v2048_v12, %v2048_v12  ;;  %2139 = vst [vmem:[#allocation2 + $0x38] sm:$0x1] %v2079_v52 }
 0x2f0   : > { %v1843_v31 = vpack.c.bf16 %v1823_v49, %v1823_v49  ;;  %v1756_v0 = vadd.f32 %v5635_v36, %v1705_v22  ;;  %v1646_v36 = vpop.f32.mrf.mxu3 }
 0x2f1   : > { %2137 = vst [vmem:[#allocation2 + $0x30] sm:$0xf] %v2077_v3  ;;  %v1647_v37 = vadd.f32 %v1646_v36, %v1581_v55 }
 0x2f2   : > { %2138 = vst [vmem:[#allocation2 + $0x34] sm:$0xf] %v2078_v4  ;;  %v1883_v60 = vunpack.c.l.b16 %v1843_v31  ;;  %v1780_v54 = vmul.f32 %v5685_v11, %v1756_v0 }
 0x2f3   : > { %v1586_v0 = vpop.f32.mrf.mxu2 }
 0x2f4   : > { %v1897_v23 = vpack.c.b16 %v1883_v60, %v1882_v40  ;;  %v1804_v53 = vadd.f32 %v5693_v6, %v1780_v54 }
 0x2f5   : > { %v1706_v33 = vpop.f32.mrf.mxu0 }
 0x2f6   : > { %v1938_v14 = vshrl.u32 %v1897_v23, 16  ;;  %v1707_v46 = vadd.f32 %v1706_v33, %v1642_v56  ;;  %v1941_v58 = vshll.u32 %v1897_v23, 16  ;;  %v1824_v42 = vmax.f32 %v1804_v53, 0.0 }
 0x2f8   : > { %v1940_v30 = vrot.slane %v1938_v14, 7  ;;  %v1757_v48 = vadd.f32 %v5640_v63, %v1707_v46  ;;  %v1844_v8 = vpack.c.bf16 %v1824_v42, %v1824_v42  ;;  %v1649_v18 = vpop.f32.mrf.mxu3 }
 0x2fa   : > { %v1943_v50 = vor.u32 %v1941_v58, %v1940_v30  ;;  %v2010_v38 = vsel %vm5705_vm4, %v1940_v30, 0  ;;  %v1781_v7 = vmul.f32 %v5685_v11, %v1757_v48  ;;  %v1884_v47 = vunpack.c.l.b16 %v1844_v8 }
 0x2fb   : > { %v2052_v32 = vunpack.c.l.b16 %v2010_v38 }
 0x2fc   : > { %v2000_v16 = vsel %vm5705_vm4, 0, %v1943_v50  ;;  %v1805_v24 = vadd.f32 %v5693_v6, %v1781_v7 }
 0x2fd   : > { %v2050_v2 = vunpack.c.l.b16 %v2000_v16  ;;  %v2051_v43 = vunpack.c.h.b16 %v2000_v16  ;;  %v2082_v61 = vpack.c.b16 %v2052_v32, %v2052_v32  ;;  %v1709_v63 = vpop.f32.mrf.mxu0  ;;  %v1589_v16 = vpop.f32.mrf.mxu2 }
 0x2fe   : > { %v1825_v21 = vmax.f32 %v1805_v24, 0.0  ;;  %v1710_v41 = vadd.f32 %v1709_v63, %v1645_v28 }
 0x2ff   : > { %v2080_v9 = vpack.c.b16 %v2050_v2, %v2050_v2  ;;  %v2081_v17 = vpack.c.b16 %v2051_v43, %v2051_v43  ;;  %2142 = vst [vmem:[#allocation2 + $0x44] sm:$0x1] %v2082_v61 }
 0x300   : > { %v1845_v10 = vpack.c.bf16 %v1825_v21, %v1825_v21  ;;  %v1758_v39 = vadd.f32 %v5646_v13, %v1710_v41  ;;  %v1650_v13 = vadd.f32 %v1649_v18, %v1584_v51  ;;  %v1651_v23 = vpop.f32.mrf.mxu3 }
 0x301   : > { %2140 = vst [vmem:[#allocation2 + $0x3c] sm:$0xf] %v2080_v9  ;;  %v1652_v50 = vadd.f32 %v1651_v23, %v1586_v0 }
 0x302   : > { %2141 = vst [vmem:[#allocation2 + $0x40] sm:$0xf] %v2081_v17  ;;  %v1885_v45 = vunpack.c.l.b16 %v1845_v10  ;;  %v1782_v1 = vmul.f32 %v5685_v11, %v1758_v39 }
 0x304   : > { %v1898_v29 = vpack.c.b16 %v1885_v45, %v1884_v47  ;;  %v1806_v15 = vadd.f32 %v5693_v6, %v1782_v1 }
 0x305   : > { %v1711_v44 = vpop.f32.mrf.mxu0 }
 0x306   : > { %v1945_v34 = vshrl.u32 %v1898_v29, 16  ;;  %v1712_v12 = vadd.f32 %v1711_v44, %v1647_v37  ;;  %v1948_v35 = vshll.u32 %v1898_v29, 16  ;;  %v1826_v59 = vmax.f32 %v1806_v15, 0.0  ;;  %v1591_v15 = vpop.f32.mrf.mxu2 }
 0x308   : > { %v1947_v52 = vrot.slane %v1945_v34, 7  ;;  %v1759_v25 = vadd.f32 %v5651_v20, %v1712_v12  ;;  %v1846_v56 = vpack.c.bf16 %v1826_v59, %v1826_v59  ;;  %v1654_v24 = vpop.f32.mrf.mxu3 }
 0x30a   : > { %v1950_v49 = vor.u32 %v1948_v35, %v1947_v52  ;;  %v2011_v22 = vsel %vm5705_vm4, %v1947_v52, 0  ;;  %v1783_v3 = vmul.f32 %v5685_v11, %v1759_v25  ;;  %v1886_v48 = vunpack.c.l.b16 %v1846_v56 }
 0x30b   : > { %v2055_v4 = vunpack.c.l.b16 %v2011_v22 }
 0x30c   : > { %v2001_v5 = vsel %vm5705_vm4, 0, %v1950_v49  ;;  %v1807_v31 = vadd.f32 %v5693_v6, %v1783_v3 }
 0x30d   : > { %v2053_v40 = vunpack.c.l.b16 %v2001_v5  ;;  %v2054_v60 = vunpack.c.h.b16 %v2001_v5  ;;  %v2085_v54 = vpack.c.b16 %v2055_v4, %v2055_v4  ;;  %v1714_v20 = vpop.f32.mrf.mxu0 }
 0x30e   : > { %v1827_v33 = vmax.f32 %v1807_v31, 0.0  ;;  %v1715_v14 = vadd.f32 %v1714_v20, %v1650_v13 }
 0x30f   : > { %v2083_v53 = vpack.c.b16 %v2053_v40, %v2053_v40  ;;  %v2084_v46 = vpack.c.b16 %v2054_v60, %v2054_v60  ;;  %2145 = vst [vmem:[#allocation2 + $0x50] sm:$0x1] %v2085_v54 }
 0x310   : > { %v1847_v30 = vpack.c.bf16 %v1827_v33, %v1827_v33  ;;  %v1760_v58 = vadd.f32 %v5657_v26, %v1715_v14  ;;  %v1655_v26 = vadd.f32 %v1654_v24, %v1589_v16  ;;  %v1656_v12 = vpop.f32.mrf.mxu3 }
 0x311   : > { %2143 = vst [vmem:[#allocation2 + $0x48] sm:$0xf] %v2083_v53  ;;  %v1657_v49 = vadd.f32 %v1656_v12, %v1591_v15 }
 0x312   : > { %2144 = vst [vmem:[#allocation2 + $0x4c] sm:$0xf] %v2084_v46  ;;  %v1887_v55 = vunpack.c.l.b16 %v1847_v30  ;;  %v1784_v28 = vmul.f32 %v5685_v11, %v1760_v58 }
 0x314   : > { %v1899_v36 = vpack.c.b16 %v1887_v55, %v1886_v48  ;;  %v1808_v7 = vadd.f32 %v5693_v6, %v1784_v28 }
 0x315   : > { %v1716_v38 = vpop.f32.mrf.mxu0 }
 0x316   : > { %v1952_v42 = vshrl.u32 %v1899_v36, 16  ;;  %v1717_v32 = vadd.f32 %v1716_v38, %v1652_v50  ;;  %v1955_v43 = vshll.u32 %v1899_v36, 16  ;;  %v1828_v21 = vmax.f32 %v1808_v7, 0.0 }
 0x318   : > { %v1954_v2 = vrot.slane %v1952_v42, 7  ;;  %v1761_v61 = vadd.f32 %v5662_v57, %v1717_v32  ;;  %v1848_v51 = vpack.c.bf16 %v1828_v21, %v1828_v21 }
 0x31a   : > { %v1957_v63 = vor.u32 %v1955_v43, %v1954_v2  ;;  %v2012_v8 = vsel %vm5705_vm4, %v1954_v2, 0  ;;  %v1785_v41 = vmul.f32 %v5685_v11, %v1761_v61  ;;  %v1888_v52 = vunpack.c.l.b16 %v1848_v51 }
 0x31b   : > { %v2058_v9 = vunpack.c.l.b16 %v2012_v8 }
 0x31c   : > { %v2002_v17 = vsel %vm5705_vm4, 0, %v1957_v63  ;;  %v1809_v10 = vadd.f32 %v5693_v6, %v1785_v41 }
 0x31d   : > { %v2056_v39 = vunpack.c.l.b16 %v2002_v17  ;;  %v2057_v47 = vunpack.c.h.b16 %v2002_v17  ;;  %v2088_v45 = vpack.c.b16 %v2058_v9, %v2058_v9  ;;  %v1719_v1 = vpop.f32.mrf.mxu0 }
 0x31e   : > { %v1829_v57 = vmax.f32 %v1809_v10, 0.0  ;;  %v1720_v18 = vadd.f32 %v1719_v1, %v1655_v26 }
 0x31f   : > { %v2086_v29 = vpack.c.b16 %v2056_v39, %v2056_v39  ;;  %v2087_v37 = vpack.c.b16 %v2057_v47, %v2057_v47  ;;  %2148 = vst [vmem:[#allocation2 + $0x5c] sm:$0x1] %v2088_v45 }
 0x320   : > { %v1849_v44 = vpack.c.bf16 %v1829_v57, %v1829_v57  ;;  %v1762_v34 = vadd.f32 %v5668_v62, %v1720_v18 }
 0x321   : > { %2146 = vst [vmem:[#allocation2 + $0x54] sm:$0xf] %v2086_v29 }
 0x322   : > { %2147 = vst [vmem:[#allocation2 + $0x58] sm:$0xf] %v2087_v37  ;;  %v1889_v35 = vunpack.c.l.b16 %v1849_v44  ;;  %v1786_v25 = vmul.f32 %v5685_v11, %v1762_v34 }
 0x324   : > { %v1900_v13 = vpack.c.b16 %v1889_v35, %v1888_v52  ;;  %v1810_v3 = vadd.f32 %v5693_v6, %v1786_v25 }
 0x325   : > { %v1721_v22 = vpop.f32.mrf.mxu0 }
 0x326   : > { %v1959_v59 = vshrl.u32 %v1900_v13, 16  ;;  %v1722_v4 = vadd.f32 %v1721_v22, %v1657_v49  ;;  %v1962_v31 = vshll.u32 %v1900_v13, 16  ;;  %v1830_v60 = vmax.f32 %v1810_v3, 0.0 }
 0x328   : > { %v1961_v5 = vrot.slane %v1959_v59, 7  ;;  %v1763_v0 = vadd.f32 %v5673_v19, %v1722_v4  ;;  %v1850_v46 = vpack.c.bf16 %v1830_v60, %v1830_v60 }
 0x32a   : > { %v1964_v62 = vor.u32 %v1962_v31, %v1961_v5  ;;  %v2013_v40 = vsel %vm5705_vm4, %v1961_v5, 0  ;;  %v1787_v54 = vmul.f32 %v5685_v11, %v1763_v0  ;;  %v1890_v55 = vunpack.c.l.b16 %v1850_v46 }
 0x32b   : > { %v2061_v23 = vunpack.c.l.b16 %v2013_v40 }
 0x32c   : > { %v2003_v20 = vsel %vm5705_vm4, 0, %v1964_v62  ;;  %v1811_v56 = vadd.f32 %v5693_v6, %v1787_v54 }
 0x32d   : > { %v2059_v33 = vunpack.c.l.b16 %v2003_v20  ;;  %v2060_v14 = vunpack.c.h.b16 %v2003_v20  ;;  %v2091_v53 = vpack.c.b16 %v2061_v23, %v2061_v23 }
 0x32e   : > { %v1831_v30 = vmax.f32 %v1811_v56, 0.0 }
 0x32f   : > { %v2089_v58 = vpack.c.b16 %v2059_v33, %v2059_v33  ;;  %v2090_v19 = vpack.c.b16 %v2060_v14, %v2060_v14  ;;  %2151 = vst [vmem:[#allocation2 + $0x68] sm:$0x1] %v2091_v53 }
 0x330   : > { %v1851_v48 = vpack.c.bf16 %v1831_v30, %v1831_v30 }
 0x331   : > { %2149 = vst [vmem:[#allocation2 + $0x60] sm:$0xf] %v2089_v58 }
 0x332   : > { %2150 = vst [vmem:[#allocation2 + $0x64] sm:$0xf] %v2090_v19  ;;  %v1891_v28 = vunpack.c.l.b16 %v1851_v48 }
 0x334   : > { %v1901_v11 = vpack.c.b16 %v1891_v28, %v1890_v55 }
 0x336   : > { %v1966_v36 = vshrl.u32 %v1901_v11, 16  ;;  %v1969_v38 = vshll.u32 %v1901_v11, 16 }
 0x338   : > { %v1968_v50 = vrot.slane %v1966_v36, 7 }
 0x33a   : > { %v1971_v42 = vor.u32 %v1969_v38, %v1968_v50  ;;  %v2014_v6 = vsel %vm5705_vm4, %v1968_v50, 0 }
 0x33b   : > { %v2064_v7 = vunpack.c.l.b16 %v2014_v6 }
 0x33c   : > { %v2004_v32 = vsel %vm5705_vm4, 0, %v1971_v42 }
 0x33d   : > { %v2062_v16 = vunpack.c.l.b16 %v2004_v32  ;;  %v2063_v24 = vunpack.c.h.b16 %v2004_v32  ;;  %v2094_v2 = vpack.c.b16 %v2064_v7, %v2064_v7 }
 0x33e   : > { %2158 = sbr.rel (%p4036_p7) target bundleno = 839 (0x347), region = 52 }
 0x33f   : > { %v2092_v43 = vpack.c.b16 %v2062_v16, %v2062_v16  ;;  %v2093_v61 = vpack.c.b16 %v2063_v24, %v2063_v24  ;;  %2154 = vst [vmem:[#allocation2 + $0x74] sm:$0x1] %v2094_v2 }
 0x341   : > { %2152 = vst [vmem:[#allocation2 + $0x6c] sm:$0xf] %v2092_v43 }
 0x342   : > { %2153 = vst [vmem:[#allocation2 + $0x70] sm:$0xf] %v2093_v61 }
 0x343   : > { %v4702_v26 = vmov 0  }
 0x344   : > { %2159 = vst [vmem:[#allocation2] sm:$0xf] %v4702_v26 }
 0x345   : > { %2160 = vst [vmem:[#allocation2 + $0x4] sm:$0xf] %v4702_v26 }
 0x346   : > { %2161 = vst [vmem:[#allocation2 + $0x8] sm:$0x1] %v4702_v26 }
 0x347 PF: > { %p4037_p8 = scmp.ne.s32.totalorder %s4684_s24, 1 }
 0x349   : > { %2165 = sbr.rel (%p4037_p8) target bundleno = 850 (0x352), region = 56 }
 0x34e   : > { %v4703_v27 = vmov 0  }
 0x34f   : > { %2167 = vst [vmem:[#allocation2 + $0x6c] sm:$0xf] %v4703_v27 }
 0x350   : > { %2168 = vst [vmem:[#allocation2 + $0x70] sm:$0xf] %v4703_v27 }
 0x351   : > { %2169 = vst [vmem:[#allocation2 + $0x74] sm:$0x1] %v4703_v27 }
 0x352 PF: > { %v4124_v63 = vld [vmem:[%s6595_s4 + $0xa8] sm:$0xf]  ;;  %v4435_v8 = vld [vmem:[%s6595_s4 + $0xb0] sm:$0xf0]  ;;  %v4112_v45 = vld [vmem:[%s6595_s4 + $0x90] sm:$0xf] }
 0x353   : > { %v4220_v21 = vld [vmem:[%s6595_s4 + $0x168] sm:$0xf]  ;;  %v4125_v41 = vor.u32 %v4435_v8, %v4124_v63  ;;  %v4459_v9 = vld [vmem:[%s6595_s4 + $0x170] sm:$0xf0]  ;;  %v4432_v1 = vld [vmem:[%s6595_s4 + $0x98] sm:$0xf0] }
 0x354   : > { %v4316_v17 = vld [vmem:[%s6595_s4 + $0x228] sm:$0xf]  ;;  %v4483_v10 = vld [vmem:[%s6595_s4 + $0x230] sm:$0xf0]  ;;  %v4221_v39 = vor.u32 %v4459_v9, %v4220_v21  ;;  %v4208_v51 = vld [vmem:[%s6595_s4 + $0x150] sm:$0xf]  ;;  %v4113_v57 = vor.u32 %v4432_v1, %v4112_v45 }
 0x355   : > { %v4317_v47 = vor.u32 %v4483_v10, %v4316_v17  ;;  %2980 = vmatpush.bf16.msra.mxu1 %v4125_v41  ;;  %v4456_v18 = vld [vmem:[%s6595_s4 + $0x158] sm:$0xf0]  ;;  %v4304_v29 = vld [vmem:[%s6595_s4 + $0x210] sm:$0xf]  ;;  %v4100_v15 = vld [vmem:[%s6595_s4 + $0x78] sm:$0xf] }
 0x356   : > { %v4480_v37 = vld [vmem:[%s6595_s4 + $0x218] sm:$0xf0]  ;;  %3035 = vmatpush.bf16.msra.mxu2 %v4221_v39  ;;  %v4209_v44 = vor.u32 %v4456_v18, %v4208_v51  ;;  %v4429_v12 = vld [vmem:[%s6595_s4 + $0x80] sm:$0xf0]  ;;  %v4196_v52 = vld [vmem:[%s6595_s4 + $0x138] sm:$0xf] }
 0x357   : > { %3090 = vmatpush.bf16.msrb.mxu3 %v4317_v47  ;;  %v4305_v34 = vor.u32 %v4480_v37, %v4304_v29  ;;  %v4453_v35 = vld [vmem:[%s6595_s4 + $0x140] sm:$0xf0]  ;;  %v4292_v25 = vld [vmem:[%s6595_s4 + $0x1f8] sm:$0xf]  ;;  %v4101_v49 = vor.u32 %v4429_v12, %v4100_v15  ;;  %v4088_v3 = vld [vmem:[%s6595_s4 + $0x60] sm:$0xf] }
 0x358   : > { %v4477_v13 = vld [vmem:[%s6595_s4 + $0x200] sm:$0xf0]  ;;  %v4197_v22 = vor.u32 %v4453_v35, %v4196_v52  ;;  %v4426_v4 = vld [vmem:[%s6595_s4 + $0x68] sm:$0xf0]  ;;  %v4184_v5 = vld [vmem:[%s6595_s4 + $0x120] sm:$0xf] }
 0x359   : > { %2981 = vmatpush.bf16.msra.mxu1 %v4113_v57  ;;  %v4293_v59 = vor.u32 %v4477_v13, %v4292_v25  ;;  %v4450_v31 = vld [vmem:[%s6595_s4 + $0x128] sm:$0xf0]  ;;  %v4280_v0 = vld [vmem:[%s6595_s4 + $0x1e0] sm:$0xf]  ;;  %v4089_v40 = vor.u32 %v4426_v4, %v4088_v3  ;;  %v4076_v23 = vld [vmem:[%s6595_s4 + $0x48] sm:$0xf] }
 0x35a   : > { %3036 = vmatpush.bf16.msra.mxu2 %v4209_v44  ;;  %v4474_v62 = vld [vmem:[%s6595_s4 + $0x1e8] sm:$0xf0]  ;;  %v4185_v60 = vor.u32 %v4450_v31, %v4184_v5  ;;  %v4423_v20 = vld [vmem:[%s6595_s4 + $0x50] sm:$0xf0]  ;;  %v4172_v56 = vld [vmem:[%s6595_s4 + $0x108] sm:$0xf] }
 0x35b   : > { %3091 = vmatpush.bf16.msrb.mxu3 %v4305_v34  ;;  %v4281_v54 = vor.u32 %v4474_v62, %v4280_v0  ;;  %v4447_v33 = vld [vmem:[%s6595_s4 + $0x110] sm:$0xf0]  ;;  %v4268_v14 = vld [vmem:[%s6595_s4 + $0x1c8] sm:$0xf]  ;;  %v4077_v46 = vor.u32 %v4423_v20, %v4076_v23  ;;  %v4064_v30 = vld [vmem:[%s6595_s4 + $0x30] sm:$0xf] }
 0x35c   : > { %v4471_v53 = vld [vmem:[%s6595_s4 + $0x1d0] sm:$0xf0]  ;;  %v4420_v58 = vld [vmem:[%s6595_s4 + $0x38] sm:$0xf0]  ;;  %v4173_v19 = vor.u32 %v4447_v33, %v4172_v56  ;;  %v4160_v55 = vld [vmem:[%s6595_s4 + $0xf0] sm:$0xf] }
 0x35d   : > { %2982 = vmatpush.bf16.msra.mxu1 %v4101_v49  ;;  %v4269_v48 = vor.u32 %v4471_v53, %v4268_v14  ;;  %v4444_v28 = vld [vmem:[%s6595_s4 + $0xf8] sm:$0xf0]  ;;  %v2190_v11 = vld [vmem:[#allocation2 + $0x8] sm:$0x1]  ;;  %v4256_v36 = vld [vmem:[%s6595_s4 + $0x1b0] sm:$0xf]  ;;  %v4065_v7 = vor.u32 %v4420_v58, %v4064_v30 }
 0x35e   : > { %3037 = vmatpush.bf16.msra.mxu2 %v4197_v22  ;;  %v4468_v50 = vld [vmem:[%s6595_s4 + $0x1b8] sm:$0xf0]  ;;  %v5917_v38 = vld [vmem:[#allocation2] sm:$0xff]   ;;  %v2280_v42 = vunpack.c.l.b16 %v2190_v11  ;;  %v4052_v6 = vld [vmem:[%s6595_s4 + $0x18] sm:$0xf]  ;;  %v4161_v2 = vor.u32 %v4444_v28, %v4160_v55 }
 0x35f   : > { %3092 = vmatpush.bf16.msrb.mxu3 %v4293_v59  ;;  %v4417_v32 = vld [vmem:[%s6595_s4 + $0x20] sm:$0xf0]  ;;  %v4148_v16 = vld [vmem:[%s6595_s4 + $0xd8] sm:$0xf]  ;;  %v4257_v43 = vor.u32 %v4468_v50, %v4256_v36  ;;  %v2303_v63 = vshll.u32 %v5917_v38, 16  ;;  %v2301_v57 = vshrl.u32 %v5917_v38, 16 }
 0x360   : > { %v4441_v24 = vld [vmem:[%s6595_s4 + $0xe0] sm:$0xf0]  ;;  %v4244_v61 = vld [vmem:[%s6595_s4 + $0x198] sm:$0xf]  ;;  %v2290_v27 = vpack.c.b16 %v2280_v42, %v2280_v42  ;;  %v4040_v8 = vld [vmem:[%s6595_s4] sm:$0xf]  ;;  %v4053_v17 = vor.u32 %v4417_v32, %v4052_v6 }
 0x361   : > { %2983 = vmatpush.bf16.msra.mxu1 %v4089_v40  ;;  %v4465_v26 = vld [vmem:[%s6595_s4 + $0x1a0] sm:$0xf0]  ;;  %v4550_v41 = vld [vmem:[#allocation2] sm:$0xe]  ;;  %v4414_v9 = vld [vmem:[%s6595_s4 + $0x8] sm:$0xf0]  ;;  %v4149_v10 = vor.u32 %v4441_v24, %v4148_v16 }
 0x362   : > { %3038 = vmatpush.bf16.msra.mxu2 %v4185_v60  ;;  %v4549_v21 = vld [vmem:[#allocation2] sm:$0xf0]  ;;  %v4245_v39 = vor.u32 %v4465_v26, %v4244_v61  ;;  %v4136_v47 = vld [vmem:[%s6595_s4 + $0xc0] sm:$0xf]  ;;  %v4438_v45 = vld [vmem:[%s6595_s4 + $0xc8] sm:$0xf0]  ;;  %v4041_v12 = vor.u32 %v4414_v9, %v4040_v8 }
 0x363   : > { %3093 = vmatpush.bf16.msrb.mxu3 %v4281_v54  ;;  %v4232_v1 = vld [vmem:[%s6595_s4 + $0x180] sm:$0xf]  ;;  %v4462_v51 = vld [vmem:[%s6595_s4 + $0x188] sm:$0xf0]  ;;  %v2305_v18 = vrot.slane %v2303_v63, 1  ;;  %v2308_v29 = vshll.u32 %v2290_v27, 16  ;;  %v4551_v37 = vor.u32 %v4550_v41, %v4549_v21  ;;  %v4137_v13 = vor.u32 %v4438_v45, %v4136_v47 }
 0x364   : > { %v5957_v44 = vld [vmem:[#allocation2 + $0xc] sm:$0xff]   ;;  %v4222_v52 = vld [vmem:[%s6595_s4 + $0x174] sm:$0xf0]  ;;  %v4233_v49 = vor.u32 %v4462_v51, %v4232_v1  ;;  %v2461_v4 = vrot.slane %v2290_v27, 1  ;;  %v2191_v0 = vld [vmem:[#allocation2 + $0x14] sm:$0x1] }
 0x365   : > { %2984 = vmatpush.bf16.msra.mxu1 %v4077_v46  ;;  %v4647_v34 = vld [vmem:[#allocation2 + $0xc] sm:$0xf0]  ;;  %v4458_v15 = vld [vmem:[%s6595_s4 + $0x16c] sm:$0xf]  ;;  %v4126_v25 = vld [vmem:[%s6595_s4 + $0xb4] sm:$0xf0]  ;;  %v2306_v22 = vor.u32 %v2305_v18, %v2301_v57  ;;  %v2281_v56 = vunpack.c.l.b16 %v2191_v0 }
 0x366   : > { %3039 = vmatpush.bf16.msra.mxu2 %v4173_v19  ;;  %v4434_v35 = vld [vmem:[%s6595_s4 + $0xac] sm:$0xf]  ;;  %v2310_v59 = vrot.slane %v2308_v29, 1  ;;  %v2460_v3 = vrot.slane %v4551_v37, 1  ;;  %v4225_v5 = vor.u32 %v4458_v15, %v4222_v52  ;;  %v4455_v62 = vld [vmem:[%s6595_s4 + $0x154] sm:$0xf] }
 0x367   : > { %3094 = vmatpush.bf16.msrb.mxu3 %v4269_v48  ;;  %v4129_v31 = vor.u32 %v4434_v35, %v4126_v25  ;;  %v4210_v40 = vld [vmem:[%s6595_s4 + $0x15c] sm:$0xf0]  ;;  %v4431_v60 = vld [vmem:[%s6595_s4 + $0x94] sm:$0xf]  ;;  %v4648_v33 = vld [vmem:[#allocation2 + $0xc] sm:$0xe]  ;;  %v2291_v19 = vpack.c.b16 %v2281_v56, %v2281_v56 }
 0x368   : > { %v4114_v54 = vld [vmem:[%s6595_s4 + $0x9c] sm:$0xf0]  ;;  %v5984_v23 = vsel %vm453_vm0, %v2306_v22, %v2310_v59  ;;  %v5987_v20 = vsel %vm610_vm1, %v2460_v3, %v2461_v4  ;;  %v4213_v14 = vor.u32 %v4455_v62, %v4210_v40  ;;  %v4452_v46 = vld [vmem:[%s6595_s4 + $0x13c] sm:$0xf]  ;;  %v4198_v30 = vld [vmem:[%s6595_s4 + $0x144] sm:$0xf0]  ;;  %v4649_v6 = vor.u32 %v4648_v33, %v4647_v34 }
 0x369   : > { %2985 = vmatpush.bf16.msra.mxu1 %v4065_v7  ;;  %v4117_v53 = vor.u32 %v4431_v60, %v4114_v54  ;;  %v4428_v58 = vld [vmem:[%s6595_s4 + $0x7c] sm:$0xf]  ;;  %v2315_v48 = vshll.u32 %v5957_v44, 16  ;;  %v4102_v55 = vld [vmem:[%s6595_s4 + $0x84] sm:$0xf0]  ;;  %v4201_v28 = vor.u32 %v4452_v46, %v4198_v30  ;;  %v2313_v36 = vshrl.u32 %v5957_v44, 16 }
 0x36a   : > { %3040 = vmatpush.bf16.msra.mxu2 %v4161_v2  ;;  %v4105_v11 = vor.u32 %v4428_v58, %v4102_v55  ;;  %v2320_v42 = vshll.u32 %v2291_v19, 16  ;;  %v2463_v16 = vrot.slane %v4649_v6, 1  ;;  %v2464_v24 = vrot.slane %v2291_v19, 1  ;;  %v2192_v2 = vld [vmem:[#allocation2 + $0x20] sm:$0x1]  ;;  %v6012_v27 = vld [vmem:[#allocation2 + $0x18] sm:$0xff]  }
 0x36b   : > { %3095 = vmatpush.bf16.msrb.mxu3 %v4257_v43  ;;  %v2317_v50 = vrot.slane %v2315_v48, 1  ;;  %v2282_v43 = vunpack.c.l.b16 %v2192_v2  ;;  %v2327_v8 = vshll.u32 %v6012_v27, 16  ;;  %v4449_v21 = vld [vmem:[%s6595_s4 + $0x124] sm:$0xf]  ;;  %v4186_v41 = vld [vmem:[%s6595_s4 + $0x12c] sm:$0xf0] }
 0x36c   : > { %v2322_v32 = vrot.slane %v2320_v42, 1  ;;  %v6010_v26 = vsel %vm610_vm1, %v2463_v16, %v2464_v24  ;;  %v4189_v9 = vor.u32 %v4449_v21, %v4186_v41  ;;  %v6025_v51 = vld [vmem:[#allocation2 + $0x24] sm:$0xff]   ;;  %v2193_v15 = vld [vmem:[#allocation2 + $0x2c] sm:$0x1]  ;;  %v2194_v56 = vld [vmem:[#allocation2 + $0x38] sm:$0x1] }
 0x36d   : > { %2986 = vmatpush.bf16.msra.mxu1 %v4053_v17  ;;  %v2318_v7 = vor.u32 %v2317_v50, %v2313_v36  ;;  %v2292_v63 = vpack.c.b16 %v2282_v43, %v2282_v43  ;;  %v4552_v17 = vld [vmem:[#allocation2 + $0x18] sm:$0xf0]  ;;  %v2329_v47 = vrot.slane %v2327_v8, 1  ;;  %v4650_v57 = vld [vmem:[#allocation2 + $0x24] sm:$0xf0]  ;;  %v2283_v35 = vunpack.c.l.b16 %v2193_v15  ;;  %v6044_v33 = vld [vmem:[#allocation2 + $0x30] sm:$0xff]  }
 0x36e   : > { %3041 = vmatpush.bf16.msra.mxu2 %v4149_v10  ;;  %v4553_v10 = vld [vmem:[#allocation2 + $0x18] sm:$0xe]  ;;  %v4651_v25 = vld [vmem:[#allocation2 + $0x24] sm:$0xe]  ;;  %v2339_v59 = vshll.u32 %v6025_v51, 16  ;;  %v2337_v4 = vshrl.u32 %v6025_v51, 16 }
 0x36f   : > { %3096 = vmatpush.bf16.msrb.mxu3 %v4245_v39  ;;  %v6007_v61 = vsel %vm453_vm0, %v2318_v7, %v2322_v32  ;;  %v2325_v39 = vshrl.u32 %v6012_v27, 16  ;;  %v2332_v45 = vshll.u32 %v2292_v63, 16  ;;  %v4554_v1 = vor.u32 %v4553_v10, %v4552_v17  ;;  %v4446_v19 = vld [vmem:[%s6595_s4 + $0x10c] sm:$0xf]  ;;  %v4174_v48 = vld [vmem:[%s6595_s4 + $0x114] sm:$0xf0] }
 0x370   : > { %v2467_v34 = vrot.slane %v2292_v63, 1  ;;  %v2293_v22 = vpack.c.b16 %v2283_v35, %v2283_v35  ;;  %v4652_v0 = vor.u32 %v4651_v25, %v4650_v57  ;;  %v2351_v30 = vshll.u32 %v6044_v33, 16  ;;  %v4422_v55 = vld [vmem:[%s6595_s4 + $0x4c] sm:$0xf]  ;;  %v4555_v36 = vld [vmem:[#allocation2 + $0x30] sm:$0xf0] }
 0x371   : > { %2987 = vmatpush.bf16.msra.mxu1 %v4041_v12  ;;  %v2330_v18 = vor.u32 %v2329_v47, %v2325_v39  ;;  %v2334_v29 = vrot.slane %v2332_v45, 1  ;;  %v2466_v37 = vrot.slane %v4554_v1, 1  ;;  %v4556_v50 = vld [vmem:[#allocation2 + $0x30] sm:$0xe]  ;;  %v2349_v6 = vshrl.u32 %v6044_v33, 16  ;;  %v6069_v24 = vld [vmem:[#allocation2 + $0x3c] sm:$0xff]  }
 0x372   : > { %3042 = vmatpush.bf16.msra.mxu2 %v4137_v13  ;;  %v4425_v13 = vld [vmem:[%s6595_s4 + $0x64] sm:$0xf]  ;;  %v2469_v60 = vrot.slane %v4652_v0, 1  ;;  %v2470_v54 = vrot.slane %v2293_v22, 1  ;;  %v2353_v7 = vrot.slane %v2351_v30, 1  ;;  %v4557_v16 = vor.u32 %v4556_v50, %v4555_v36 }
 0x373   : > { %3097 = vmatpush.bf16.msrb.mxu3 %v4233_v49  ;;  %v6028_v12 = vsel %vm453_vm0, %v2330_v18, %v2334_v29  ;;  %v6031_v52 = vsel %vm610_vm1, %v2466_v37, %v2467_v34  ;;  %v4090_v49 = vld [vmem:[%s6595_s4 + $0x6c] sm:$0xf0]  ;;  %v4653_v2 = vld [vmem:[#allocation2 + $0x3c] sm:$0xf0]  ;;  %v2195_v41 = vld [vmem:[#allocation2 + $0x44] sm:$0x1] }
 0x374   : > { %2988 = vmatmul.bf16.vlgmr.msra.gmra.mxu1 %v5917_v38  ;;  %v4093_v3 = vor.u32 %v4425_v13, %v4090_v49  ;;  %v6050_v46 = vsel %vm610_vm1, %v2469_v60, %v2470_v54  ;;  %v2354_v43 = vor.u32 %v2353_v7, %v2349_v6  ;;  %v2472_v8 = vrot.slane %v4557_v16, 1  ;;  %v4654_v39 = vld [vmem:[#allocation2 + $0x3c] sm:$0xe]  ;;  %v4443_v47 = vld [vmem:[%s6595_s4 + $0xf4] sm:$0xf] }
 0x375   : > { %3145 = vmatpush.bf16.msrb.mxu1 %v4129_v31  ;;  %3043 = vmatmul.bf16.vlgmr.msra.gmra.mxu2 %v5984_v23  ;;  %v2344_v31 = vshll.u32 %v2293_v22, 16  ;;  %v2285_v10 = vunpack.c.l.b16 %v2195_v41  ;;  %v4162_v45 = vld [vmem:[%s6595_s4 + $0xfc] sm:$0xf0]  ;;  %v4419_v1 = vld [vmem:[%s6595_s4 + $0x34] sm:$0xf]  ;;  %v2363_v18 = vshll.u32 %v6069_v24, 16  ;;  %v4655_v13 = vor.u32 %v4654_v39, %v4653_v2 }
 0x376   : > { %3200 = vmatpush.bf16.msrb.mxu2 %v4225_v5  ;;  %3098 = vmatmul.bf16.vlgmr.msrb.gmra.mxu3 %v5987_v20  ;;  %v2341_v5 = vrot.slane %v2339_v59, 1  ;;  %v4165_v29 = vor.u32 %v4443_v47, %v4162_v45  ;;  %v4066_v37 = vld [vmem:[%s6595_s4 + $0x3c] sm:$0xf0]  ;;  %v2361_v15 = vshrl.u32 %v6069_v24, 16  ;;  %v4150_v60 = vld [vmem:[%s6595_s4 + $0xe4] sm:$0xf0] }
 0x377   : > { %v2346_v40 = vrot.slane %v2344_v31, 1  ;;  %v2295_v57 = vpack.c.b16 %v2285_v10, %v2285_v10  ;;  %v4069_v34 = vor.u32 %v4419_v1, %v4066_v37  ;;  %v2365_v35 = vrot.slane %v2363_v18, 1  ;;  %v4416_v54 = vld [vmem:[%s6595_s4 + $0x1c] sm:$0xf]  ;;  %v4656_v6 = vld [vmem:[#allocation2 + $0x54] sm:$0xf0] }
 0x378   : > { %v2342_v62 = vor.u32 %v2341_v5, %v2337_v4  ;;  %v2475_v59 = vrot.slane %v4655_v13, 1  ;;  %v2196_v4 = vld [vmem:[#allocation2 + $0x50] sm:$0x1]  ;;  %v4657_v41 = vld [vmem:[#allocation2 + $0x54] sm:$0xe] }
 0x379   : > { %3146 = vmatpush.bf16.msrb.mxu1 %v4117_v53  ;;  %v2368_v25 = vshll.u32 %v2295_v57, 16  ;;  %v2366_v49 = vor.u32 %v2365_v35, %v2361_v15  ;;  %v2286_v0 = vunpack.c.l.b16 %v2196_v4  ;;  %v4482_v39 = vld [vmem:[%s6595_s4 + $0x22c] sm:$0xf]  ;;  %v4318_v47 = vld [vmem:[%s6595_s4 + $0x234] sm:$0xf0]  ;;  %v4658_v15 = vor.u32 %v4657_v41, %v4656_v6 }
 0x37a   : > { %3201 = vmatpush.bf16.msrb.mxu2 %v4213_v14  ;;  %v2284_v14 = vunpack.c.l.b16 %v2194_v56  ;;  %v6047_v53 = vsel %vm453_vm0, %v2342_v62, %v2346_v40  ;;  %v6100_v62 = vld [vmem:[#allocation2 + $0x48] sm:$0xff]   ;;  %v4440_v40 = vld [vmem:[%s6595_s4 + $0xdc] sm:$0xf]  ;;  %v4321_v1 = vor.u32 %v4482_v39, %v4318_v47  ;;  %v4306_v37 = vld [vmem:[%s6595_s4 + $0x21c] sm:$0xf0] }
 0x37b   : > { %v2370_v22 = vrot.slane %v2368_v25, 1  ;;  %v2296_v56 = vpack.c.b16 %v2286_v0, %v2286_v0  ;;  %v4153_v30 = vor.u32 %v4440_v40, %v4150_v60  ;;  %v4476_v13 = vld [vmem:[%s6595_s4 + $0x1fc] sm:$0xf]  ;;  %v2198_v4 = vld [vmem:[#allocation2 + $0x68] sm:$0x1]  ;;  %v6150_v40 = vld [vmem:[#allocation2 + $0x60] sm:$0xff]  }
 0x37c   : > { %v2294_v58 = vpack.c.b16 %v2284_v14, %v2284_v14  ;;  %v2375_v14 = vshll.u32 %v6100_v62, 16  ;;  %3255 = vmatpush.bf16.msra.mxu3 %v4321_v1  ;;  %v2288_v60 = vunpack.c.l.b16 %v2198_v4  ;;  %v4470_v6 = vld [vmem:[%s6595_s4 + $0x1cc] sm:$0xf]  ;;  %v4467_v47 = vld [vmem:[%s6595_s4 + $0x1b4] sm:$0xf] }
 0x37d   : > { %3147 = vmatpush.bf16.msrb.mxu1 %v4105_v11  ;;  %v4078_v11 = vld [vmem:[%s6595_s4 + $0x54] sm:$0xf0]  ;;  %v6095_v5 = vsel %vm453_vm0, %v2366_v49, %v2370_v22  ;;  %v2380_v36 = vshll.u32 %v2296_v56, 16  ;;  %v2479_v2 = vrot.slane %v2296_v56, 1  ;;  %v4294_v49 = vld [vmem:[%s6595_s4 + $0x204] sm:$0xf0] }
 0x37e   : > { %3202 = vmatpush.bf16.msrb.mxu2 %v4201_v28  ;;  %v4177_v28 = vor.u32 %v4446_v19, %v4174_v48  ;;  %v4081_v42 = vor.u32 %v4422_v55, %v4078_v11  ;;  %v2356_v32 = vshll.u32 %v2294_v58, 16  ;;  %v2473_v21 = vrot.slane %v2294_v58, 1  ;;  %v4054_v58 = vld [vmem:[%s6595_s4 + $0x24] sm:$0xf0]  ;;  %v4558_v19 = vld [vmem:[#allocation2 + $0x48] sm:$0xf0] }
 0x37f   : > { %v4559_v48 = vld [vmem:[#allocation2 + $0x48] sm:$0xe]  ;;  %v4057_v55 = vor.u32 %v4416_v54, %v4054_v58  ;;  %v2377_v11 = vrot.slane %v2375_v14, 1  ;;  %v4297_v0 = vor.u32 %v4476_v13, %v4294_v49  ;;  %v4437_v54 = vld [vmem:[%s6595_s4 + $0xc4] sm:$0xf] }
 0x380   : > { %v2358_v63 = vrot.slane %v2356_v32, 1  ;;  %v6075_v17 = vsel %vm610_vm1, %v2472_v8, %v2473_v21  ;;  %v4560_v50 = vor.u32 %v4559_v48, %v4558_v19  ;;  %v2382_v32 = vrot.slane %v2380_v36, 1  ;;  %v4138_v56 = vld [vmem:[%s6595_s4 + $0xcc] sm:$0xf0]  ;;  %v4473_v14 = vld [vmem:[%s6595_s4 + $0x1e4] sm:$0xf] }
 0x381   : > { %3148 = vmatpush.bf16.msrb.mxu1 %v4093_v3  ;;  %v2476_v3 = vrot.slane %v2295_v57, 1  ;;  %v4141_v19 = vor.u32 %v4437_v54, %v4138_v56  ;;  %v4282_v48 = vld [vmem:[%s6595_s4 + $0x1ec] sm:$0xf0]  ;;  %v4413_v36 = vld [vmem:[%s6595_s4 + $0x4] sm:$0xf] }
 0x382   : > { %3203 = vmatpush.bf16.msrb.mxu2 %v4189_v9  ;;  %v6072_v9 = vsel %vm453_vm0, %v2354_v43, %v2358_v63  ;;  %v2478_v16 = vrot.slane %v4560_v50, 1  ;;  %v2197_v43 = vld [vmem:[#allocation2 + $0x5c] sm:$0x1]  ;;  %v4042_v50 = vld [vmem:[%s6595_s4 + $0xc] sm:$0xf0] }
 0x383   : > { %v6098_v31 = vsel %vm610_vm1, %v2475_v59, %v2476_v3  ;;  %v2287_v21 = vunpack.c.l.b16 %v2197_v43  ;;  %v2481_v59 = vrot.slane %v4658_v15, 1  ;;  %v4464_v15 = vld [vmem:[%s6595_s4 + $0x19c] sm:$0xf]  ;;  %v2199_v49 = vld [vmem:[#allocation2 + $0x74] sm:$0x1] }
 0x384   : > { %2993 = vmatmul.bf16.gmra.mxu1 %v5957_v44  ;;  %v6125_v8 = vsel %vm610_vm1, %v2478_v16, %v2479_v2  ;;  %v4045_v16 = vor.u32 %v4413_v36, %v4042_v50  ;;  %v4270_v2 = vld [vmem:[%s6595_s4 + $0x1d4] sm:$0xf0]  ;;  %v4234_v4 = vld [vmem:[%s6595_s4 + $0x18c] sm:$0xf0]  ;;  %v4660_v56 = vld [vmem:[#allocation2 + $0x6c] sm:$0xe] }
 0x385   : > { %3048 = vmatmul.bf16.gmra.mxu2 %v6007_v61  ;;  %3149 = vmatpush.bf16.msrb.mxu1 %v4081_v42  ;;  %v6119_v42 = vld [vmem:[#allocation2 + $0x54] sm:$0xff]   ;;  %v2297_v45 = vpack.c.b16 %v2287_v21, %v2287_v21  ;;  %v4273_v43 = vor.u32 %v4470_v6, %v4270_v2  ;;  %v2397_v21 = vshrl.u32 %v6150_v40, 16 }
 0x386   : > { %3103 = vmatmul.bf16.gmra.mxu3 %v6010_v26  ;;  %3204 = vmatpush.bf16.msrb.mxu2 %v4177_v28  ;;  %v2373_v28 = vshrl.u32 %v6100_v62, 16  ;;  %v2387_v10 = vshll.u32 %v6119_v42, 16  ;;  %v2385_v57 = vshrl.u32 %v6119_v42, 16 }
 0x387   : > { %v2482_v3 = vrot.slane %v2297_v45, 1 }
 0x388   : > { %v2378_v7 = vor.u32 %v2377_v11, %v2373_v28  ;;  %v2389_v18 = vrot.slane %v2387_v10, 1  ;;  %v2399_v28 = vshll.u32 %v6150_v40, 16  ;;  %v2298_v11 = vpack.c.b16 %v2288_v60, %v2288_v60 }
 0x389   : > { %3150 = vmatpush.bf16.msrb.mxu1 %v4069_v34  ;;  %v2392_v34 = vshll.u32 %v2297_v45, 16  ;;  %v6165_v58 = vsel %vm610_vm1, %v2481_v59, %v2482_v3  ;;  %v4258_v45 = vld [vmem:[%s6595_s4 + $0x1bc] sm:$0xf0]  ;;  %v4461_v3 = vld [vmem:[%s6595_s4 + $0x184] sm:$0xf]  ;;  %v2289_v60 = vunpack.c.l.b16 %v2199_v49 }
 0x38a   : > { %3205 = vmatpush.bf16.msrb.mxu2 %v4165_v29  ;;  %v6122_v63 = vsel %vm453_vm0, %v2378_v7, %v2382_v32  ;;  %v4479_v29 = vld [vmem:[%s6595_s4 + $0x214] sm:$0xf]  ;;  %v2390_v25 = vor.u32 %v2389_v18, %v2385_v57  ;;  %v4561_v7 = vld [vmem:[#allocation2 + $0x60] sm:$0xf0]  ;;  %v4562_v32 = vld [vmem:[#allocation2 + $0x60] sm:$0xe]  ;;  %v4261_v1 = vor.u32 %v4467_v47, %v4258_v45  ;;  %v4237_v54 = vor.u32 %v4461_v3, %v4234_v4 }
 0x38b   : > { %v4309_v35 = vor.u32 %v4479_v29, %v4306_v37  ;;  %v2394_v22 = vrot.slane %v2392_v34, 1  ;;  %v2401_v41 = vrot.slane %v2399_v28, 1  ;;  %v2404_v10 = vshll.u32 %v2298_v11, 16  ;;  %v6193_v57 = vld [vmem:[#allocation2 + $0x6c] sm:$0xff]   ;;  %v4312_v4 = vld [vmem:[%s6595_s4 + $0x218] sm:$0xf] }
 0x38c   : > { %v4563_v39 = vor.u32 %v4562_v32, %v4561_v7  ;;  %v4659_v18 = vld [vmem:[#allocation2 + $0x6c] sm:$0xf0]  ;;  %v2409_v7 = vshrl.u32 %v6193_v57, 16 }
 0x38d   : > { %3151 = vmatpush.bf16.msrb.mxu1 %v4057_v55  ;;  %3256 = vmatpush.bf16.msra.mxu3 %v4309_v35  ;;  %v4285_v55 = vor.u32 %v4473_v14, %v4282_v48  ;;  %v2402_v29 = vor.u32 %v2401_v41, %v2397_v21  ;;  %v2406_v37 = vrot.slane %v2404_v10, 1  ;;  %v4246_v35 = vld [vmem:[%s6595_s4 + $0x1a4] sm:$0xf0]  ;;  %v4324_v14 = vld [vmem:[%s6595_s4 + $0x230] sm:$0xf]  ;;  %v2299_v48 = vpack.c.b16 %v2289_v60, %v2289_v60 }
 0x38e   : > { %3206 = vmatpush.bf16.msrb.mxu2 %v4153_v30  ;;  %v6162_v30 = vsel %vm453_vm0, %v2390_v25, %v2394_v22  ;;  %v2484_v34 = vrot.slane %v4563_v39, 1  ;;  %v2485_v25 = vrot.slane %v2298_v11, 1  ;;  %v4249_v13 = vor.u32 %v4464_v15, %v4246_v35  ;;  %v4228_v32 = vld [vmem:[%s6595_s4 + $0x170] sm:$0xf]  ;;  %v4481_v60 = vld [vmem:[%s6595_s4 + $0x220] sm:$0xf0] }
 0x38f   : > { %v6202_v59 = vsel %vm453_vm0, %v2402_v29, %v2406_v37  ;;  %v4661_v21 = vor.u32 %v4660_v56, %v4659_v18 }
 0x391   : > { %3257 = vmatpush.bf16.msra.mxu3 %v4297_v0  ;;  %3152 = vmatpush.bf16.msrb.mxu1 %v4045_v16  ;;  %v6211_v0 = vsel %vm610_vm1, %v2484_v34, %v2485_v25  ;;  %v4460_v16 = vld [vmem:[%s6595_s4 + $0x178] sm:$0xf0]  ;;  %v2487_v45 = vrot.slane %v4661_v21, 1  ;;  %v4478_v21 = vld [vmem:[%s6595_s4 + $0x208] sm:$0xf0] }
 0x392   : > { %3207 = vmatpush.bf16.msrb.mxu2 %v4141_v19  ;;  %v4484_v19 = vld [vmem:[%s6595_s4 + $0x238] sm:$0xf0]  ;;  %v4229_v41 = vor.u32 %v4460_v16, %v4228_v32 }
 0x393   : > { %v4325_v28 = vor.u32 %v4484_v19, %v4324_v14  ;;  %v4216_v14 = vld [vmem:[%s6595_s4 + $0x158] sm:$0xf]  ;;  %v4457_v19 = vld [vmem:[%s6595_s4 + $0x160] sm:$0xf0] }
 0x394   : > { %2998 = vmatmul.bf16.gmra.mxu1 %v6012_v27 }
 0x395   : > { %3053 = vmatmul.bf16.gmra.mxu2 %v6028_v12  ;;  %3258 = vmatpush.bf16.msra.mxu3 %v4285_v55  ;;  %v2411_v55 = vshll.u32 %v6193_v57, 16 }
 0x396   : > { %3108 = vmatmul.bf16.gmra.mxu3 %v6031_v52  ;;  %3420 = vmatpush.bf16.msra.mxu2 %v4325_v28 }
 0x397   : > { %v2413_v2 = vrot.slane %v2411_v55, 1  ;;  %3365 = vmatpush.bf16.msra.mxu1 %v4229_v41 }
 0x399   : > { %3259 = vmatpush.bf16.msra.mxu3 %v4273_v43  ;;  %v2416_v43 = vshll.u32 %v2299_v48, 16  ;;  %v2414_v39 = vor.u32 %v2413_v2, %v2409_v7 }
 0x39b   : > { %v2418_v47 = vrot.slane %v2416_v43, 1  ;;  %v4300_v43 = vld [vmem:[%s6595_s4 + $0x200] sm:$0xf] }
 0x39c   : > { %v4301_v41 = vor.u32 %v4478_v21, %v4300_v43 }
 0x39d   : > { %3260 = vmatpush.bf16.msra.mxu3 %v4261_v1  ;;  %v2488_v1 = vrot.slane %v2299_v48, 1  ;;  %v6233_v35 = vsel %vm453_vm0, %v2414_v39, %v2418_v47  ;;  %v4217_v48 = vor.u32 %v4457_v19, %v4216_v14  ;;  %v4288_v19 = vld [vmem:[%s6595_s4 + $0x1e8] sm:$0xf] }
 0x39f   : > { %v6236_v25 = vsel %vm610_vm1, %v2487_v45, %v2488_v1  ;;  %3366 = vmatpush.bf16.msra.mxu1 %v4217_v48  ;;  %v4204_v1 = vld [vmem:[%s6595_s4 + $0x140] sm:$0xf]  ;;  %v4475_v48 = vld [vmem:[%s6595_s4 + $0x1f0] sm:$0xf0] }
 0x3a1   : > { %3261 = vmatpush.bf16.msra.mxu3 %v4249_v13 }
 0x3a4   : > { %3003 = vmatmul.bf16.gmra.mxu1 %v6025_v51 }
 0x3a5   : > { %3058 = vmatmul.bf16.gmra.mxu2 %v6047_v53  ;;  %3262 = vmatpush.bf16.msra.mxu3 %v4237_v54  ;;  %v4313_v54 = vor.u32 %v4481_v60, %v4312_v4 }
 0x3a6   : > { %3113 = vmatmul.bf16.gmra.mxu3 %v6050_v46 }
 0x3a7   : > { %3421 = vmatpush.bf16.msra.mxu2 %v4313_v54 }
 0x3ab   : > { %3422 = vmatpush.bf16.msra.mxu2 %v4301_v41 }
 0x3b4   : > { %3008 = vmatmul.bf16.gmra.mxu1 %v6044_v33 }
 0x3b5   : > { %3063 = vmatmul.bf16.gmra.mxu2 %v6072_v9 }
 0x3b6   : > { %3118 = vmatmul.bf16.gmra.mxu3 %v6075_v17 }
 0x3c4   : > { %3013 = vmatmul.bf16.gmra.mxu1 %v6069_v24 }
 0x3c5   : > { %3068 = vmatmul.bf16.gmra.mxu2 %v6095_v5 }
 0x3c6   : > { %3123 = vmatmul.bf16.gmra.mxu3 %v6098_v31 }
 0x3d4   : > { %3018 = vmatmul.bf16.gmra.mxu1 %v6100_v62 }
 0x3d5   : > { %3073 = vmatmul.bf16.gmra.mxu2 %v6122_v63 }
 0x3d6   : > { %3128 = vmatmul.bf16.gmra.mxu3 %v6125_v8 }
 0x3e4   : > { %3023 = vmatmul.bf16.gmra.mxu1 %v6119_v42 }
 0x3e5   : > { %3078 = vmatmul.bf16.gmra.mxu2 %v6162_v30 }
 0x3e6   : > { %3133 = vmatmul.bf16.gmra.mxu3 %v6165_v58 }
 0x3f1   : > { %v2989_v22 = vpop.f32.mrf.mxu1 }
 0x3f4   : > { %3028 = vmatmul.bf16.gmra.mxu1 %v6150_v40 }
 0x3f5   : > { %3083 = vmatmul.bf16.gmra.mxu2 %v6202_v59 }
 0x3f6   : > { %3138 = vmatmul.bf16.gmra.mxu3 %v6211_v0 }
 0x3f8   : > { %v3044_v11 = vpop.f32.mrf.mxu2 }
 0x3f9   : > { %v3099_v36 = vpop.f32.mrf.mxu3  ;;  %v3045_v50 = vadd.f32 %v3044_v11, %v2989_v22  ;;  %v2991_v6 = vpop.f32.mrf.mxu1 }
 0x3fb   : > { %v6230_v10 = vadd.f32 %v3099_v36, %v3045_v50 }
 0x400   : > { %v3046_v29 = vpop.f32.mrf.mxu2 }
 0x401   : > { %v3101_v37 = vpop.f32.mrf.mxu3  ;;  %v3047_v34 = vadd.f32 %v3046_v29, %v2991_v6  ;;  %v2994_v15 = vpop.f32.mrf.mxu1  ;;  %v4454_v29 = vld [vmem:[%s6595_s4 + $0x148] sm:$0xf0] }
 0x403   : > { %v6238_v13 = vadd.f32 %v3101_v37, %v3047_v34  ;;  %v4205_v37 = vor.u32 %v4454_v29, %v4204_v1  ;;  %v4276_v1 = vld [vmem:[%s6595_s4 + $0x1d0] sm:$0xf]  ;;  %v4472_v29 = vld [vmem:[%s6595_s4 + $0x1d8] sm:$0xf0] }
 0x404   : > { %3031 = vmatmul.bf16.gmra.mxu1 %v6193_v57 }
 0x405   : > { %3086 = vmatmul.bf16.gmra.mxu2 %v6233_v35  ;;  %3367 = vmatpush.bf16.msra.mxu1 %v4205_v37  ;;  %v4277_v37 = vor.u32 %v4472_v29, %v4276_v1 }
 0x406   : > { %3141 = vmatmul.bf16.gmra.mxu3 %v6236_v25 }
 0x408   : > { %v3049_v18 = vpop.f32.mrf.mxu2 }
 0x409   : > { %v3104_v49 = vpop.f32.mrf.mxu3  ;;  %v3050_v22 = vadd.f32 %v3049_v18, %v2994_v15  ;;  %v2996_v3 = vpop.f32.mrf.mxu1 }
 0x40b   : > { %v6249_v56 = vadd.f32 %v3104_v49, %v3050_v22 }
 0x410   : > { %v3051_v55 = vpop.f32.mrf.mxu2 }
 0x411   : > { %v3106_v28 = vpop.f32.mrf.mxu3  ;;  %v3052_v11 = vadd.f32 %v3051_v55, %v2996_v3  ;;  %v2999_v36 = vpop.f32.mrf.mxu1  ;;  %v4289_v55 = vor.u32 %v4475_v48, %v4288_v19 }
 0x413   : > { %v6257_v50 = vadd.f32 %v3106_v28, %v3052_v11  ;;  %3423 = vmatpush.bf16.msra.mxu2 %v4289_v55  ;;  %v4192_v11 = vld [vmem:[%s6595_s4 + $0x128] sm:$0xf] }
 0x414   : > { %3153 = vmatmul.bf16.vlgmr.msrb.gmra.mxu1 %v5917_v38 }
 0x415   : > { %3208 = vmatmul.bf16.vlgmr.msrb.gmra.mxu2 %v5984_v23 }
 0x416   : > { %3263 = vmatmul.bf16.vlgmr.msra.gmra.mxu3 %v5987_v20 }
 0x417   : > { %3424 = vmatpush.bf16.msra.mxu2 %v4277_v37 }
 0x418   : > { %v3054_v6 = vpop.f32.mrf.mxu2 }
 0x419   : > { %v3109_v7 = vpop.f32.mrf.mxu3  ;;  %v3055_v32 = vadd.f32 %v3054_v6, %v2999_v36  ;;  %v3001_v16 = vpop.f32.mrf.mxu1  ;;  %v4451_v36 = vld [vmem:[%s6595_s4 + $0x130] sm:$0xf0] }
 0x41a   : > { %v4193_v6 = vor.u32 %v4451_v36, %v4192_v11 }
 0x41b   : > { %v6262_v2 = vadd.f32 %v3109_v7, %v3055_v32 }
 0x41c   : > { %3368 = vmatpush.bf16.msra.mxu1 %v4193_v6 }
 0x420   : > { %v3056_v38 = vpop.f32.mrf.mxu2 }
 0x421   : > { %v3111_v39 = vpop.f32.mrf.mxu3  ;;  %v3057_v47 = vadd.f32 %v3056_v38, %v3001_v16  ;;  %v3004_v45 = vpop.f32.mrf.mxu1 }
 0x423   : > { %v6276_v34 = vadd.f32 %v3111_v39, %v3057_v47 }
 0x424   : > { %3156 = vmatmul.bf16.gmra.mxu1 %v5957_v44 }
 0x425   : > { %3211 = vmatmul.bf16.gmra.mxu2 %v6007_v61 }
 0x426   : > { %3266 = vmatmul.bf16.gmra.mxu3 %v6010_v26 }
 0x428   : > { %v3059_v15 = vpop.f32.mrf.mxu2 }
 0x429   : > { %v3114_v18 = vpop.f32.mrf.mxu3  ;;  %v3060_v49 = vadd.f32 %v3059_v15, %v3004_v45  ;;  %v3006_v22 = vpop.f32.mrf.mxu1 }
 0x42b   : > { %v6281_v3 = vadd.f32 %v3114_v18, %v3060_v49 }
 0x430   : > { %v3061_v4 = vpop.f32.mrf.mxu2 }
 0x431   : > { %v3116_v60 = vpop.f32.mrf.mxu3  ;;  %v3062_v54 = vadd.f32 %v3061_v4, %v3006_v22  ;;  %v3009_v14 = vpop.f32.mrf.mxu1  ;;  %v4180_v4 = vld [vmem:[%s6595_s4 + $0x110] sm:$0xf] }
 0x433   : > { %v6289_v28 = vadd.f32 %v3116_v60, %v3062_v54  ;;  %v4448_v60 = vld [vmem:[%s6595_s4 + $0x118] sm:$0xf0] }
 0x434   : > { %3161 = vmatmul.bf16.gmra.mxu1 %v6012_v27  ;;  %v4181_v54 = vor.u32 %v4448_v60, %v4180_v4 }
 0x435   : > { %3216 = vmatmul.bf16.gmra.mxu2 %v6028_v12 }
 0x436   : > { %3271 = vmatmul.bf16.gmra.mxu3 %v6031_v52  ;;  %3369 = vmatpush.bf16.msra.mxu1 %v4181_v54 }
 0x438   : > { %v3064_v7 = vpop.f32.mrf.mxu2 }
 0x439   : > { %v3119_v32 = vpop.f32.mrf.mxu3  ;;  %v3065_v16 = vadd.f32 %v3064_v7, %v3009_v14  ;;  %v3011_v43 = vpop.f32.mrf.mxu1 }
 0x43b   : > { %v6300_v21 = vadd.f32 %v3119_v32, %v3065_v16  ;;  %v4264_v32 = vld [vmem:[%s6595_s4 + $0x1b8] sm:$0xf]  ;;  %v4469_v16 = vld [vmem:[%s6595_s4 + $0x1c0] sm:$0xf0] }
 0x440   : > { %v3066_v41 = vpop.f32.mrf.mxu2 }
 0x441   : > { %v3121_v38 = vpop.f32.mrf.mxu3  ;;  %v3067_v39 = vadd.f32 %v3066_v41, %v3011_v43  ;;  %v3014_v47 = vpop.f32.mrf.mxu1 }
 0x443   : > { %v6302_v45 = vadd.f32 %v3121_v38, %v3067_v39  ;;  %v4265_v38 = vor.u32 %v4469_v16, %v4264_v32  ;;  %v4168_v39 = vld [vmem:[%s6595_s4 + $0xf8] sm:$0xf]  ;;  %v4436_v32 = vld [vmem:[%s6595_s4 + $0xb8] sm:$0xf0] }
 0x444   : > { %3166 = vmatmul.bf16.gmra.mxu1 %v6025_v51 }
 0x445   : > { %3221 = vmatmul.bf16.gmra.mxu2 %v6047_v53 }
 0x446   : > { %3276 = vmatmul.bf16.gmra.mxu3 %v6050_v46  ;;  %3425 = vmatpush.bf16.msra.mxu2 %v4265_v38  ;;  %v4442_v38 = vld [vmem:[%s6595_s4 + $0xe8] sm:$0xf0] }
 0x448   : > { %v3069_v15 = vpop.f32.mrf.mxu2 }
 0x449   : > { %v3124_v18 = vpop.f32.mrf.mxu3  ;;  %v3070_v49 = vadd.f32 %v3069_v15, %v3014_v47  ;;  %v3016_v22 = vpop.f32.mrf.mxu1  ;;  %v4445_v47 = vld [vmem:[%s6595_s4 + $0x100] sm:$0xf0] }
 0x44a   : > { %v4169_v1 = vor.u32 %v4445_v47, %v4168_v39 }
 0x44b   : > { %v6319_v14 = vadd.f32 %v3124_v18, %v3070_v49 }
 0x44c   : > { %3370 = vmatpush.bf16.msra.mxu1 %v4169_v1 }
 0x450   : > { %v3071_v19 = vpop.f32.mrf.mxu2 }
 0x451   : > { %v3126_v48 = vpop.f32.mrf.mxu3  ;;  %v3072_v55 = vadd.f32 %v3071_v19, %v3016_v22  ;;  %v3019_v11 = vpop.f32.mrf.mxu1 }
 0x453   : > { %v6321_v36 = vadd.f32 %v3126_v48, %v3072_v55  ;;  %v4252_v48 = vld [vmem:[%s6595_s4 + $0x1a0] sm:$0xf]  ;;  %v4466_v55 = vld [vmem:[%s6595_s4 + $0x1a8] sm:$0xf0] }
 0x454   : > { %3171 = vmatmul.bf16.gmra.mxu1 %v6044_v33 }
 0x455   : > { %3226 = vmatmul.bf16.gmra.mxu2 %v6072_v9 }
 0x456   : > { %3281 = vmatmul.bf16.gmra.mxu3 %v6075_v17 }
 0x458   : > { %v3074_v6 = vpop.f32.mrf.mxu2 }
 0x459   : > { %v3129_v7 = vpop.f32.mrf.mxu3  ;;  %v3075_v43 = vadd.f32 %v3074_v6, %v3019_v11  ;;  %v3021_v41 = vpop.f32.mrf.mxu1  ;;  %v4253_v11 = vor.u32 %v4466_v55, %v4252_v48 }
 0x45b   : > { %v6338_v29 = vadd.f32 %v3129_v7, %v3075_v43  ;;  %3426 = vmatpush.bf16.msra.mxu2 %v4253_v11  ;;  %v4132_v7 = vld [vmem:[%s6595_s4 + $0xb0] sm:$0xf] }
 0x45c   : > { %v4133_v39 = vor.u32 %v4436_v32, %v4132_v7  ;;  %v4096_v7 = vld [vmem:[%s6595_s4 + $0x68] sm:$0xf]  ;;  %v4427_v32 = vld [vmem:[%s6595_s4 + $0x70] sm:$0xf0] }
 0x45e   : > { %3310 = vmatpush.bf16.msra.mxu0 %v4133_v39 }
 0x460   : > { %v3076_v37 = vpop.f32.mrf.mxu2 }
 0x461   : > { %v3131_v15 = vpop.f32.mrf.mxu3  ;;  %v3077_v18 = vadd.f32 %v3076_v37, %v3021_v41  ;;  %v3024_v49 = vpop.f32.mrf.mxu1  ;;  %v4156_v41 = vld [vmem:[%s6595_s4 + $0xe0] sm:$0xf] }
 0x462   : > { %v4157_v37 = vor.u32 %v4442_v38, %v4156_v41  ;;  %v4424_v41 = vld [vmem:[%s6595_s4 + $0x58] sm:$0xf0] }
 0x463   : > { %v6340_v22 = vadd.f32 %v3131_v15, %v3077_v18  ;;  %v4120_v18 = vld [vmem:[%s6595_s4 + $0x98] sm:$0xf] }
 0x464   : > { %3176 = vmatmul.bf16.gmra.mxu1 %v6069_v24 }
 0x465   : > { %3231 = vmatmul.bf16.gmra.mxu2 %v6095_v5  ;;  %3371 = vmatpush.bf16.msra.mxu1 %v4157_v37 }
 0x466   : > { %3286 = vmatmul.bf16.gmra.mxu3 %v6098_v31 }
 0x468   : > { %v3079_v4 = vpop.f32.mrf.mxu2 }
 0x469   : > { %v3134_v60 = vpop.f32.mrf.mxu3  ;;  %v3080_v54 = vadd.f32 %v3079_v4, %v3024_v49  ;;  %v3026_v19 = vpop.f32.mrf.mxu1  ;;  %v4433_v49 = vld [vmem:[%s6595_s4 + $0xa0] sm:$0xf0] }
 0x46a   : > { %v4121_v4 = vor.u32 %v4433_v49, %v4120_v18 }
 0x46b   : > { %v6351_v6 = vadd.f32 %v3134_v60, %v3080_v54  ;;  %v4108_v60 = vld [vmem:[%s6595_s4 + $0x80] sm:$0xf]  ;;  %v4430_v54 = vld [vmem:[%s6595_s4 + $0x88] sm:$0xf0] }
 0x46c   : > { %3311 = vmatpush.bf16.msra.mxu0 %v4121_v4  ;;  %v4109_v55 = vor.u32 %v4430_v54, %v4108_v60  ;;  %v4072_v4 = vld [vmem:[%s6595_s4 + $0x38] sm:$0xf]  ;;  %v4421_v60 = vld [vmem:[%s6595_s4 + $0x40] sm:$0xf0] }
 0x46d   : > { %v4073_v54 = vor.u32 %v4421_v60, %v4072_v4 }
 0x470   : > { %v3081_v16 = vpop.f32.mrf.mxu2  ;;  %3312 = vmatpush.bf16.msra.mxu0 %v4109_v55 }
 0x471   : > { %v3136_v43 = vpop.f32.mrf.mxu3  ;;  %v3082_v47 = vadd.f32 %v3081_v16, %v3026_v19  ;;  %v3029_v1 = vpop.f32.mrf.mxu1  ;;  %v4097_v16 = vor.u32 %v4427_v32, %v4096_v7  ;;  %v4418_v7 = vld [vmem:[%s6595_s4 + $0x28] sm:$0xf0] }
 0x472   : > { %v4463_v1 = vld [vmem:[%s6595_s4 + $0x190] sm:$0xf0] }
 0x473   : > { %v6365_v15 = vadd.f32 %v3136_v43, %v3082_v47  ;;  %v4084_v43 = vld [vmem:[%s6595_s4 + $0x50] sm:$0xf]  ;;  %v4240_v47 = vld [vmem:[%s6595_s4 + $0x188] sm:$0xf] }
 0x474   : > { %3181 = vmatmul.bf16.gmra.mxu1 %v6100_v62  ;;  %3313 = vmatpush.bf16.msra.mxu0 %v4097_v16  ;;  %v4085_v37 = vor.u32 %v4424_v41, %v4084_v43  ;;  %v4241_v49 = vor.u32 %v4463_v1, %v4240_v47 }
 0x475   : > { %3236 = vmatmul.bf16.gmra.mxu2 %v6122_v63 }
 0x476   : > { %3291 = vmatmul.bf16.gmra.mxu3 %v6125_v8  ;;  %3427 = vmatpush.bf16.msra.mxu2 %v4241_v49  ;;  %v4646_v49 = vld [vmem:[#allocation2] sm:$0xff]  }
 0x478   : > { %v3084_v19 = vpop.f32.mrf.mxu2  ;;  %3314 = vmatpush.bf16.msra.mxu0 %v4085_v37 }
 0x479   : > { %v3139_v48 = vpop.f32.mrf.mxu3  ;;  %v3030_v11 = vpop.f32.mrf.mxu1  ;;  %v4144_v19 = vld [vmem:[%s6595_s4 + $0xc8] sm:$0xf] }
 0x47a   : > { %v4439_v48 = vld [vmem:[%s6595_s4 + $0xd0] sm:$0xf0]  ;;  %v4060_v11 = vld [vmem:[%s6595_s4 + $0x20] sm:$0xf] }
 0x47b   : > { %v4145_v55 = vor.u32 %v4439_v48, %v4144_v19  ;;  %v4061_v43 = vor.u32 %v4418_v7, %v4060_v11 }
 0x47c   : > { %3315 = vmatpush.bf16.msra.mxu0 %v4073_v54 }
 0x47d   : > { %3372 = vmatpush.bf16.msra.mxu1 %v4145_v55 }
 0x480   : > { %v3085_v38 = vpop.f32.mrf.mxu2  ;;  %3316 = vmatpush.bf16.msra.mxu0 %v4061_v43 }
 0x481   : > { %v3140_v39 = vpop.f32.mrf.mxu3  ;;  %v3032_v18 = vpop.f32.mrf.mxu1  ;;  %v4048_v38 = vld [vmem:[%s6595_s4 + $0x8] sm:$0xf] }
 0x482   : > { %v4415_v39 = vld [vmem:[%s6595_s4 + $0x10] sm:$0xf0] }
 0x483   : > { %v4049_v47 = vor.u32 %v4415_v39, %v4048_v38 }
 0x484   : > { %3186 = vmatmul.bf16.gmra.mxu1 %v6119_v42 }
 0x485   : > { %3241 = vmatmul.bf16.gmra.mxu2 %v6162_v30  ;;  %3317 = vmatpush.bf16.msra.mxu0 %v4049_v47 }
 0x486   : > { %3296 = vmatmul.bf16.gmra.mxu3 %v6165_v58 }
 0x488   : > { %v3087_v32 = vpop.f32.mrf.mxu2  ;;  %3318 = vmatmul.bf16.vlgmr.msra.gmra.mxu0 %v4646_v49 }
 0x489   : > { %v3142_v16 = vpop.f32.mrf.mxu3  ;;  %v3033_v41 = vpop.f32.mrf.mxu1 }
 0x490   : > { %v3088_v1 = vpop.f32.mrf.mxu2 }
 0x491   : > { %v3143_v37 = vpop.f32.mrf.mxu3  ;;  %v3154_v18 = vpop.f32.mrf.mxu1 }
 0x494   : > { %3191 = vmatmul.bf16.gmra.mxu1 %v6150_v40 }
 0x495   : > { %3246 = vmatmul.bf16.gmra.mxu2 %v6202_v59 }
 0x496   : > { %3301 = vmatmul.bf16.gmra.mxu3 %v6211_v0 }
 0x498   : > { %v3209_v4 = vpop.f32.mrf.mxu2  ;;  %3321 = vmatmul.bf16.gmra.mxu0 %v5957_v44 }
 0x499   : > { %v3264_v60 = vpop.f32.mrf.mxu3  ;;  %v3155_v54 = vpop.f32.mrf.mxu1 }
 0x4a0   : > { %v3210_v19 = vpop.f32.mrf.mxu2 }
 0x4a1   : > { %v3265_v48 = vpop.f32.mrf.mxu3  ;;  %v3157_v55 = vpop.f32.mrf.mxu1 }
 0x4a4   : > { %3196 = vmatmul.bf16.gmra.mxu1 %v6193_v57 }
 0x4a5   : > { %3251 = vmatmul.bf16.gmra.mxu2 %v6233_v35 }
 0x4a6   : > { %3306 = vmatmul.bf16.gmra.mxu3 %v6236_v25 }
 0x4a8   : > { %v3212_v11 = vpop.f32.mrf.mxu2  ;;  %3324 = vmatmul.bf16.gmra.mxu0 %v6012_v27 }
 0x4a9   : > { %v3267_v7 = vpop.f32.mrf.mxu3  ;;  %v3213_v32 = vadd.f32 %v3212_v11, %v3157_v55  ;;  %v3159_v16 = vpop.f32.mrf.mxu1 }
 0x4ab   : > { %v3268_v43 = vadd.f32 %v3267_v7, %v3213_v32 }
 0x4ad   : > { %v6435_v41 = vadd.f32 %v3268_v43, %v6230_v10 }
 0x4b0   : > { %v3214_v38 = vpop.f32.mrf.mxu2 }
 0x4b1   : > { %v3269_v39 = vpop.f32.mrf.mxu3  ;;  %v3215_v47 = vadd.f32 %v3214_v38, %v3159_v16  ;;  %v3162_v1 = vpop.f32.mrf.mxu1 }
 0x4b3   : > { %v3270_v44 = vadd.f32 %v3269_v39, %v3215_v47 }
 0x4b4   : > { %3373 = vmatmul.bf16.vlgmr.msra.gmra.mxu1 %v5984_v23 }
 0x4b5   : > { %v6440_v37 = vadd.f32 %v3270_v44, %v6238_v13  ;;  %3428 = vmatmul.bf16.vlgmr.msra.gmra.mxu2 %v5987_v20 }
 0x4b8   : > { %v3217_v18 = vpop.f32.mrf.mxu2  ;;  %3329 = vmatmul.bf16.gmra.mxu0 %v6025_v51 }
 0x4b9   : > { %v3272_v49 = vpop.f32.mrf.mxu3  ;;  %v3218_v4 = vadd.f32 %v3217_v18, %v3162_v1  ;;  %v3164_v60 = vpop.f32.mrf.mxu1 }
 0x4bb   : > { %v3273_v10 = vadd.f32 %v3272_v49, %v3218_v4 }
 0x4bd   : > { %v6444_v54 = vadd.f32 %v3273_v10, %v6249_v56 }
 0x4c0   : > { %v3219_v19 = vpop.f32.mrf.mxu2 }
 0x4c1   : > { %v3274_v48 = vpop.f32.mrf.mxu3  ;;  %v3220_v55 = vadd.f32 %v3219_v19, %v3164_v60  ;;  %v3167_v27 = vpop.f32.mrf.mxu1 }
 0x4c3   : > { %v3275_v23 = vadd.f32 %v3274_v48, %v3220_v55 }
 0x4c4   : > { %3376 = vmatmul.bf16.gmra.mxu1 %v6007_v61 }
 0x4c5   : > { %v6449_v13 = vadd.f32 %v3275_v23, %v6257_v50  ;;  %3431 = vmatmul.bf16.gmra.mxu2 %v6010_v26 }
 0x4c8   : > { %v3222_v20 = vpop.f32.mrf.mxu2  ;;  %3334 = vmatmul.bf16.gmra.mxu0 %v6044_v33 }
 0x4c9   : > { %v3277_v11 = vpop.f32.mrf.mxu3  ;;  %v3223_v7 = vadd.f32 %v3222_v20, %v3167_v27  ;;  %v3169_v32 = vpop.f32.mrf.mxu1 }
 0x4cb   : > { %v3278_v56 = vadd.f32 %v3277_v11, %v3223_v7 }
 0x4cd   : > { %v6453_v16 = vadd.f32 %v3278_v56, %v6262_v2 }
 0x4d0   : > { %v3224_v43 = vpop.f32.mrf.mxu2 }
 0x4d1   : > { %v3279_v38 = vpop.f32.mrf.mxu3  ;;  %v3225_v39 = vadd.f32 %v3224_v43, %v3169_v32  ;;  %v3172_v51 = vpop.f32.mrf.mxu1 }
 0x4d3   : > { %v3280_v61 = vadd.f32 %v3279_v38, %v3225_v39 }
 0x4d4   : > { %3379 = vmatmul.bf16.gmra.mxu1 %v6028_v12 }
 0x4d5   : > { %v6458_v50 = vadd.f32 %v3280_v61, %v6276_v34  ;;  %3434 = vmatmul.bf16.gmra.mxu2 %v6031_v52 }
 0x4d8   : > { %v3227_v26 = vpop.f32.mrf.mxu2  ;;  %3339 = vmatmul.bf16.gmra.mxu0 %v6069_v24 }
 0x4d9   : > { %v3282_v47 = vpop.f32.mrf.mxu3  ;;  %v3228_v1 = vadd.f32 %v3227_v26, %v3172_v51  ;;  %v3174_v44 = vpop.f32.mrf.mxu1 }
 0x4db   : > { %v3283_v2 = vadd.f32 %v3282_v47, %v3228_v1 }
 0x4dd   : > { %v6462_v18 = vadd.f32 %v3283_v2, %v6281_v3 }
 0x4e0   : > { %v3229_v49 = vpop.f32.mrf.mxu2 }
 0x4e1   : > { %v3284_v4 = vpop.f32.mrf.mxu3  ;;  %v3230_v60 = vadd.f32 %v3229_v49, %v3174_v44  ;;  %v3177_v33 = vpop.f32.mrf.mxu1 }
 0x4e3   : > { %v3285_v12 = vadd.f32 %v3284_v4, %v3230_v60 }
 0x4e4   : > { %3384 = vmatmul.bf16.gmra.mxu1 %v6047_v53 }
 0x4e5   : > { %v6467_v34 = vadd.f32 %v3285_v12, %v6289_v28  ;;  %3439 = vmatmul.bf16.gmra.mxu2 %v6050_v46 }
 0x4e8   : > { %v3232_v52 = vpop.f32.mrf.mxu2  ;;  %3344 = vmatmul.bf16.gmra.mxu0 %v6100_v62 }
 0x4e9   : > { %v3287_v10 = vpop.f32.mrf.mxu3  ;;  %v3233_v19 = vadd.f32 %v3232_v52, %v3177_v33  ;;  %v3179_v48 = vpop.f32.mrf.mxu1 }
 0x4eb   : > { %v3288_v3 = vadd.f32 %v3287_v10, %v3233_v19 }
 0x4ed   : > { %v6471_v55 = vadd.f32 %v3288_v3, %v6300_v21 }
 0x4f0   : > { %v3234_v27 = vpop.f32.mrf.mxu2 }
 0x4f1   : > { %v3289_v23 = vpop.f32.mrf.mxu3  ;;  %v3235_v20 = vadd.f32 %v3234_v27, %v3179_v48  ;;  %v3182_v24 = vpop.f32.mrf.mxu1 }
 0x4f3   : > { %v3290_v53 = vadd.f32 %v3289_v23, %v3235_v20 }
 0x4f4   : > { %3389 = vmatmul.bf16.gmra.mxu1 %v6072_v9 }
 0x4f5   : > { %v6476_v28 = vadd.f32 %v3290_v53, %v6302_v45  ;;  %3444 = vmatmul.bf16.gmra.mxu2 %v6075_v17 }
 0x4f8   : > { %v3237_v46 = vpop.f32.mrf.mxu2  ;;  %3349 = vmatmul.bf16.gmra.mxu0 %v6119_v42 }
 0x4f9   : > { %v3292_v11 = vpop.f32.mrf.mxu3  ;;  %v3238_v7 = vadd.f32 %v3237_v46, %v3182_v24  ;;  %v3184_v32 = vpop.f32.mrf.mxu1 }
 0x4fb   : > { %v3293_v21 = vadd.f32 %v3292_v11, %v3238_v7 }
 0x4fd   : > { %v6480_v56 = vadd.f32 %v3293_v21, %v6319_v14 }
 0x500   : > { %v3239_v43 = vpop.f32.mrf.mxu2 }
 0x501   : > { %v3294_v38 = vpop.f32.mrf.mxu3  ;;  %v3240_v39 = vadd.f32 %v3239_v43, %v3184_v32  ;;  %v3187_v62 = vpop.f32.mrf.mxu1 }
 0x503   : > { %v3295_v9 = vadd.f32 %v3294_v38, %v3240_v39 }
 0x504   : > { %3394 = vmatmul.bf16.gmra.mxu1 %v6095_v5 }
 0x505   : > { %v6485_v45 = vadd.f32 %v3295_v9, %v6321_v36  ;;  %3449 = vmatmul.bf16.gmra.mxu2 %v6098_v31  ;;  %v3319_v1 = vpop.f32.mrf.mxu0 }
 0x508   : > { %v3242_v17 = vpop.f32.mrf.mxu2  ;;  %3354 = vmatmul.bf16.gmra.mxu0 %v6150_v40 }
 0x509   : > { %v3297_v51 = vpop.f32.mrf.mxu3  ;;  %v3243_v61 = vadd.f32 %v3242_v17, %v3187_v62  ;;  %v3189_v26 = vpop.f32.mrf.mxu1 }
 0x50b   : > { %v3298_v14 = vadd.f32 %v3297_v51, %v3243_v61  ;;  %v6514_v51 = vld [vmem:[%s6596_s5] ss:$0 sm:$0xff] }
 0x50d   : > { %v6489_v47 = vadd.f32 %v3298_v14, %v6338_v29  ;;  %v3320_v36 = vpop.f32.mrf.mxu0  ;;  %v6520_v14 = vld [vmem:[%s6597_s6] ss:$0 sm:$0xff] }
 0x510   : > { %v3244_v44 = vpop.f32.mrf.mxu2 }
 0x511   : > { %v3299_v2 = vpop.f32.mrf.mxu3  ;;  %v3245_v42 = vadd.f32 %v3244_v44, %v3189_v26  ;;  %v3192_v49 = vpop.f32.mrf.mxu1 }
 0x513   : > { %v3300_v5 = vadd.f32 %v3299_v2, %v3245_v42 }
 0x514   : > { %3399 = vmatmul.bf16.gmra.mxu1 %v6122_v63 }
 0x515   : > { %v6494_v31 = vadd.f32 %v3300_v5, %v6340_v22  ;;  %3454 = vmatmul.bf16.gmra.mxu2 %v6125_v8  ;;  %v3322_v10 = vpop.f32.mrf.mxu0 }
 0x518   : > { %v3247_v4 = vpop.f32.mrf.mxu2  ;;  %3359 = vmatmul.bf16.gmra.mxu0 %v6193_v57 }
 0x519   : > { %v3302_v60 = vpop.f32.mrf.mxu3  ;;  %v3248_v29 = vadd.f32 %v3247_v4, %v3192_v49  ;;  %v3194_v33 = vpop.f32.mrf.mxu1 }
 0x51b   : > { %v3303_v12 = vadd.f32 %v3302_v60, %v3248_v29 }
 0x51d   : > { %v6498_v52 = vadd.f32 %v3303_v12, %v6351_v6  ;;  %v3323_v22 = vpop.f32.mrf.mxu0 }
 0x520   : > { %v3249_v19 = vpop.f32.mrf.mxu2 }
 0x521   : > { %v3304_v40 = vpop.f32.mrf.mxu3  ;;  %v3250_v48 = vadd.f32 %v3249_v19, %v3194_v33  ;;  %v3197_v3 = vpop.f32.mrf.mxu1 }
 0x523   : > { %v3305_v63 = vadd.f32 %v3304_v40, %v3250_v48 }
 0x524   : > { %3404 = vmatmul.bf16.gmra.mxu1 %v6162_v30 }
 0x525   : > { %v6503_v8 = vadd.f32 %v3305_v63, %v6365_v15  ;;  %3459 = vmatmul.bf16.gmra.mxu2 %v6165_v58  ;;  %v3325_v46 = vpop.f32.mrf.mxu0 }
 0x528   : > { %v3252_v27 = vpop.f32.mrf.mxu2 }
 0x529   : > { %v3307_v23 = vpop.f32.mrf.mxu3  ;;  %v3198_v6 = vpop.f32.mrf.mxu1 }
 0x52d   : > { %v3327_v15 = vpop.f32.mrf.mxu0 }
 0x530   : > { %v3253_v20 = vpop.f32.mrf.mxu2 }
 0x531   : > { %v3308_v24 = vpop.f32.mrf.mxu3  ;;  %v3374_v53 = vpop.f32.mrf.mxu1 }
 0x534   : > { %3409 = vmatmul.bf16.gmra.mxu1 %v6202_v59 }
 0x535   : > { %3464 = vmatmul.bf16.gmra.mxu2 %v6211_v0  ;;  %v3330_v21 = vpop.f32.mrf.mxu0 }
 0x538   : > { %v3429_v57 = vpop.f32.mrf.mxu2 }
 0x539   : > { %v3375_v11 = vpop.f32.mrf.mxu1 }
 0x53d   : > { %v3332_v62 = vpop.f32.mrf.mxu0 }
 0x540   : > { %v3430_v30 = vpop.f32.mrf.mxu2 }
 0x541   : > { %v3377_v7 = vpop.f32.mrf.mxu1 }
 0x544   : > { %3414 = vmatmul.bf16.gmra.mxu1 %v6233_v35 }
 0x545   : > { %3469 = vmatmul.bf16.gmra.mxu2 %v6236_v25  ;;  %v3335_v25 = vpop.f32.mrf.mxu0 }
 0x548   : > { %v3432_v58 = vpop.f32.mrf.mxu2 }
 0x549   : > { %v3378_v32 = vpop.f32.mrf.mxu1 }
 0x54d   : > { %v3337_v12 = vpop.f32.mrf.mxu0 }
 0x550   : > { %v3433_v43 = vpop.f32.mrf.mxu2 }
 0x551   : > { %v3380_v38 = vpop.f32.mrf.mxu1 }
 0x552   : > { %v3381_v39 = vadd.f32 %v3380_v38, %v3325_v46 }
 0x555   : > { %v3340_v27 = vpop.f32.mrf.mxu0 }
 0x558   : > { %v3435_v59 = vpop.f32.mrf.mxu2 }
 0x559   : > { %v3436_v9 = vadd.f32 %v3435_v59, %v3381_v39  ;;  %v3382_v0 = vpop.f32.mrf.mxu1 }
 0x55a   : > { %v3383_v35 = vadd.f32 %v3382_v0, %v3327_v15 }
 0x55b   : > { %v3491_v17 = vadd.f32 %v6435_v41, %v3436_v9 }
 0x55d   : > { %v3511_v26 = vmul.f32 %v6514_v51, %v3491_v17  ;;  %v3342_v15 = vpop.f32.mrf.mxu0 }
 0x55f   : > { %v3531_v2 = vadd.f32 %v6520_v14, %v3511_v26 }
 0x560   : > { %v3437_v61 = vpop.f32.mrf.mxu2 }
 0x561   : > { %v3438_v1 = vadd.f32 %v3437_v61, %v3383_v35  ;;  %v3385_v44 = vpop.f32.mrf.mxu1  ;;  %v3547_v4 = vmax.f32 %v3531_v2, 0.0 }
 0x562   : > { %v3386_v49 = vadd.f32 %v3385_v44, %v3330_v21 }
 0x563   : > { %v3492_v41 = vadd.f32 %v6440_v37, %v3438_v1 }
 0x565   : > { %v3512_v42 = vmul.f32 %v6514_v51, %v3492_v41  ;;  %v3345_v17 = vpop.f32.mrf.mxu0 }
 0x567   : > { %v3532_v5 = vadd.f32 %v6520_v14, %v3512_v42 }
 0x568   : > { %v3440_v36 = vpop.f32.mrf.mxu2 }
 0x569   : > { %v3548_v60 = vmax.f32 %v3532_v5, 0.0  ;;  %v3441_v29 = vadd.f32 %v3440_v36, %v3386_v49  ;;  %v3387_v33 = vpop.f32.mrf.mxu1 }
 0x56a   : > { %v3388_v40 = vadd.f32 %v3387_v33, %v3332_v62 }
 0x56b   : > { %v4508_v10 = vpack.c.bf16 %v3548_v60, %v3547_v4  ;;  %v3493_v19 = vadd.f32 %v6444_v54, %v3441_v29 }
 0x56d   : > { %4509 = vst [vmem:[%s4868_s13] sm:$0xff] %v4508_v10   ;;  %v3513_v37 = vmul.f32 %v6514_v51, %v3493_v19  ;;  %v3347_v49 = vpop.f32.mrf.mxu0 }
 0x56f   : > { %v3533_v23 = vadd.f32 %v6520_v14, %v3513_v37 }
 0x570   : > { %v3442_v48 = vpop.f32.mrf.mxu2 }
 0x571   : > { %v3443_v3 = vadd.f32 %v3442_v48, %v3388_v40  ;;  %v3390_v63 = vpop.f32.mrf.mxu1  ;;  %v3549_v57 = vmax.f32 %v3533_v23, 0.0 }
 0x572   : > { %v3391_v20 = vadd.f32 %v3390_v63, %v3335_v25 }
 0x573   : > { %v3494_v22 = vadd.f32 %v6449_v13, %v3443_v3 }
 0x575   : > { %v3514_v6 = vmul.f32 %v6514_v51, %v3494_v22  ;;  %v3350_v48 = vpop.f32.mrf.mxu0 }
 0x577   : > { %v3534_v24 = vadd.f32 %v6520_v14, %v3514_v6 }
 0x578   : > { %v3445_v53 = vpop.f32.mrf.mxu2 }
 0x579   : > { %v3550_v54 = vmax.f32 %v3534_v24, 0.0  ;;  %v3446_v46 = vadd.f32 %v3445_v53, %v3391_v20  ;;  %v3392_v11 = vpop.f32.mrf.mxu1 }
 0x57a   : > { %v3393_v58 = vadd.f32 %v3392_v11, %v3337_v12 }
 0x57b   : > { %v4513_v30 = vpack.c.bf16 %v3550_v54, %v3549_v57  ;;  %v3495_v7 = vadd.f32 %v6453_v16, %v3446_v46 }
 0x57d   : > { %4564 = vst [vmem:[%s4868_s13 + $0x8] sm:$0xff] %v4513_v30   ;;  %v3515_v32 = vmul.f32 %v6514_v51, %v3495_v7  ;;  %v3352_v53 = vpop.f32.mrf.mxu0 }
 0x57f   : > { %v3535_v39 = vadd.f32 %v6520_v14, %v3515_v32 }
 0x580   : > { %v3447_v13 = vpop.f32.mrf.mxu2 }
 0x581   : > { %v3448_v21 = vadd.f32 %v3447_v13, %v3393_v58  ;;  %v3395_v43 = vpop.f32.mrf.mxu1  ;;  %v3551_v16 = vmax.f32 %v3535_v39, 0.0 }
 0x582   : > { %v3396_v59 = vadd.f32 %v3395_v43, %v3340_v27 }
 0x583   : > { %v3496_v38 = vadd.f32 %v6458_v50, %v3448_v21 }
 0x585   : > { %v3516_v62 = vmul.f32 %v6514_v51, %v3496_v38  ;;  %v3355_v13 = vpop.f32.mrf.mxu0 }
 0x587   : > { %v3536_v9 = vadd.f32 %v6520_v14, %v3516_v62 }
 0x588   : > { %v3450_v0 = vpop.f32.mrf.mxu2 }
 0x589   : > { %v3552_v35 = vmax.f32 %v3536_v9, 0.0  ;;  %v3451_v61 = vadd.f32 %v3450_v0, %v3396_v59  ;;  %v3397_v25 = vpop.f32.mrf.mxu1 }
 0x58a   : > { %v3398_v44 = vadd.f32 %v3397_v25, %v3342_v15 }
 0x58b   : > { %v4518_v26 = vpack.c.bf16 %v3552_v35, %v3551_v16  ;;  %v3497_v1 = vadd.f32 %v6462_v18, %v3451_v61 }
 0x58d   : > { %4565 = vst [vmem:[%s4868_s13 + $0x10] sm:$0xff] %v4518_v26   ;;  %v3517_v50 = vmul.f32 %v6514_v51, %v3497_v1  ;;  %v3357_v61 = vpop.f32.mrf.mxu0 }
 0x58f   : > { %v3537_v36 = vadd.f32 %v6520_v14, %v3517_v50 }
 0x590   : > { %v3452_v41 = vpop.f32.mrf.mxu2 }
 0x591   : > { %v3453_v2 = vadd.f32 %v3452_v41, %v3398_v44  ;;  %v3400_v42 = vpop.f32.mrf.mxu1  ;;  %v3553_v12 = vmax.f32 %v3537_v36, 0.0 }
 0x592   : > { %v3401_v60 = vadd.f32 %v3400_v42, %v3345_v17 }
 0x593   : > { %v3498_v5 = vadd.f32 %v6467_v34, %v3453_v2 }
 0x595   : > { %v3518_v4 = vmul.f32 %v6514_v51, %v3498_v5  ;;  %v3360_v42 = vpop.f32.mrf.mxu0 }
 0x597   : > { %v3538_v29 = vadd.f32 %v6520_v14, %v3518_v4 }
 0x598   : > { %v3455_v33 = vpop.f32.mrf.mxu2 }
 0x599   : > { %v3554_v18 = vmax.f32 %v3538_v29, 0.0  ;;  %v3456_v10 = vadd.f32 %v3455_v33, %v3401_v60  ;;  %v3402_v19 = vpop.f32.mrf.mxu1 }
 0x59a   : > { %v3403_v3 = vadd.f32 %v3402_v19, %v3347_v49 }
 0x59b   : > { %v4523_v40 = vpack.c.bf16 %v3554_v18, %v3553_v12  ;;  %v3499_v37 = vadd.f32 %v6471_v55, %v3456_v10 }
 0x59d   : > { %4566 = vst [vmem:[%s4868_s13 + $0x18] sm:$0xff] %v4523_v40   ;;  %v3519_v34 = vmul.f32 %v6514_v51, %v3499_v37  ;;  %v3362_v19 = vpop.f32.mrf.mxu0 }
 0x59f   : > { %v3539_v6 = vadd.f32 %v6520_v14, %v3519_v34 }
 0x5a0   : > { %v3457_v63 = vpop.f32.mrf.mxu2 }
 0x5a1   : > { %v3458_v22 = vadd.f32 %v3457_v63, %v3403_v3  ;;  %v3405_v27 = vpop.f32.mrf.mxu1  ;;  %v3555_v46 = vmax.f32 %v3539_v6, 0.0 }
 0x5a2   : > { %v3406_v24 = vadd.f32 %v3405_v27, %v3350_v48 }
 0x5a3   : > { %v3500_v23 = vadd.f32 %v6476_v28, %v3458_v22 }
 0x5a5   : > { %v3520_v20 = vmul.f32 %v6514_v51, %v3500_v23 }
 0x5a7   : > { %v3540_v57 = vadd.f32 %v6520_v14, %v3520_v20 }
 0x5a8   : > { %v3460_v54 = vpop.f32.mrf.mxu2 }
 0x5a9   : > { %v3556_v55 = vmax.f32 %v3540_v57, 0.0  ;;  %v3461_v11 = vadd.f32 %v3460_v54, %v3406_v24  ;;  %v3407_v30 = vpop.f32.mrf.mxu1 }
 0x5aa   : > { %v3408_v58 = vadd.f32 %v3407_v30, %v3352_v53 }
 0x5ab   : > { %v4528_v7 = vpack.c.bf16 %v3556_v55, %v3555_v46  ;;  %v3501_v15 = vadd.f32 %v6480_v56, %v3461_v11 }
 0x5ad   : > { %4567 = vst [vmem:[%s4868_s13 + $0x20] sm:$0xff] %v4528_v7   ;;  %v3521_v32 = vmul.f32 %v6514_v51, %v3501_v15 }
 0x5af   : > { %v3541_v39 = vadd.f32 %v6520_v14, %v3521_v32 }
 0x5b0   : > { %v3462_v28 = vpop.f32.mrf.mxu2 }
 0x5b1   : > { %v3463_v21 = vadd.f32 %v3462_v28, %v3408_v58  ;;  %v3410_v43 = vpop.f32.mrf.mxu1  ;;  %v3557_v17 = vmax.f32 %v3541_v39, 0.0 }
 0x5b2   : > { %v3411_v59 = vadd.f32 %v3410_v43, %v3355_v13 }
 0x5b3   : > { %v3502_v38 = vadd.f32 %v6485_v45, %v3463_v21 }
 0x5b5   : > { %v3522_v62 = vmul.f32 %v6514_v51, %v3502_v38 }
 0x5b7   : > { %v3542_v9 = vadd.f32 %v6520_v14, %v3522_v62 }
 0x5b8   : > { %v3465_v0 = vpop.f32.mrf.mxu2 }
 0x5b9   : > { %v3558_v56 = vmax.f32 %v3542_v9, 0.0  ;;  %v3466_v16 = vadd.f32 %v3465_v0, %v3411_v59  ;;  %v3412_v35 = vpop.f32.mrf.mxu1 }
 0x5ba   : > { %v3413_v1 = vadd.f32 %v3412_v35, %v3357_v61 }
 0x5bb   : > { %v4533_v25 = vpack.c.bf16 %v3558_v56, %v3557_v17  ;;  %v3503_v26 = vadd.f32 %v6489_v47, %v3466_v16 }
 0x5bd   : > { %4568 = vst [vmem:[%s4868_s13 + $0x28] sm:$0xff] %v4533_v25   ;;  %v3523_v45 = vmul.f32 %v6514_v51, %v3503_v26 }
 0x5bf   : > { %v3543_v49 = vadd.f32 %v6520_v14, %v3523_v45 }
 0x5c0   : > { %v3467_v44 = vpop.f32.mrf.mxu2 }
 0x5c1   : > { %v3468_v41 = vadd.f32 %v3467_v44, %v3413_v1  ;;  %v3415_v50 = vpop.f32.mrf.mxu1  ;;  %v3559_v29 = vmax.f32 %v3543_v49, 0.0 }
 0x5c2   : > { %v3416_v36 = vadd.f32 %v3415_v50, %v3360_v42 }
 0x5c3   : > { %v3504_v2 = vadd.f32 %v6494_v31, %v3468_v41 }
 0x5c5   : > { %v3524_v5 = vmul.f32 %v6514_v51, %v3504_v2 }
 0x5c7   : > { %v3544_v4 = vadd.f32 %v6520_v14, %v3524_v5 }
 0x5c8   : > { %v3470_v60 = vpop.f32.mrf.mxu2 }
 0x5c9   : > { %v3560_v47 = vmax.f32 %v3544_v4, 0.0  ;;  %v3471_v33 = vadd.f32 %v3470_v60, %v3416_v36  ;;  %v3417_v18 = vpop.f32.mrf.mxu1 }
 0x5ca   : > { %v3418_v31 = vadd.f32 %v3417_v18, %v3362_v19 }
 0x5cb   : > { %v4538_v12 = vpack.c.bf16 %v3560_v47, %v3559_v29  ;;  %v3505_v10 = vadd.f32 %v6498_v52, %v3471_v33 }
 0x5cd   : > { %4569 = vst [vmem:[%s4868_s13 + $0x30] sm:$0xff] %v4538_v12   ;;  %v3525_v48 = vmul.f32 %v6514_v51, %v3505_v10 }
 0x5cf   : > { %v3545_v63 = vadd.f32 %v6520_v14, %v3525_v48 }
 0x5d0   : > { %v3472_v40 = vpop.f32.mrf.mxu2 }
 0x5d1   : > { %v3473_v37 = vadd.f32 %v3472_v40, %v3418_v31  ;;  %v3561_v27 = vmax.f32 %v3545_v63, 0.0 }
 0x5d3   : > { %v3506_v3 = vadd.f32 %v6503_v8, %v3473_v37 }
 0x5d5   : > { %v3526_v34 = vmul.f32 %v6514_v51, %v3506_v3 }
 0x5d7   : > { %v3546_v22 = vadd.f32 %v6520_v14, %v3526_v34 }
 0x5d9   : > { %v3562_v23 = vmax.f32 %v3546_v22, 0.0 }
 0x5db   : > { %v4543_v6 = vpack.c.bf16 %v3562_v23, %v3561_v27 }
 0x5dd   : > { %4570 = vst [vmem:[%s4868_s13 + $0x38] sm:$0xff] %v4543_v6  }
 0x5de PF: > { %s17_s28 = sadd.s32 1, %s4700_s28   ;;  %s6631_s24 = smov %s4692_s26 }
 0x5df   : > { %p14_p9 = scmp.ge.s32.totalorder %s17_s28, 6   ;;  %s6632_s25 = smov %s4696_s27 }
 0x5e0   : > { %s6633_s26 = smov %s6636_s29  ;;  %s6634_s27 = smov %s6640_s30 }
 0x5e1   :  { %16 = sbr.rel (!%p14_p9) target bundleno = 3 (0x3), region = 88 }

</bundles_post_ra>
